<compile_context>
chip_gen: v7x
topology: tpu7x:2x2x1
jax: 0.10.0
libtpu: 0.0.40
codegen_flags: <defaults>
</compile_context>

<pallas_src>
import functools

import jax
import jax.numpy as jnp
from jax.experimental import pallas as pl
from jax.experimental.pallas import tpu as pltpu


# -----------------------------------------------------------------------------
# Helpers
# -----------------------------------------------------------------------------

# Padded-input row offsets contributing to each output-row parity of the
# k=5 / s=2 / p=2 / op=1 transposed conv (offset ro maps to kh = 2*ro - phase).
_ROFFS = {0: (0, 1, 2), 1: (1, 2)}


def _pick_strip_rows(h, requested=None):
    """Largest divisor of h that is <= requested (default 8).

    Strips tile the *output* rows only; the whole padded input stays resident
    in VMEM scratch, so no halo exchange is needed.  Tune larger on v6e
    (amortize per-step overhead), smaller on v7x (64 MiB VMEM / 2 TCs).
    """
    target = min(h, requested if requested is not None else 8)
    for th in range(target, 0, -1):
        if h % th == 0:
            return th
    return h


def _pack_deconv_k5s2_weights(w, dtype):
    """Pack (5,5,Cin,Cout) HWIO weights into per-row-phase tap slabs.

    Returns:
      w_even: (9, Cin, 2*Cout)  taps for even output rows (kh in {0,2,4})
      w_odd : (6, Cin, 2*Cout)  taps for odd  output rows (kh in {1,3})
    Tap order is row-offset-major, col-offset (0,1,2).  The trailing 2*Cout is
    [even-output-column channels | odd-output-column channels]; the odd half of
    the col-offset-0 tap is structurally zero (~20% extra MXU flops traded for
    dense, relayout-free stores).
    """
    K, _, Cin, Cout = w.shape
    assert K == 5
    zero = jnp.zeros((Cin, Cout), w.dtype)
    packed = []
    for ph in (0, 1):
        slabs = []
        for ro in _ROFFS[ph]:
            kh = 2 * ro - ph                          # ph=0 -> {0,2,4}; ph=1 -> {1,3}
            for co in (0, 1, 2):
                even = w[kh, 2 * co]                  # kw in {0,2,4}
                odd = w[kh, 2 * co - 1] if co >= 1 else zero   # kw in {1,3}
                slabs.append(jnp.concatenate([even, odd], axis=-1))
        packed.append(jnp.stack(slabs, axis=0).astype(dtype))
    return packed[0], packed[1]


def _fill_padded_input(x_ref, xp_ref):
    """Zero only the 1-px halo border strips, then copy x into the interior."""
    Hp, Wp, Ci = xp_ref.shape
    dt = xp_ref.dtype
    xp_ref[0:1, :, :] = jnp.zeros((1, Wp, Ci), dt)
    xp_ref[Hp - 1:Hp, :, :] = jnp.zeros((1, Wp, Ci), dt)
    xp_ref[:, 0:1, :] = jnp.zeros((Hp, 1, Ci), dt)
    xp_ref[:, Wp - 1:Wp, :] = jnp.zeros((Hp, 1, Ci), dt)
    xp_ref[1:Hp - 1, 1:Wp - 1, :] = x_ref[0]


def _accumulate_taps(xp_ref, w_ref, acc_ref, taps, row0, th, W):
    """acc = sum_t  x_window(t) @ w[t]  as per-tap 2-D MXU matmuls (f32 acc)."""
    for t, (ro, co) in enumerate(taps):
        xs = xp_ref[pl.ds(row0 + ro, th), co:co + W, :]       # (th, W, Cin)
        x2d = xs.reshape(th * W, xs.shape[-1])                # single big matmul
        contrib = jnp.dot(x2d, w_ref[t], preferred_element_type=jnp.float32)
        if t == 0:
            acc_ref[...] = contrib        # first tap overwrites: no zero-init pass
        else:
            acc_ref[...] += contrib
    return acc_ref[...]


# -----------------------------------------------------------------------------
# Stride-2 transposed conv (K=5, padding=2, output_padding=1), NHWC.
# -----------------------------------------------------------------------------

def _deconv_k5s2_kernel(x_ref, we_ref, wo_ref, b_ref, o_ref, xp_ref, acc_ref,
                        *, th, relu):
    W = x_ref.shape[2]
    s = pl.program_id(1)

    @pl.when(s == 0)          # input block is image-resident; fill once per image
    def _():
        _fill_padded_input(x_ref, xp_ref)

    row0 = s * th
    bias = b_ref[...].astype(jnp.float32)                     # (1, 2*Cout)

    for ph, w_ref in ((0, we_ref), (1, wo_ref)):
        taps = [(ro, co) for ro in _ROFFS[ph] for co in (0, 1, 2)]
        acc = _accumulate_taps(xp_ref, w_ref, acc_ref, taps, row0, th, W)
        out = acc + bias                                      # f32 epilogue
        if relu:
            out = jnp.maximum(out, 0.0)
        out = out.astype(o_ref.dtype).reshape(th, W, out.shape[-1])
        o_ref[0, :, ph, :, :] = out                           # dense (W, 2*Cout) store


def deconv2x_pallas(x, w, b, *, relu, dtype=jnp.bfloat16, out_dtype=None,
                    strip_rows=None, vmem_limit_bytes=None):
    """ConvTranspose2d(k=5, s=2, p=2, op=1) in NHWC via sub-pixel phases."""
    B, H, W, Cin = x.shape
    Cout = w.shape[-1]
    if out_dtype is None:
        out_dtype = dtype
    th = _pick_strip_rows(H, strip_rows)
    we, wo = _pack_deconv_k5s2_weights(w, dtype)
    b2 = jnp.concatenate([b, b], axis=-1).astype(jnp.float32)  # (1, 2*Cout)
    x = x.astype(dtype)

    cp = dict(dimension_semantics=("parallel", "arbitrary"))
    if vmem_limit_bytes is not None:
        cp["vmem_limit_bytes"] = int(vmem_limit_bytes)

    out = pl.pallas_call(
        functools.partial(_deconv_k5s2_kernel, th=th, relu=relu),
        # (B, H, 2, W, 2*Cout) has the same linear layout as the pixel-shuffled
        # (B, 2H, 2W, Cout): the shuffle below is a free reshape (no HBM pass).
        out_shape=jax.ShapeDtypeStruct((B, H, 2, W, 2 * Cout), out_dtype),
        grid=(B, H // th),
        in_specs=[
            pl.BlockSpec((1, H, W, Cin), lambda bi, si: (bi, 0, 0, 0)),
            # TODO(synk): single-buffer these constant-index weight/bias blocks
            # (pl.Buffered(1) / persistent scratch DMA) to drop one duplicate
            # weight copy from VMEM once verified on the target jax version.
            pl.BlockSpec(we.shape, lambda bi, si: (0, 0, 0)),
            pl.BlockSpec(wo.shape, lambda bi, si: (0, 0, 0)),
            pl.BlockSpec(b2.shape, lambda bi, si: (0, 0)),
        ],
        out_specs=pl.BlockSpec((1, th, 2, W, 2 * Cout),
                               lambda bi, si: (bi, si, 0, 0, 0)),
        scratch_shapes=[
            pltpu.VMEM((H + 2, W + 2, Cin), dtype),        # padded input (whole image)
            pltpu.VMEM((th * W, 2 * Cout), jnp.float32),   # f32 accumulator (one strip)
        ],
        compiler_params=pltpu.CompilerParams(**cp),
    )(x, we, wo, b2)

    return out.reshape(B, 2 * H, 2 * W, Cout)   # free: identical linear layout


# -----------------------------------------------------------------------------
# Stride-1 3x3 "same" conv (the K=3, s=1 deconv degenerates to this).
# -----------------------------------------------------------------------------

def _conv3x3_kernel(x_ref, w_ref, b_ref, o_ref, xp_ref, acc_ref, *, th):
    W = x_ref.shape[2]
    s = pl.program_id(1)

    @pl.when(s == 0)
    def _():
        _fill_padded_input(x_ref, xp_ref)

    row0 = s * th
    taps = [(kh, kw) for kh in (0, 1, 2) for kw in (0, 1, 2)]
    acc = _accumulate_taps(xp_ref, w_ref, acc_ref, taps, row0, th, W)
    out = acc + b_ref[...].astype(jnp.float32)
    o_ref[0] = out.astype(o_ref.dtype).reshape(th, W, out.shape[-1])


def conv3x3_pallas(x, w, b, *, dtype=jnp.bfloat16, out_dtype=None,
                   strip_rows=None, vmem_limit_bytes=None):
    B, H, W, Cin = x.shape
    Cout = w.shape[-1]
    if out_dtype is None:
        out_dtype = dtype
    th = _pick_strip_rows(H, strip_rows)
    wp = w.reshape(9, Cin, Cout).astype(dtype)                 # tap-major (kh*3+kw)
    bp = b.astype(jnp.float32)                                 # (1, Cout)
    x = x.astype(dtype)

    cp = dict(dimension_semantics=("parallel", "arbitrary"))
    if vmem_limit_bytes is not None:
        cp["vmem_limit_bytes"] = int(vmem_limit_bytes)

    return pl.pallas_call(
        functools.partial(_conv3x3_kernel, th=th),
        out_shape=jax.ShapeDtypeStruct((B, H, W, Cout), out_dtype),
        grid=(B, H // th),
        in_specs=[
            pl.BlockSpec((1, H, W, Cin), lambda bi, si: (bi, 0, 0, 0)),
            pl.BlockSpec(wp.shape, lambda bi, si: (0, 0, 0)),
            pl.BlockSpec(bp.shape, lambda bi, si: (0, 0)),
        ],
        out_specs=pl.BlockSpec((1, th, W, Cout), lambda bi, si: (bi, si, 0, 0)),
        scratch_shapes=[
            pltpu.VMEM((H + 2, W + 2, Cin), dtype),
            pltpu.VMEM((th * W, Cout), jnp.float32),
        ],
        compiler_params=pltpu.CompilerParams(**cp),
    )(x, wp, bp)


# -----------------------------------------------------------------------------
# Pure-XLA reference (same HWIO weights, lhs-dilation formulation).
# -----------------------------------------------------------------------------

def deconv_ref(x, w, b, *, stride, padding, output_padding):
    K = w.shape[0]
    lo = K - 1 - padding
    hi = lo + output_padding
    y = jax.lax.conv_general_dilated(
        x, w, window_strides=(1, 1), padding=[(lo, hi), (lo, hi)],
        lhs_dilation=(stride, stride),
        dimension_numbers=('NHWC', 'HWIO', 'NHWC'),
        precision=jax.lax.Precision.HIGHEST)
    return y + b[0]


# -----------------------------------------------------------------------------
# Module forward.
# -----------------------------------------------------------------------------

def init_params(key, N, M):
    """Deterministic synthetic params; weights stored as (kH, kW, Cin, Cout)."""
    ks = jax.random.split(key, 6)
    c1, c2, c3 = M, M * 3 // 2, M * 2
    w1 = 0.1 * jax.random.normal(ks[0], (5, 5, N, c1), jnp.float32)
    b1 = 0.1 * jax.random.normal(ks[1], (1, c1), jnp.float32)
    w2 = 0.1 * jax.random.normal(ks[2], (5, 5, c1, c2), jnp.float32)
    b2 = 0.1 * jax.random.normal(ks[3], (1, c2), jnp.float32)
    w3 = 0.1 * jax.random.normal(ks[4], (3, 3, c2, c3), jnp.float32)
    b3 = 0.1 * jax.random.normal(ks[5], (1, c3), jnp.float32)
    return (w1, b1, w2, b2, w3, b3)


def hyper_synthesis_ex(x_nchw, params, dtype=jnp.bfloat16):
    """Forward pass of HyperSynthesisEX. Input/output NCHW, like PyTorch."""
    w1, b1, w2, b2, w3, b3 = params
    x = jnp.transpose(x_nchw, (0, 2, 3, 1))                  # NCHW -> NHWC
    x = deconv2x_pallas(x, w1, b1, relu=True, dtype=dtype)
    x = deconv2x_pallas(x, w2, b2, relu=True, dtype=dtype)
    x = conv3x3_pallas(x, w3, b3, dtype=dtype, out_dtype=jnp.float32)
    return jnp.transpose(x, (0, 3, 1, 2))                    # NHWC -> NCHW (boundary)


def hyper_synthesis_ex_ref(x_nchw, params):
    w1, b1, w2, b2, w3, b3 = params
    x = jnp.transpose(x_nchw, (0, 2, 3, 1))
    x = jnp.maximum(deconv_ref(x, w1, b1, stride=2, padding=2, output_padding=1), 0.0)
    x = jnp.maximum(deconv_ref(x, w2, b2, stride=2, padding=2, output_padding=1), 0.0)
    x = deconv_ref(x, w3, b3, stride=1, padding=1, output_padding=0)
    return jnp.transpose(x, (0, 3, 1, 2))


if __name__ == "__main__":
    N, M = 4, 8                        # small synthetic channel sizes
    B, H, W = 2, 16, 16                # hyper-latent spatial size
    key = jax.random.PRNGKey(0)
    kx, kp = jax.random.split(key)
    x = jax.random.normal(kx, (B, N, H, W), jnp.float32)
    params = init_params(kp, N, M)

    # 1) Structural check in f32 (exercises phases, weight packing, strips).
    out_f32 = jax.block_until_ready(hyper_synthesis_ex(x, params, dtype=jnp.float32))
    assert out_f32.shape == (B, 2 * M, 4 * H, 4 * W), out_f32.shape
    ref = jax.block_until_ready(hyper_synthesis_ex_ref(x, params))
    err32 = float(jnp.max(jnp.abs(out_f32 - ref)))
    assert jnp.allclose(out_f32, ref, atol=3e-2, rtol=3e-2), err32

    # 2) bf16 fast path (bf16 weights/activations, f32 accumulation) vs an XLA
    #    reference built from the same bf16-quantized weights/input.
    q = lambda a: a.astype(jnp.bfloat16).astype(jnp.float32)
    params_q = tuple(q(p) for p in params)
    ref_q = jax.block_until_ready(hyper_synthesis_ex_ref(q(x), params_q))
    out_bf = jax.block_until_ready(hyper_synthesis_ex(x, params, dtype=jnp.bfloat16))
    assert out_bf.shape == ref_q.shape, out_bf.shape
    err_bf = float(jnp.max(jnp.abs(out_bf.astype(jnp.float32) - ref_q)))
    assert jnp.allclose(out_bf.astype(jnp.float32), ref_q, atol=8e-2, rtol=8e-2), err_bf

    print("KERNEL_OK")
</pallas_src>

<mosaic_0001>
module attributes {stable_mosaic.version = 11 : i64} {
  func.func @_deconv_k5s2_kernel(%arg0: i32, %arg1: i32, %arg2: memref<1x16x16x4xf32, #tpu.memory_space<vmem>>, %arg3: memref<9x4x16xf32, #tpu.memory_space<vmem>>, %arg4: memref<6x4x16xf32, #tpu.memory_space<vmem>>, %arg5: memref<1x16xf32, #tpu.memory_space<vmem>>, %arg6: memref<1x8x2x16x16xf32, #tpu.memory_space<vmem>>, %arg7: memref<18x18x4xf32, #tpu.memory_space<vmem>>, %arg8: memref<128x16xf32, #tpu.memory_space<vmem>>) attributes {dimension_semantics = [#tpu.dimension_semantics<parallel>, #tpu.dimension_semantics<arbitrary>], iteration_bounds = array<i64: 2, 2>, scalar_prefetch = 0 : i64, scratch_operands = 2 : i64, tpu.core_type = #tpu.core_type<tc>, window_params = [{transform_indices = @transform_0, window_bounds = array<i64: 1, 16, 16, 4>}, {pipeline_mode = #tpu.pipeline_mode<synchronous>, transform_indices = @transform_1, window_bounds = array<i64: 9, 4, 16>}, {pipeline_mode = #tpu.pipeline_mode<synchronous>, transform_indices = @transform_2, window_bounds = array<i64: 6, 4, 16>}, {pipeline_mode = #tpu.pipeline_mode<synchronous>, transform_indices = @transform_3, window_bounds = array<i64: 1, 16>}, {transform_indices = @transform_4, window_bounds = array<i64: 1, 8, 2, 16, 16>}]} {
    %c0_i32 = arith.constant 0 : i32
    %0 = arith.cmpi eq, %arg1, %c0_i32 : i32
    %1 = arith.extui %0 : i1 to i32
    %c0_i32_0 = arith.constant 0 : i32
    %2 = arith.cmpi ne, %1, %c0_i32_0 : i32
    scf.if %2 {
      %cst_168 = arith.constant 0.000000e+00 : f32
      %169 = vector.broadcast %cst_168 : f32 to vector<1x18x4xf32>
      %c0_169 = arith.constant 0 : index
      %c0_170 = arith.constant 0 : index
      %c0_171 = arith.constant 0 : index
      %170 = vector.load %arg7[%c0_169, %c0_170, %c0_171] : memref<18x18x4xf32, #tpu.memory_space<vmem>>, vector<1x18x4xf32>
      tpu.vector_store %arg7[%c0_169, %c0_170, %c0_171], %169 {strides = array<i32>} : memref<18x18x4xf32, #tpu.memory_space<vmem>>, vector<1x18x4xf32>,
      %cst_172 = arith.constant 0.000000e+00 : f32
      %171 = vector.broadcast %cst_172 : f32 to vector<1x18x4xf32>
      %c17 = arith.constant 17 : index
      %c0_173 = arith.constant 0 : index
      %c0_174 = arith.constant 0 : index
      %172 = vector.load %arg7[%c17, %c0_173, %c0_174] : memref<18x18x4xf32, #tpu.memory_space<vmem>>, vector<1x18x4xf32>
      tpu.vector_store %arg7[%c17, %c0_173, %c0_174], %171 {strides = array<i32>} : memref<18x18x4xf32, #tpu.memory_space<vmem>>, vector<1x18x4xf32>,
      %cst_175 = arith.constant 0.000000e+00 : f32
      %173 = vector.broadcast %cst_175 : f32 to vector<18x1x4xf32>
      %c0_176 = arith.constant 0 : index
      %c0_177 = arith.constant 0 : index
      %c0_178 = arith.constant 0 : index
      %174 = vector.load %arg7[%c0_176, %c0_177, %c0_178] : memref<18x18x4xf32, #tpu.memory_space<vmem>>, vector<18x1x4xf32>
      tpu.vector_store %arg7[%c0_176, %c0_177, %c0_178], %173 {strides = array<i32>} : memref<18x18x4xf32, #tpu.memory_space<vmem>>, vector<18x1x4xf32>,
      %cst_179 = arith.constant 0.000000e+00 : f32
      %175 = vector.broadcast %cst_179 : f32 to vector<18x1x4xf32>
      %c0_180 = arith.constant 0 : index
      %c17_181 = arith.constant 17 : index
      %c0_182 = arith.constant 0 : index
      %176 = vector.load %arg7[%c0_180, %c17_181, %c0_182] : memref<18x18x4xf32, #tpu.memory_space<vmem>>, vector<18x1x4xf32>
      tpu.vector_store %arg7[%c0_180, %c17_181, %c0_182], %175 {strides = array<i32>} : memref<18x18x4xf32, #tpu.memory_space<vmem>>, vector<18x1x4xf32>,
      %c0_183 = arith.constant 0 : index
      %c0_184 = arith.constant 0 : index
      %c0_185 = arith.constant 0 : index
      %c0_186 = arith.constant 0 : index
      %177 = vector.load %arg2[%c0_183, %c0_184, %c0_185, %c0_186] : memref<1x16x16x4xf32, #tpu.memory_space<vmem>>, vector<1x16x16x4xf32>
      %178 = vector.shape_cast %177 : vector<1x16x16x4xf32> to vector<16x16x4xf32>
      %c1_187 = arith.constant 1 : index
      %c1_188 = arith.constant 1 : index
      %c0_189 = arith.constant 0 : index
      %179 = vector.load %arg7[%c1_187, %c1_188, %c0_189] : memref<18x18x4xf32, #tpu.memory_space<vmem>>, vector<16x16x4xf32>
      tpu.vector_store %arg7[%c1_187, %c1_188, %c0_189], %178 {strides = array<i32>} : memref<18x18x4xf32, #tpu.memory_space<vmem>>, vector<16x16x4xf32>,
    } else {
    }
    %c8_i32 = arith.constant 8 : i32
    %3 = arith.muli %arg1, %c8_i32 : i32
    %c0 = arith.constant 0 : index
    %c0_1 = arith.constant 0 : index
    %4 = vector.load %arg5[%c0, %c0_1] : memref<1x16xf32, #tpu.memory_space<vmem>>, vector<1x16xf32>
    %c0_i32_2 = arith.constant 0 : i32
    %5 = arith.addi %3, %c0_i32_2 : i32
    %6 = arith.index_cast %5 : i32 to index
    %c0_3 = arith.constant 0 : index
    %c0_4 = arith.constant 0 : index
    %7 = vector.load %arg7[%6, %c0_3, %c0_4] : memref<18x18x4xf32, #tpu.memory_space<vmem>>, vector<8x16x4xf32>
    %8 = vector.shape_cast %7 : vector<8x16x4xf32> to vector<128x4xf32>
    %c0_5 = arith.constant 0 : index
    %c0_6 = arith.constant 0 : index
    %c0_7 = arith.constant 0 : index
    %9 = vector.load %arg3[%c0_5, %c0_6, %c0_7] : memref<9x4x16xf32, #tpu.memory_space<vmem>>, vector<1x4x16xf32>
    %10 = vector.shape_cast %9 : vector<1x4x16xf32> to vector<4x16xf32>
    %cst = arith.constant dense<0.000000e+00> : vector<128x16xf32>
    %11 = tpu.matmul %8, %10, %cst {dimension_numbers = #tpu.dot_dimension_numbers<[1], [0], [0], [1], [0, 0, 1, 1], [], []>} : vector<128x4xf32>, vector<4x16xf32>, vector<128x16xf32> -> vector<128x16xf32>
    %c0_8 = arith.constant 0 : index
    %c0_9 = arith.constant 0 : index
    %12 = vector.load %arg8[%c0_8, %c0_9] : memref<128x16xf32, #tpu.memory_space<vmem>>, vector<128x16xf32>
    tpu.vector_store %arg8[%c0_8, %c0_9], %11 {strides = array<i32>} : memref<128x16xf32, #tpu.memory_space<vmem>>, vector<128x16xf32>,
    %c0_i32_10 = arith.constant 0 : i32
    %13 = arith.addi %3, %c0_i32_10 : i32
    %14 = arith.index_cast %13 : i32 to index
    %c1 = arith.constant 1 : index
    %c0_11 = arith.constant 0 : index
    %15 = vector.load %arg7[%14, %c1, %c0_11] : memref<18x18x4xf32, #tpu.memory_space<vmem>>, vector<8x16x4xf32>
    %16 = vector.shape_cast %15 : vector<8x16x4xf32> to vector<128x4xf32>
    %c1_12 = arith.constant 1 : index
    %c0_13 = arith.constant 0 : index
    %c0_14 = arith.constant 0 : index
    %17 = vector.load %arg3[%c1_12, %c0_13, %c0_14] : memref<9x4x16xf32, #tpu.memory_space<vmem>>, vector<1x4x16xf32>
    %18 = vector.shape_cast %17 : vector<1x4x16xf32> to vector<4x16xf32>
    %cst_15 = arith.constant dense<0.000000e+00> : vector<128x16xf32>
    %19 = tpu.matmul %16, %18, %cst_15 {dimension_numbers = #tpu.dot_dimension_numbers<[1], [0], [0], [1], [0, 0, 1, 1], [], []>} : vector<128x4xf32>, vector<4x16xf32>, vector<128x16xf32> -> vector<128x16xf32>
    %c0_16 = arith.constant 0 : index
    %c0_17 = arith.constant 0 : index
    %20 = vector.load %arg8[%c0_16, %c0_17] : memref<128x16xf32, #tpu.memory_space<vmem>>, vector<128x16xf32>
    %21 = arith.addf %20, %19 : vector<128x16xf32>
    %c0_18 = arith.constant 0 : index
    %c0_19 = arith.constant 0 : index
    %22 = vector.load %arg8[%c0_18, %c0_19] : memref<128x16xf32, #tpu.memory_space<vmem>>, vector<128x16xf32>
    tpu.vector_store %arg8[%c0_18, %c0_19], %21 {strides = array<i32>} : memref<128x16xf32, #tpu.memory_space<vmem>>, vector<128x16xf32>,
    %c0_i32_20 = arith.constant 0 : i32
    %23 = arith.addi %3, %c0_i32_20 : i32
    %24 = arith.index_cast %23 : i32 to index
    %c2 = arith.constant 2 : index
    %c0_21 = arith.constant 0 : index
    %25 = vector.load %arg7[%24, %c2, %c0_21] : memref<18x18x4xf32, #tpu.memory_space<vmem>>, vector<8x16x4xf32>
    %26 = vector.shape_cast %25 : vector<8x16x4xf32> to vector<128x4xf32>
    %c2_22 = arith.constant 2 : index
    %c0_23 = arith.constant 0 : index
    %c0_24 = arith.constant 0 : index
    %27 = vector.load %arg3[%c2_22, %c0_23, %c0_24] : memref<9x4x16xf32, #tpu.memory_space<vmem>>, vector<1x4x16xf32>
    %28 = vector.shape_cast %27 : vector<1x4x16xf32> to vector<4x16xf32>
    %cst_25 = arith.constant dense<0.000000e+00> : vector<128x16xf32>
    %29 = tpu.matmul %26, %28, %cst_25 {dimension_numbers = #tpu.dot_dimension_numbers<[1], [0], [0], [1], [0, 0, 1, 1], [], []>} : vector<128x4xf32>, vector<4x16xf32>, vector<128x16xf32> -> vector<128x16xf32>
    %c0_26 = arith.constant 0 : index
    %c0_27 = arith.constant 0 : index
    %30 = vector.load %arg8[%c0_26, %c0_27] : memref<128x16xf32, #tpu.memory_space<vmem>>, vector<128x16xf32>
    %31 = arith.addf %30, %29 : vector<128x16xf32>
    %c0_28 = arith.constant 0 : index
    %c0_29 = arith.constant 0 : index
    %32 = vector.load %arg8[%c0_28, %c0_29] : memref<128x16xf32, #tpu.memory_space<vmem>>, vector<128x16xf32>
    tpu.vector_store %arg8[%c0_28, %c0_29], %31 {strides = array<i32>} : memref<128x16xf32, #tpu.memory_space<vmem>>, vector<128x16xf32>,
    %c1_i32 = arith.constant 1 : i32
    %33 = arith.addi %3, %c1_i32 : i32
    %34 = arith.index_cast %33 : i32 to index
    %c0_30 = arith.constant 0 : index
    %c0_31 = arith.constant 0 : index
    %35 = vector.load %arg7[%34, %c0_30, %c0_31] : memref<18x18x4xf32, #tpu.memory_space<vmem>>, vector<8x16x4xf32>
    %36 = vector.shape_cast %35 : vector<8x16x4xf32> to vector<128x4xf32>
    %c3 = arith.constant 3 : index
    %c0_32 = arith.constant 0 : index
    %c0_33 = arith.constant 0 : index
    %37 = vector.load %arg3[%c3, %c0_32, %c0_33] : memref<9x4x16xf32, #tpu.memory_space<vmem>>, vector<1x4x16xf32>
    %38 = vector.shape_cast %37 : vector<1x4x16xf32> to vector<4x16xf32>
    %cst_34 = arith.constant dense<0.000000e+00> : vector<128x16xf32>
    %39 = tpu.matmul %36, %38, %cst_34 {dimension_numbers = #tpu.dot_dimension_numbers<[1], [0], [0], [1], [0, 0, 1, 1], [], []>} : vector<128x4xf32>, vector<4x16xf32>, vector<128x16xf32> -> vector<128x16xf32>
    %c0_35 = arith.constant 0 : index
    %c0_36 = arith.constant 0 : index
    %40 = vector.load %arg8[%c0_35, %c0_36] : memref<128x16xf32, #tpu.memory_space<vmem>>, vector<128x16xf32>
    %41 = arith.addf %40, %39 : vector<128x16xf32>
    %c0_37 = arith.constant 0 : index
    %c0_38 = arith.constant 0 : index
    %42 = vector.load %arg8[%c0_37, %c0_38] : memref<128x16xf32, #tpu.memory_space<vmem>>, vector<128x16xf32>
    tpu.vector_store %arg8[%c0_37, %c0_38], %41 {strides = array<i32>} : memref<128x16xf32, #tpu.memory_space<vmem>>, vector<128x16xf32>,
    %c1_i32_39 = arith.constant 1 : i32
    %43 = arith.addi %3, %c1_i32_39 : i32
    %44 = arith.index_cast %43 : i32 to index
    %c1_40 = arith.constant 1 : index
    %c0_41 = arith.constant 0 : index
    %45 = vector.load %arg7[%44, %c1_40, %c0_41] : memref<18x18x4xf32, #tpu.memory_space<vmem>>, vector<8x16x4xf32>
    %46 = vector.shape_cast %45 : vector<8x16x4xf32> to vector<128x4xf32>
    %c4 = arith.constant 4 : index
    %c0_42 = arith.constant 0 : index
    %c0_43 = arith.constant 0 : index
    %47 = vector.load %arg3[%c4, %c0_42, %c0_43] : memref<9x4x16xf32, #tpu.memory_space<vmem>>, vector<1x4x16xf32>
    %48 = vector.shape_cast %47 : vector<1x4x16xf32> to vector<4x16xf32>
    %cst_44 = arith.constant dense<0.000000e+00> : vector<128x16xf32>
    %49 = tpu.matmul %46, %48, %cst_44 {dimension_numbers = #tpu.dot_dimension_numbers<[1], [0], [0], [1], [0, 0, 1, 1], [], []>} : vector<128x4xf32>, vector<4x16xf32>, vector<128x16xf32> -> vector<128x16xf32>
    %c0_45 = arith.constant 0 : index
    %c0_46 = arith.constant 0 : index
    %50 = vector.load %arg8[%c0_45, %c0_46] : memref<128x16xf32, #tpu.memory_space<vmem>>, vector<128x16xf32>
    %51 = arith.addf %50, %49 : vector<128x16xf32>
    %c0_47 = arith.constant 0 : index
    %c0_48 = arith.constant 0 : index
    %52 = vector.load %arg8[%c0_47, %c0_48] : memref<128x16xf32, #tpu.memory_space<vmem>>, vector<128x16xf32>
    tpu.vector_store %arg8[%c0_47, %c0_48], %51 {strides = array<i32>} : memref<128x16xf32, #tpu.memory_space<vmem>>, vector<128x16xf32>,
    %c1_i32_49 = arith.constant 1 : i32
    %53 = arith.addi %3, %c1_i32_49 : i32
    %54 = arith.index_cast %53 : i32 to index
    %c2_50 = arith.constant 2 : index
    %c0_51 = arith.constant 0 : index
    %55 = vector.load %arg7[%54, %c2_50, %c0_51] : memref<18x18x4xf32, #tpu.memory_space<vmem>>, vector<8x16x4xf32>
    %56 = vector.shape_cast %55 : vector<8x16x4xf32> to vector<128x4xf32>
    %c5 = arith.constant 5 : index
    %c0_52 = arith.constant 0 : index
    %c0_53 = arith.constant 0 : index
    %57 = vector.load %arg3[%c5, %c0_52, %c0_53] : memref<9x4x16xf32, #tpu.memory_space<vmem>>, vector<1x4x16xf32>
    %58 = vector.shape_cast %57 : vector<1x4x16xf32> to vector<4x16xf32>
    %cst_54 = arith.constant dense<0.000000e+00> : vector<128x16xf32>
    %59 = tpu.matmul %56, %58, %cst_54 {dimension_numbers = #tpu.dot_dimension_numbers<[1], [0], [0], [1], [0, 0, 1, 1], [], []>} : vector<128x4xf32>, vector<4x16xf32>, vector<128x16xf32> -> vector<128x16xf32>
    %c0_55 = arith.constant 0 : index
    %c0_56 = arith.constant 0 : index
    %60 = vector.load %arg8[%c0_55, %c0_56] : memref<128x16xf32, #tpu.memory_space<vmem>>, vector<128x16xf32>
    %61 = arith.addf %60, %59 : vector<128x16xf32>
    %c0_57 = arith.constant 0 : index
    %c0_58 = arith.constant 0 : index
    %62 = vector.load %arg8[%c0_57, %c0_58] : memref<128x16xf32, #tpu.memory_space<vmem>>, vector<128x16xf32>
    tpu.vector_store %arg8[%c0_57, %c0_58], %61 {strides = array<i32>} : memref<128x16xf32, #tpu.memory_space<vmem>>, vector<128x16xf32>,
    %c2_i32 = arith.constant 2 : i32
    %63 = arith.addi %3, %c2_i32 : i32
    %64 = arith.index_cast %63 : i32 to index
    %c0_59 = arith.constant 0 : index
    %c0_60 = arith.constant 0 : index
    %65 = vector.load %arg7[%64, %c0_59, %c0_60] : memref<18x18x4xf32, #tpu.memory_space<vmem>>, vector<8x16x4xf32>
    %66 = vector.shape_cast %65 : vector<8x16x4xf32> to vector<128x4xf32>
    %c6 = arith.constant 6 : index
    %c0_61 = arith.constant 0 : index
    %c0_62 = arith.constant 0 : index
    %67 = vector.load %arg3[%c6, %c0_61, %c0_62] : memref<9x4x16xf32, #tpu.memory_space<vmem>>, vector<1x4x16xf32>
    %68 = vector.shape_cast %67 : vector<1x4x16xf32> to vector<4x16xf32>
    %cst_63 = arith.constant dense<0.000000e+00> : vector<128x16xf32>
    %69 = tpu.matmul %66, %68, %cst_63 {dimension_numbers = #tpu.dot_dimension_numbers<[1], [0], [0], [1], [0, 0, 1, 1], [], []>} : vector<128x4xf32>, vector<4x16xf32>, vector<128x16xf32> -> vector<128x16xf32>
    %c0_64 = arith.constant 0 : index
    %c0_65 = arith.constant 0 : index
    %70 = vector.load %arg8[%c0_64, %c0_65] : memref<128x16xf32, #tpu.memory_space<vmem>>, vector<128x16xf32>
    %71 = arith.addf %70, %69 : vector<128x16xf32>
    %c0_66 = arith.constant 0 : index
    %c0_67 = arith.constant 0 : index
    %72 = vector.load %arg8[%c0_66, %c0_67] : memref<128x16xf32, #tpu.memory_space<vmem>>, vector<128x16xf32>
    tpu.vector_store %arg8[%c0_66, %c0_67], %71 {strides = array<i32>} : memref<128x16xf32, #tpu.memory_space<vmem>>, vector<128x16xf32>,
    %c2_i32_68 = arith.constant 2 : i32
    %73 = arith.addi %3, %c2_i32_68 : i32
    %74 = arith.index_cast %73 : i32 to index
    %c1_69 = arith.constant 1 : index
    %c0_70 = arith.constant 0 : index
    %75 = vector.load %arg7[%74, %c1_69, %c0_70] : memref<18x18x4xf32, #tpu.memory_space<vmem>>, vector<8x16x4xf32>
    %76 = vector.shape_cast %75 : vector<8x16x4xf32> to vector<128x4xf32>
    %c7 = arith.constant 7 : index
    %c0_71 = arith.constant 0 : index
    %c0_72 = arith.constant 0 : index
    %77 = vector.load %arg3[%c7, %c0_71, %c0_72] : memref<9x4x16xf32, #tpu.memory_space<vmem>>, vector<1x4x16xf32>
    %78 = vector.shape_cast %77 : vector<1x4x16xf32> to vector<4x16xf32>
    %cst_73 = arith.constant dense<0.000000e+00> : vector<128x16xf32>
    %79 = tpu.matmul %76, %78, %cst_73 {dimension_numbers = #tpu.dot_dimension_numbers<[1], [0], [0], [1], [0, 0, 1, 1], [], []>} : vector<128x4xf32>, vector<4x16xf32>, vector<128x16xf32> -> vector<128x16xf32>
    %c0_74 = arith.constant 0 : index
    %c0_75 = arith.constant 0 : index
    %80 = vector.load %arg8[%c0_74, %c0_75] : memref<128x16xf32, #tpu.memory_space<vmem>>, vector<128x16xf32>
    %81 = arith.addf %80, %79 : vector<128x16xf32>
    %c0_76 = arith.constant 0 : index
    %c0_77 = arith.constant 0 : index
    %82 = vector.load %arg8[%c0_76, %c0_77] : memref<128x16xf32, #tpu.memory_space<vmem>>, vector<128x16xf32>
    tpu.vector_store %arg8[%c0_76, %c0_77], %81 {strides = array<i32>} : memref<128x16xf32, #tpu.memory_space<vmem>>, vector<128x16xf32>,
    %c2_i32_78 = arith.constant 2 : i32
    %83 = arith.addi %3, %c2_i32_78 : i32
    %84 = arith.index_cast %83 : i32 to index
    %c2_79 = arith.constant 2 : index
    %c0_80 = arith.constant 0 : index
    %85 = vector.load %arg7[%84, %c2_79, %c0_80] : memref<18x18x4xf32, #tpu.memory_space<vmem>>, vector<8x16x4xf32>
    %86 = vector.shape_cast %85 : vector<8x16x4xf32> to vector<128x4xf32>
    %c8 = arith.constant 8 : index
    %c0_81 = arith.constant 0 : index
    %c0_82 = arith.constant 0 : index
    %87 = vector.load %arg3[%c8, %c0_81, %c0_82] : memref<9x4x16xf32, #tpu.memory_space<vmem>>, vector<1x4x16xf32>
    %88 = vector.shape_cast %87 : vector<1x4x16xf32> to vector<4x16xf32>
    %cst_83 = arith.constant dense<0.000000e+00> : vector<128x16xf32>
    %89 = tpu.matmul %86, %88, %cst_83 {dimension_numbers = #tpu.dot_dimension_numbers<[1], [0], [0], [1], [0, 0, 1, 1], [], []>} : vector<128x4xf32>, vector<4x16xf32>, vector<128x16xf32> -> vector<128x16xf32>
    %c0_84 = arith.constant 0 : index
    %c0_85 = arith.constant 0 : index
    %90 = vector.load %arg8[%c0_84, %c0_85] : memref<128x16xf32, #tpu.memory_space<vmem>>, vector<128x16xf32>
    %91 = arith.addf %90, %89 : vector<128x16xf32>
    %c0_86 = arith.constant 0 : index
    %c0_87 = arith.constant 0 : index
    %92 = vector.load %arg8[%c0_86, %c0_87] : memref<128x16xf32, #tpu.memory_space<vmem>>, vector<128x16xf32>
    tpu.vector_store %arg8[%c0_86, %c0_87], %91 {strides = array<i32>} : memref<128x16xf32, #tpu.memory_space<vmem>>, vector<128x16xf32>,
    %c0_88 = arith.constant 0 : index
    %c0_89 = arith.constant 0 : index
    %93 = vector.load %arg8[%c0_88, %c0_89] : memref<128x16xf32, #tpu.memory_space<vmem>>, vector<128x16xf32>
    %94 = vector.broadcast %4 : vector<1x16xf32> to vector<128x16xf32>
    %95 = arith.addf %93, %94 : vector<128x16xf32>
    %cst_90 = arith.constant 0.000000e+00 : f32
    %96 = vector.broadcast %cst_90 : f32 to vector<128x16xf32>
    %97 = arith.maximumf %95, %96 : vector<128x16xf32>
    %98 = vector.shape_cast %97 : vector<128x16xf32> to vector<8x16x16xf32>
    %c0_91 = arith.constant 0 : index
    %c0_92 = arith.constant 0 : index
    %c0_93 = arith.constant 0 : index
    %c0_94 = arith.constant 0 : index
    %c0_95 = arith.constant 0 : index
    %99 = vector.load %arg6[%c0_91, %c0_92, %c0_93, %c0_94, %c0_95] : memref<1x8x2x16x16xf32, #tpu.memory_space<vmem>>, vector<1x8x1x16x16xf32>
    %100 = vector.shape_cast %99 : vector<1x8x1x16x16xf32> to vector<8x16x16xf32>
    %101 = vector.shape_cast %98 : vector<8x16x16xf32> to vector<1x8x1x16x16xf32>
    tpu.vector_store %arg6[%c0_91, %c0_92, %c0_93, %c0_94, %c0_95], %101 {strides = array<i32>} : memref<1x8x2x16x16xf32, #tpu.memory_space<vmem>>, vector<1x8x1x16x16xf32>,
    %c1_i32_96 = arith.constant 1 : i32
    %102 = arith.addi %3, %c1_i32_96 : i32
    %103 = arith.index_cast %102 : i32 to index
    %c0_97 = arith.constant 0 : index
    %c0_98 = arith.constant 0 : index
    %104 = vector.load %arg7[%103, %c0_97, %c0_98] : memref<18x18x4xf32, #tpu.memory_space<vmem>>, vector<8x16x4xf32>
    %105 = vector.shape_cast %104 : vector<8x16x4xf32> to vector<128x4xf32>
    %c0_99 = arith.constant 0 : index
    %c0_100 = arith.constant 0 : index
    %c0_101 = arith.constant 0 : index
    %106 = vector.load %arg4[%c0_99, %c0_100, %c0_101] : memref<6x4x16xf32, #tpu.memory_space<vmem>>, vector<1x4x16xf32>
    %107 = vector.shape_cast %106 : vector<1x4x16xf32> to vector<4x16xf32>
    %cst_102 = arith.constant dense<0.000000e+00> : vector<128x16xf32>
    %108 = tpu.matmul %105, %107, %cst_102 {dimension_numbers = #tpu.dot_dimension_numbers<[1], [0], [0], [1], [0, 0, 1, 1], [], []>} : vector<128x4xf32>, vector<4x16xf32>, vector<128x16xf32> -> vector<128x16xf32>
    %c0_103 = arith.constant 0 : index
    %c0_104 = arith.constant 0 : index
    %109 = vector.load %arg8[%c0_103, %c0_104] : memref<128x16xf32, #tpu.memory_space<vmem>>, vector<128x16xf32>
    tpu.vector_store %arg8[%c0_103, %c0_104], %108 {strides = array<i32>} : memref<128x16xf32, #tpu.memory_space<vmem>>, vector<128x16xf32>,
    %c1_i32_105 = arith.constant 1 : i32
    %110 = arith.addi %3, %c1_i32_105 : i32
    %111 = arith.index_cast %110 : i32 to index
    %c1_106 = arith.constant 1 : index
    %c0_107 = arith.constant 0 : index
    %112 = vector.load %arg7[%111, %c1_106, %c0_107] : memref<18x18x4xf32, #tpu.memory_space<vmem>>, vector<8x16x4xf32>
    %113 = vector.shape_cast %112 : vector<8x16x4xf32> to vector<128x4xf32>
    %c1_108 = arith.constant 1 : index
    %c0_109 = arith.constant 0 : index
    %c0_110 = arith.constant 0 : index
    %114 = vector.load %arg4[%c1_108, %c0_109, %c0_110] : memref<6x4x16xf32, #tpu.memory_space<vmem>>, vector<1x4x16xf32>
    %115 = vector.shape_cast %114 : vector<1x4x16xf32> to vector<4x16xf32>
    %cst_111 = arith.constant dense<0.000000e+00> : vector<128x16xf32>
    %116 = tpu.matmul %113, %115, %cst_111 {dimension_numbers = #tpu.dot_dimension_numbers<[1], [0], [0], [1], [0, 0, 1, 1], [], []>} : vector<128x4xf32>, vector<4x16xf32>, vector<128x16xf32> -> vector<128x16xf32>
    %c0_112 = arith.constant 0 : index
    %c0_113 = arith.constant 0 : index
    %117 = vector.load %arg8[%c0_112, %c0_113] : memref<128x16xf32, #tpu.memory_space<vmem>>, vector<128x16xf32>
    %118 = arith.addf %117, %116 : vector<128x16xf32>
    %c0_114 = arith.constant 0 : index
    %c0_115 = arith.constant 0 : index
    %119 = vector.load %arg8[%c0_114, %c0_115] : memref<128x16xf32, #tpu.memory_space<vmem>>, vector<128x16xf32>
    tpu.vector_store %arg8[%c0_114, %c0_115], %118 {strides = array<i32>} : memref<128x16xf32, #tpu.memory_space<vmem>>, vector<128x16xf32>,
    %c1_i32_116 = arith.constant 1 : i32
    %120 = arith.addi %3, %c1_i32_116 : i32
    %121 = arith.index_cast %120 : i32 to index
    %c2_117 = arith.constant 2 : index
    %c0_118 = arith.constant 0 : index
    %122 = vector.load %arg7[%121, %c2_117, %c0_118] : memref<18x18x4xf32, #tpu.memory_space<vmem>>, vector<8x16x4xf32>
    %123 = vector.shape_cast %122 : vector<8x16x4xf32> to vector<128x4xf32>
    %c2_119 = arith.constant 2 : index
    %c0_120 = arith.constant 0 : index
    %c0_121 = arith.constant 0 : index
    %124 = vector.load %arg4[%c2_119, %c0_120, %c0_121] : memref<6x4x16xf32, #tpu.memory_space<vmem>>, vector<1x4x16xf32>
    %125 = vector.shape_cast %124 : vector<1x4x16xf32> to vector<4x16xf32>
    %cst_122 = arith.constant dense<0.000000e+00> : vector<128x16xf32>
    %126 = tpu.matmul %123, %125, %cst_122 {dimension_numbers = #tpu.dot_dimension_numbers<[1], [0], [0], [1], [0, 0, 1, 1], [], []>} : vector<128x4xf32>, vector<4x16xf32>, vector<128x16xf32> -> vector<128x16xf32>
    %c0_123 = arith.constant 0 : index
    %c0_124 = arith.constant 0 : index
    %127 = vector.load %arg8[%c0_123, %c0_124] : memref<128x16xf32, #tpu.memory_space<vmem>>, vector<128x16xf32>
    %128 = arith.addf %127, %126 : vector<128x16xf32>
    %c0_125 = arith.constant 0 : index
    %c0_126 = arith.constant 0 : index
    %129 = vector.load %arg8[%c0_125, %c0_126] : memref<128x16xf32, #tpu.memory_space<vmem>>, vector<128x16xf32>
    tpu.vector_store %arg8[%c0_125, %c0_126], %128 {strides = array<i32>} : memref<128x16xf32, #tpu.memory_space<vmem>>, vector<128x16xf32>,
    %c2_i32_127 = arith.constant 2 : i32
    %130 = arith.addi %3, %c2_i32_127 : i32
    %131 = arith.index_cast %130 : i32 to index
    %c0_128 = arith.constant 0 : index
    %c0_129 = arith.constant 0 : index
    %132 = vector.load %arg7[%131, %c0_128, %c0_129] : memref<18x18x4xf32, #tpu.memory_space<vmem>>, vector<8x16x4xf32>
    %133 = vector.shape_cast %132 : vector<8x16x4xf32> to vector<128x4xf32>
    %c3_130 = arith.constant 3 : index
    %c0_131 = arith.constant 0 : index
    %c0_132 = arith.constant 0 : index
    %134 = vector.load %arg4[%c3_130, %c0_131, %c0_132] : memref<6x4x16xf32, #tpu.memory_space<vmem>>, vector<1x4x16xf32>
    %135 = vector.shape_cast %134 : vector<1x4x16xf32> to vector<4x16xf32>
    %cst_133 = arith.constant dense<0.000000e+00> : vector<128x16xf32>
    %136 = tpu.matmul %133, %135, %cst_133 {dimension_numbers = #tpu.dot_dimension_numbers<[1], [0], [0], [1], [0, 0, 1, 1], [], []>} : vector<128x4xf32>, vector<4x16xf32>, vector<128x16xf32> -> vector<128x16xf32>
    %c0_134 = arith.constant 0 : index
    %c0_135 = arith.constant 0 : index
    %137 = vector.load %arg8[%c0_134, %c0_135] : memref<128x16xf32, #tpu.memory_space<vmem>>, vector<128x16xf32>
    %138 = arith.addf %137, %136 : vector<128x16xf32>
    %c0_136 = arith.constant 0 : index
    %c0_137 = arith.constant 0 : index
    %139 = vector.load %arg8[%c0_136, %c0_137] : memref<128x16xf32, #tpu.memory_space<vmem>>, vector<128x16xf32>
    tpu.vector_store %arg8[%c0_136, %c0_137], %138 {strides = array<i32>} : memref<128x16xf32, #tpu.memory_space<vmem>>, vector<128x16xf32>,
    %c2_i32_138 = arith.constant 2 : i32
    %140 = arith.addi %3, %c2_i32_138 : i32
    %141 = arith.index_cast %140 : i32 to index
    %c1_139 = arith.constant 1 : index
    %c0_140 = arith.constant 0 : index
    %142 = vector.load %arg7[%141, %c1_139, %c0_140] : memref<18x18x4xf32, #tpu.memory_space<vmem>>, vector<8x16x4xf32>
    %143 = vector.shape_cast %142 : vector<8x16x4xf32> to vector<128x4xf32>
    %c4_141 = arith.constant 4 : index
    %c0_142 = arith.constant 0 : index
    %c0_143 = arith.constant 0 : index
    %144 = vector.load %arg4[%c4_141, %c0_142, %c0_143] : memref<6x4x16xf32, #tpu.memory_space<vmem>>, vector<1x4x16xf32>
    %145 = vector.shape_cast %144 : vector<1x4x16xf32> to vector<4x16xf32>
    %cst_144 = arith.constant dense<0.000000e+00> : vector<128x16xf32>
    %146 = tpu.matmul %143, %145, %cst_144 {dimension_numbers = #tpu.dot_dimension_numbers<[1], [0], [0], [1], [0, 0, 1, 1], [], []>} : vector<128x4xf32>, vector<4x16xf32>, vector<128x16xf32> -> vector<128x16xf32>
    %c0_145 = arith.constant 0 : index
    %c0_146 = arith.constant 0 : index
    %147 = vector.load %arg8[%c0_145, %c0_146] : memref<128x16xf32, #tpu.memory_space<vmem>>, vector<128x16xf32>
    %148 = arith.addf %147, %146 : vector<128x16xf32>
    %c0_147 = arith.constant 0 : index
    %c0_148 = arith.constant 0 : index
    %149 = vector.load %arg8[%c0_147, %c0_148] : memref<128x16xf32, #tpu.memory_space<vmem>>, vector<128x16xf32>
    tpu.vector_store %arg8[%c0_147, %c0_148], %148 {strides = array<i32>} : memref<128x16xf32, #tpu.memory_space<vmem>>, vector<128x16xf32>,
    %c2_i32_149 = arith.constant 2 : i32
    %150 = arith.addi %3, %c2_i32_149 : i32
    %151 = arith.index_cast %150 : i32 to index
    %c2_150 = arith.constant 2 : index
    %c0_151 = arith.constant 0 : index
    %152 = vector.load %arg7[%151, %c2_150, %c0_151] : memref<18x18x4xf32, #tpu.memory_space<vmem>>, vector<8x16x4xf32>
    %153 = vector.shape_cast %152 : vector<8x16x4xf32> to vector<128x4xf32>
    %c5_152 = arith.constant 5 : index
    %c0_153 = arith.constant 0 : index
    %c0_154 = arith.constant 0 : index
    %154 = vector.load %arg4[%c5_152, %c0_153, %c0_154] : memref<6x4x16xf32, #tpu.memory_space<vmem>>, vector<1x4x16xf32>
    %155 = vector.shape_cast %154 : vector<1x4x16xf32> to vector<4x16xf32>
    %cst_155 = arith.constant dense<0.000000e+00> : vector<128x16xf32>
    %156 = tpu.matmul %153, %155, %cst_155 {dimension_numbers = #tpu.dot_dimension_numbers<[1], [0], [0], [1], [0, 0, 1, 1], [], []>} : vector<128x4xf32>, vector<4x16xf32>, vector<128x16xf32> -> vector<128x16xf32>
    %c0_156 = arith.constant 0 : index
    %c0_157 = arith.constant 0 : index
    %157 = vector.load %arg8[%c0_156, %c0_157] : memref<128x16xf32, #tpu.memory_space<vmem>>, vector<128x16xf32>
    %158 = arith.addf %157, %156 : vector<128x16xf32>
    %c0_158 = arith.constant 0 : index
    %c0_159 = arith.constant 0 : index
    %159 = vector.load %arg8[%c0_158, %c0_159] : memref<128x16xf32, #tpu.memory_space<vmem>>, vector<128x16xf32>
    tpu.vector_store %arg8[%c0_158, %c0_159], %158 {strides = array<i32>} : memref<128x16xf32, #tpu.memory_space<vmem>>, vector<128x16xf32>,
    %c0_160 = arith.constant 0 : index
    %c0_161 = arith.constant 0 : index
    %160 = vector.load %arg8[%c0_160, %c0_161] : memref<128x16xf32, #tpu.memory_space<vmem>>, vector<128x16xf32>
    %161 = vector.broadcast %4 : vector<1x16xf32> to vector<128x16xf32>
    %162 = arith.addf %160, %161 : vector<128x16xf32>
    %cst_162 = arith.constant 0.000000e+00 : f32
    %163 = vector.broadcast %cst_162 : f32 to vector<128x16xf32>
    %164 = arith.maximumf %162, %163 : vector<128x16xf32>
    %165 = vector.shape_cast %164 : vector<128x16xf32> to vector<8x16x16xf32>
    %c0_163 = arith.constant 0 : index
    %c0_164 = arith.constant 0 : index
    %c1_165 = arith.constant 1 : index
    %c0_166 = arith.constant 0 : index
    %c0_167 = arith.constant 0 : index
    %166 = vector.load %arg6[%c0_163, %c0_164, %c1_165, %c0_166, %c0_167] : memref<1x8x2x16x16xf32, #tpu.memory_space<vmem>>, vector<1x8x1x16x16xf32>
    %167 = vector.shape_cast %166 : vector<1x8x1x16x16xf32> to vector<8x16x16xf32>
    %168 = vector.shape_cast %165 : vector<8x16x16xf32> to vector<1x8x1x16x16xf32>
    tpu.vector_store %arg6[%c0_163, %c0_164, %c1_165, %c0_166, %c0_167], %168 {strides = array<i32>} : memref<1x8x2x16x16xf32, #tpu.memory_space<vmem>>, vector<1x8x1x16x16xf32>,
    return
  }
  func.func @transform_0(%arg0: i32, %arg1: i32) -> (i32, i32, i32, i32) {
    %c0_i32 = arith.constant 0 : i32
    %c0_i32_0 = arith.constant 0 : i32
    %c0_i32_1 = arith.constant 0 : i32
    %c0_i32_2 = arith.constant 0 : i32
    return %arg0, %c0_i32, %c0_i32_0, %c0_i32_1 : i32, i32, i32, i32
  }
  func.func @transform_1(%arg0: i32, %arg1: i32) -> (i32, i32, i32) {
    %c0_i32 = arith.constant 0 : i32
    %c0_i32_0 = arith.constant 0 : i32
    %c0_i32_1 = arith.constant 0 : i32
    %c0_i32_2 = arith.constant 0 : i32
    return %c0_i32, %c0_i32_0, %c0_i32_1 : i32, i32, i32
  }
  func.func @transform_2(%arg0: i32, %arg1: i32) -> (i32, i32, i32) {
    %c0_i32 = arith.constant 0 : i32
    %c0_i32_0 = arith.constant 0 : i32
    %c0_i32_1 = arith.constant 0 : i32
    %c0_i32_2 = arith.constant 0 : i32
    return %c0_i32, %c0_i32_0, %c0_i32_1 : i32, i32, i32
  }
  func.func @transform_3(%arg0: i32, %arg1: i32) -> (i32, i32) {
    %c0_i32 = arith.constant 0 : i32
    %c0_i32_0 = arith.constant 0 : i32
    %c0_i32_1 = arith.constant 0 : i32
    return %c0_i32, %c0_i32_0 : i32, i32
  }
  func.func @transform_4(%arg0: i32, %arg1: i32) -> (i32, i32, i32, i32, i32) {
    %c0_i32 = arith.constant 0 : i32
    %c0_i32_0 = arith.constant 0 : i32
    %c0_i32_1 = arith.constant 0 : i32
    %c0_i32_2 = arith.constant 0 : i32
    return %arg0, %arg1, %c0_i32, %c0_i32_0, %c0_i32_1 : i32, i32, i32, i32, i32
  }
}

</mosaic_0001>

<bundles_post_ra>
// kernel: tpu_custom_call.1
= control target key start
LH: loop header
LB: loop body
LE: loop exit
PB: predicated region body
PF: predicated region fallthrough
CT: control target
= control target key end

     0   :  { %9 = vsyncpa [#allocation5], 0  ;;  %s7108_s0 = inlined_call_operand.vmem [shape: f32[2,16,16,4], index: 0, kind: input, shape index: {}]   ;;  %s7109_s1 = inlined_call_operand.vmem [shape: f32[9,4,16], index: 1, kind: input, shape index: {}]   ;;  %s7110_s2 = inlined_call_operand.vmem [shape: f32[6,4,16], index: 2, kind: input, shape index: {}]   ;;  %s7111_s3 = inlined_call_operand.vmem [shape: f32[1,16], index: 3, kind: input, shape index: {}]   ;;  %s7112_s4 = inlined_call_operand.hbm [shape: f32[2,16,2,16,16], index: 4, kind: output, shape index: {}]  }
   0x1   :  { %11 = vsyncpa [#allocation5 + $0x1], 0  ;;  %s5789_s15 = smov 0   ;;  %s5791_s16 = smov 0  }
   0x2   :  { %s5793_s17 = smov 0   ;;  %s5795_s18 = smov 0  }
   0x3   :  { %s5797_s19 = smov 0   ;;  %s5799_s20 = smov 0  }
   0x4   :  { %s5801_s21 = smov 0   ;;  %s5803_s22 = smov 0  }
   0x5 LB: > { %s4441_s23 = sadd.s32 4294967295, %s5758_s22   ;;  %s4442_s24 = sadd.s32 4294967294, %s5758_s22   ;;  %s5758_s22 = sphi %s5803_s22, %s17_s22   ;;  %s5754_s21 = sphi %s5801_s21, %s7121_s21   ;;  %s5750_s20 = sphi %s5799_s20, %s7120_s20   ;;  %s5746_s19 = sphi %s5797_s19, %s7119_s19   ;;  %s5742_s18 = sphi %s5795_s18, %s7118_s18   ;;  %s5738_s17 = sphi %s5793_s17, %s7117_s17   ;;  %s5734_s16 = sphi %s5791_s16, %s7116_s16   ;;  %s5730_s15 = sphi %s5789_s15, %s7115_s15  }
   0x6   : > { %s26_s25 = sadd.s32 1, %s5750_s20  ;;  %s29_s26 = sadd.s32 1, %s5754_s21 }
   0x7   : > { %p27_p0 = scmp.ge.s32.totalorder %s26_s25, 2  ;;  %p137_p1 = scmp.ne.s32.totalorder %s5738_s17, %s5734_s16 }
   0x8   : > { %p138_p2 = scmp.eq.s32.totalorder %s4441_s23, 3  ;;  %p143_p5 = scmp.ne.s32.totalorder %s5734_s16, %s5730_s15 }
   0x9   : > { %s7123_s25 = smov (%p27_p0, %s26_s25), 0  ;;  %s7125_s26 = smov (!%p27_p0, %s29_s26), %s5754_s21 }
   0xa   : > { %s123_s27 = ssub.s32 %s5750_s20, %s7123_s25  ;;  %p5840_p3 = por %p138_p2, %p137_p1 }
   0xb   : > { %p31_p4 = scmp.ge.s32.totalorder %s7125_s26, 2  ;;  %p144_p6 = scmp.eq.s32.totalorder %s4442_s24, 3 }
   0xc   : > { %p4445_p7 = scmp.ge.s32.totalorder %s5758_s22, 1  ;;  %p179_p9 = scmp.lt.s32.totalorder %s5758_s22, 5 }
   0xd   : > { %s7127_s26 = smov (%p31_p4, %s7125_s26), 0  ;;  %p5849_p8 = por %p144_p6, %p143_p5 }
   0xe   : > { %s122_s30 = ssub.s32 %s5754_s21, %s7127_s26  ;;  %s127_s5 = sadd.s32 1, %s5738_s17 }
   0xf   : > { %s124_s6 = sor.u32 %s123_s27, %s122_s30  ;;  %p180_p10 = pnand %p4445_p7, %p179_p9 }
  0x10   : > { %p125_p11 = scmp.eq.s32.totalorder %s124_s6, 0  ;;  %s202_s8 = sand.u32 (!%p180_p10), 1, %s5734_s16  }
  0x11   : > { %183 = sbr.rel (%p180_p10) target bundleno = 559 (0x22f), region = 36  ;;  %p205_p12 = scmp.lt.s32.totalorder (!%p180_p10), %s5746_s19, 1 }
  0x12   : > { %s5858_s7 = scalar_select %p125_p11, %s5738_s17, %s127_s5  }
  0x13   : > { %s4446_s9 = sshll.u32 (!%p180_p10), %s202_s8, 8  ;;  %p4449_p13 = scmp.ne.s32.totalorder (!%p180_p10), %s5742_s18, 0 }
  0x14   : > { %s5870_s23 = scalar_lea.vmem (!%p180_p10), [#allocation4], %s4446_s9 }
  0x18   : > { %s206_s10 = scalar_select %p205_p12, %s5746_s19, 1 }
  0x19   : > { %214 = sbr.rel (%p4449_p13) target bundleno = 63 (0x3f), region = 40  ;;  %vm215_vm0 = vcmask (!%p4449_p13), 31744   ;;  %vm218_vm1 = vcmask (!%p4449_p13), 25600   ;;  %vm224_vm2 = vcmask (!%p4449_p13), 24576   ;;  %v5760_v2 = vmov (!%p4449_p13), 0.0  }
  0x1a   : > { %s4940_s11 = sshll.u32 %s206_s10, 8  ;;  %216 = vst.msk [vmem:[#allocation2] sm:$0xff] (!%p4449_p13), %vm215_vm0, %v5760_v2  ;;  %217 = vst.msk [vmem:[#allocation2 + $0x8] sm:$0xff] (!%p4449_p13), %vm215_vm0, %v5760_v2 }
  0x1b   : > { %s5868_s14 = scalar_lea.vmem %s7108_s0, %s4940_s11  ;;  %221 = vst.msk [vmem:[#allocation2 + $0x198] sm:$0xff] (!%p4449_p13), %vm215_vm0, %v5760_v2  ;;  %222 = vst.msk [vmem:[#allocation2 + $0x1a0] sm:$0xff] (!%p4449_p13), %vm215_vm0, %v5760_v2 }
  0x1c   : > { %v261_v0 = vld [vmem:[%s5868_s14] sm:$0xff] (!%p4449_p13)  ;;  %v262_v1 = vld [vmem:[%s5868_s14 + $0x8] sm:$0xff] (!%p4449_p13)  ;;  %219 = vst.msk [vmem:[#allocation2 + $0x10] sm:$0x3] (!%p4449_p13), %vm218_vm1, %v5760_v2  ;;  %223 = vst.msk [vmem:[#allocation2 + $0x1a8] sm:$0x3] (!%p4449_p13), %vm218_vm1, %v5760_v2 }
  0x1d   : > { %226 = vst.msk [vmem:[#allocation2 + $0x18] sm:$0x1] (!%p4449_p13), %vm224_vm2, %v5760_v2  ;;  %227 = vst.msk [vmem:[#allocation2 + $0x30] sm:$0x1] (!%p4449_p13), %vm224_vm2, %v5760_v2  ;;  %v263_v3 = vld [vmem:[%s5868_s14 + $0x10] sm:$0xff] (!%p4449_p13)  ;;  %v264_v4 = vld [vmem:[%s5868_s14 + $0x18] sm:$0xff] (!%p4449_p13) }
  0x1e   : > { %228 = vst.msk [vmem:[#allocation2 + $0x48] sm:$0x1] (!%p4449_p13), %vm224_vm2, %v5760_v2  ;;  %229 = vst.msk [vmem:[#allocation2 + $0x60] sm:$0x1] (!%p4449_p13), %vm224_vm2, %v5760_v2  ;;  %v265_v5 = vld [vmem:[%s5868_s14 + $0x20] sm:$0xff] (!%p4449_p13)  ;;  %v266_v6 = vld [vmem:[%s5868_s14 + $0x28] sm:$0xff] (!%p4449_p13) }
  0x1f   : > { %230 = vst.msk [vmem:[#allocation2 + $0x78] sm:$0x1] (!%p4449_p13), %vm224_vm2, %v5760_v2  ;;  %231 = vst.msk [vmem:[#allocation2 + $0x90] sm:$0x1] (!%p4449_p13), %vm224_vm2, %v5760_v2  ;;  %v267_v7 = vld [vmem:[%s5868_s14 + $0x30] sm:$0xff] (!%p4449_p13)  ;;  %v268_v8 = vld [vmem:[%s5868_s14 + $0x38] sm:$0xff] (!%p4449_p13) }
  0x20   : > { %232 = vst.msk [vmem:[#allocation2 + $0xa8] sm:$0x1] %vm224_vm2, %v5760_v2  ;;  %233 = vst.msk [vmem:[#allocation2 + $0xc0] sm:$0x1] %vm224_vm2, %v5760_v2  ;;  %v269_v9 = vld [vmem:[%s5868_s14 + $0x40] sm:$0xff]  ;;  %v270_v10 = vld [vmem:[%s5868_s14 + $0x48] sm:$0xff] }
  0x21   : > { %234 = vst.msk [vmem:[#allocation2 + $0xd8] sm:$0x1] %vm224_vm2, %v5760_v2  ;;  %235 = vst.msk [vmem:[#allocation2 + $0xf0] sm:$0x1] %vm224_vm2, %v5760_v2  ;;  %v271_v11 = vld [vmem:[%s5868_s14 + $0x50] sm:$0xff]  ;;  %v272_v12 = vld [vmem:[%s5868_s14 + $0x58] sm:$0xff] }
  0x22   : > { %236 = vst.msk [vmem:[#allocation2 + $0x108] sm:$0x1] %vm224_vm2, %v5760_v2  ;;  %237 = vst.msk [vmem:[#allocation2 + $0x120] sm:$0x1] %vm224_vm2, %v5760_v2  ;;  %v273_v13 = vld [vmem:[%s5868_s14 + $0x60] sm:$0xff]  ;;  %v274_v14 = vld [vmem:[%s5868_s14 + $0x68] sm:$0xff] }
  0x23   : > { %238 = vst.msk [vmem:[#allocation2 + $0x138] sm:$0x1] %vm224_vm2, %v5760_v2  ;;  %239 = vst.msk [vmem:[#allocation2 + $0x150] sm:$0x1] %vm224_vm2, %v5760_v2  ;;  %v275_v15 = vld [vmem:[%s5868_s14 + $0x70] sm:$0xff]  ;;  %v276_v16 = vld [vmem:[%s5868_s14 + $0x78] sm:$0xff] }
  0x24   : > { %240 = vst.msk [vmem:[#allocation2 + $0x168] sm:$0x1] %vm224_vm2, %v5760_v2  ;;  %241 = vst.msk [vmem:[#allocation2 + $0x180] sm:$0x1] %vm224_vm2, %v5760_v2  ;;  %v277_v17 = vld [vmem:[%s5868_s14 + $0x80] sm:$0xff]  ;;  %v278_v18 = vld [vmem:[%s5868_s14 + $0x88] sm:$0xff] }
  0x25   : > { %244 = vst.msk [vmem:[#allocation2 + $0x29] sm:$0x1] %vm224_vm2, %v5760_v2  ;;  %245 = vst.msk [vmem:[#allocation2 + $0x41] sm:$0x1] %vm224_vm2, %v5760_v2  ;;  %v279_v19 = vld [vmem:[%s5868_s14 + $0x90] sm:$0xff]  ;;  %v280_v20 = vld [vmem:[%s5868_s14 + $0x98] sm:$0xff] }
  0x26   : > { %246 = vst.msk [vmem:[#allocation2 + $0x59] sm:$0x1] %vm224_vm2, %v5760_v2  ;;  %247 = vst.msk [vmem:[#allocation2 + $0x71] sm:$0x1] %vm224_vm2, %v5760_v2  ;;  %v281_v21 = vld [vmem:[%s5868_s14 + $0xa0] sm:$0xff]  ;;  %v282_v22 = vld [vmem:[%s5868_s14 + $0xa8] sm:$0xff] }
  0x27   : > { %248 = vst.msk [vmem:[#allocation2 + $0x89] sm:$0x1] %vm224_vm2, %v5760_v2  ;;  %249 = vst.msk [vmem:[#allocation2 + $0xa1] sm:$0x1] %vm224_vm2, %v5760_v2  ;;  %v283_v23 = vld [vmem:[%s5868_s14 + $0xb0] sm:$0xff]  ;;  %v284_v24 = vld [vmem:[%s5868_s14 + $0xb8] sm:$0xff] }
  0x28   : > { %250 = vst.msk [vmem:[#allocation2 + $0xb9] sm:$0x1] %vm224_vm2, %v5760_v2  ;;  %251 = vst.msk [vmem:[#allocation2 + $0xd1] sm:$0x1] %vm224_vm2, %v5760_v2  ;;  %v285_v25 = vld [vmem:[%s5868_s14 + $0xc0] sm:$0xff]  ;;  %v286_v26 = vld [vmem:[%s5868_s14 + $0xc8] sm:$0xff] }
  0x29   : > { %252 = vst.msk [vmem:[#allocation2 + $0xe9] sm:$0x1] %vm224_vm2, %v5760_v2  ;;  %253 = vst.msk [vmem:[#allocation2 + $0x101] sm:$0x1] %vm224_vm2, %v5760_v2  ;;  %v287_v27 = vld [vmem:[%s5868_s14 + $0xd0] sm:$0xff]  ;;  %v288_v28 = vld [vmem:[%s5868_s14 + $0xd8] sm:$0xff] }
  0x2a   : > { %254 = vst.msk [vmem:[#allocation2 + $0x119] sm:$0x1] %vm224_vm2, %v5760_v2  ;;  %255 = vst.msk [vmem:[#allocation2 + $0x131] sm:$0x1] %vm224_vm2, %v5760_v2  ;;  %v289_v29 = vld [vmem:[%s5868_s14 + $0xe0] sm:$0xff]  ;;  %v290_v30 = vld [vmem:[%s5868_s14 + $0xe8] sm:$0xff] }
  0x2b   : > { %256 = vst.msk [vmem:[#allocation2 + $0x149] sm:$0x1] %vm224_vm2, %v5760_v2  ;;  %257 = vst.msk [vmem:[#allocation2 + $0x161] sm:$0x1] %vm224_vm2, %v5760_v2  ;;  %v291_v31 = vld [vmem:[%s5868_s14 + $0xf0] sm:$0xff]  ;;  %v292_v32 = vld [vmem:[%s5868_s14 + $0xf8] sm:$0xff] }
  0x2c   : > { %258 = vst.msk [vmem:[#allocation2 + $0x179] sm:$0x1] %vm224_vm2, %v5760_v2  ;;  %259 = vst.msk [vmem:[#allocation2 + $0x191] sm:$0x1] %vm224_vm2, %v5760_v2 }
  0x2d   : > { %294 = vst.msk [vmem:[#allocation2 + $0x19] sm:$0xff] %vm215_vm0, %v261_v0  ;;  %295 = vst.msk [vmem:[#allocation2 + $0x21] sm:$0xff] %vm215_vm0, %v262_v1 }
  0x2e   : > { %225 = vst.msk [vmem:[#allocation2] sm:$0x1] %vm224_vm2, %v5760_v2  ;;  %242 = vst.msk [vmem:[#allocation2 + $0x198] sm:$0x1] %vm224_vm2, %v5760_v2 }
  0x2f   : > { %243 = vst.msk [vmem:[#allocation2 + $0x11] sm:$0x1] %vm224_vm2, %v5760_v2  ;;  %260 = vst.msk [vmem:[#allocation2 + $0x1a9] sm:$0x1] %vm224_vm2, %v5760_v2 }
  0x30   : > { %296 = vst.msk [vmem:[#allocation2 + $0x31] sm:$0xff] %vm215_vm0, %v263_v3  ;;  %297 = vst.msk [vmem:[#allocation2 + $0x39] sm:$0xff] %vm215_vm0, %v264_v4 }
  0x31   : > { %298 = vst.msk [vmem:[#allocation2 + $0x49] sm:$0xff] %vm215_vm0, %v265_v5  ;;  %299 = vst.msk [vmem:[#allocation2 + $0x51] sm:$0xff] %vm215_vm0, %v266_v6 }
  0x32   : > { %300 = vst.msk [vmem:[#allocation2 + $0x61] sm:$0xff] %vm215_vm0, %v267_v7  ;;  %301 = vst.msk [vmem:[#allocation2 + $0x69] sm:$0xff] %vm215_vm0, %v268_v8 }
  0x33   : > { %302 = vst.msk [vmem:[#allocation2 + $0x79] sm:$0xff] %vm215_vm0, %v269_v9  ;;  %303 = vst.msk [vmem:[#allocation2 + $0x81] sm:$0xff] %vm215_vm0, %v270_v10 }
  0x34   : > { %304 = vst.msk [vmem:[#allocation2 + $0x91] sm:$0xff] %vm215_vm0, %v271_v11  ;;  %305 = vst.msk [vmem:[#allocation2 + $0x99] sm:$0xff] %vm215_vm0, %v272_v12 }
  0x35   : > { %306 = vst.msk [vmem:[#allocation2 + $0xa9] sm:$0xff] %vm215_vm0, %v273_v13  ;;  %307 = vst.msk [vmem:[#allocation2 + $0xb1] sm:$0xff] %vm215_vm0, %v274_v14 }
  0x36   : > { %308 = vst.msk [vmem:[#allocation2 + $0xc1] sm:$0xff] %vm215_vm0, %v275_v15  ;;  %309 = vst.msk [vmem:[#allocation2 + $0xc9] sm:$0xff] %vm215_vm0, %v276_v16 }
  0x37   : > { %310 = vst.msk [vmem:[#allocation2 + $0xd9] sm:$0xff] %vm215_vm0, %v277_v17  ;;  %311 = vst.msk [vmem:[#allocation2 + $0xe1] sm:$0xff] %vm215_vm0, %v278_v18 }
  0x38   : > { %312 = vst.msk [vmem:[#allocation2 + $0xf1] sm:$0xff] %vm215_vm0, %v279_v19  ;;  %313 = vst.msk [vmem:[#allocation2 + $0xf9] sm:$0xff] %vm215_vm0, %v280_v20 }
  0x39   : > { %314 = vst.msk [vmem:[#allocation2 + $0x109] sm:$0xff] %vm215_vm0, %v281_v21  ;;  %315 = vst.msk [vmem:[#allocation2 + $0x111] sm:$0xff] %vm215_vm0, %v282_v22 }
  0x3a   : > { %316 = vst.msk [vmem:[#allocation2 + $0x121] sm:$0xff] %vm215_vm0, %v283_v23  ;;  %317 = vst.msk [vmem:[#allocation2 + $0x129] sm:$0xff] %vm215_vm0, %v284_v24 }
  0x3b   : > { %318 = vst.msk [vmem:[#allocation2 + $0x139] sm:$0xff] %vm215_vm0, %v285_v25  ;;  %319 = vst.msk [vmem:[#allocation2 + $0x141] sm:$0xff] %vm215_vm0, %v286_v26 }
  0x3c   : > { %320 = vst.msk [vmem:[#allocation2 + $0x151] sm:$0xff] %vm215_vm0, %v287_v27  ;;  %321 = vst.msk [vmem:[#allocation2 + $0x159] sm:$0xff] %vm215_vm0, %v288_v28 }
  0x3d   : > { %322 = vst.msk [vmem:[#allocation2 + $0x169] sm:$0xff] %vm215_vm0, %v289_v29  ;;  %323 = vst.msk [vmem:[#allocation2 + $0x171] sm:$0xff] %vm215_vm0, %v290_v30 }
  0x3e   : > { %324 = vst.msk [vmem:[#allocation2 + $0x181] sm:$0xff] %vm215_vm0, %v291_v31  ;;  %325 = vst.msk [vmem:[#allocation2 + $0x189] sm:$0xff] %vm215_vm0, %v292_v32 }
  0x3f PF: > { %v346_v33 = vld [vmem:[%s7109_s1] sm:$0xf]  ;;  %vm396_vm3 = vcmask 1043456   ;;  %s4451_s30 = smul.u32 192, %s5742_s18  ;;  %vm347_vm4 = vcmask 31744   ;;  %vm545_vm5 = vcmask 130048  }
  0x40   : > { %5587 = vmatprep.subr.msk.mxu1 %vm396_vm3, %v346_v33  ;;  %v4469_v34 = vld [vmem:[%s7109_s1 + $0x4] sm:$0xf]  ;;  %5197 = vmatprep.subr.msk.mxu0 %vm396_vm3, %v346_v33  ;;  %v4487_v35 = vld [vmem:[%s7109_s1 + $0x8] sm:$0xf]  ;;  %v4523_v40 = vld [vmem:[%s7109_s1 + $0xc] sm:$0xf] }
  0x41   : > { %5588 = vmatpush3.msk.msra.mxu1 %vm396_vm3, %v346_v33  ;;  %5198 = vmatpush3.msk.msra.mxu0 %vm396_vm3, %v346_v33  ;;  %s5991_s11 = scalar_lea.vmem [#allocation2], %s4451_s30  ;;  %v4557_v44 = vld [vmem:[%s7109_s1 + $0x10] sm:$0xf]  ;;  %v6091_v59 = vld [vmem:[%s7109_s1 + $0x14] sm:$0xf]  ;;  %s4941_s6 = sshll.u32 %s5742_s18, 5 }
  0x42   : > { %5223 = vmatprep.subr.msk.mxu1 %vm396_vm3, %v4469_v34  ;;  %5249 = vmatprep.subr.msk.mxu0 %vm396_vm3, %v4487_v35  ;;  %v6106_v62 = vld [vmem:[%s7109_s1 + $0x18] sm:$0xf]  ;;  %v4661_v24 = vld [vmem:[%s7109_s1 + $0x1c] sm:$0xf]  ;;  %v4695_v25 = vld [vmem:[%s7109_s1 + $0x20] sm:$0xf] }
  0x43   : > { %v2750_v30 = vld [vmem:[%s7110_s2] sm:$0xf]  ;;  %v4763_v31 = vld [vmem:[%s7110_s2 + $0x4] sm:$0xf]  ;;  %s4936_s9 = sshll.u32 %s5746_s19, 6  ;;  %s4355_s19 = sshll.u32 %s5870_s23, 4  ;;  %s7048_s19 = int_to_ptr.vmem [resolvable:$true] %s4355_s19 }
  0x44   : > { %s4352_s10 = sadd.s32 %s4941_s6, %s4936_s9  ;;  %s7056_s14 = scalar_lea.sflag [#allocation5], %s202_s8 }
  0x45   : > { %v5994_v36 = vld [vmem:[%s5991_s11 + $0x60] sm:$0xff]  ;;  %v5998_v37 = vld [vmem:[%s5991_s11 + $0x68] sm:$0xff]  ;;  %v6001_v38 = vld [vmem:[%s5991_s11 + $0x78] sm:$0xff]  ;;  %s4937_s18 = sshll.u32 %s4352_s10, 7  ;;  %s5664_s24 = scalar_lea.vmem %s7048_s19, 4096 }
  0x46   : > { %5211 = vmatprep.mubr.msk.f32.mxu1 %vm347_vm4, %v5994_v36  ;;  %v330_v39 = vld [vmem:[%s5991_s11] sm:$0xff]  ;;  %v331_v41 = vld [vmem:[%s5991_s11 + $0x8] sm:$0xff]  ;;  %v6015_v42 = vld [vmem:[%s5991_s11 + $0x18] sm:$0xff]  ;;  %p5665_p0 = scmp.ne.s32.totalorder %s7048_s19, %s5664_s24  ;;  %s5761_s27 = smov [#allocation4]  }
  0x47   : > { %5212 = vmatmul.mubr.msk.f32.vlgmr.msra.gmra.mrb[0].mxu1 %vm347_vm4, %v5998_v37  ;;  %5199 = vmatprep.mubr.msk.f32.mxu0 %vm347_vm4, %v330_v39  ;;  %v6021_v43 = vld [vmem:[%s5991_s11 + $0x80] sm:$0xff]  ;;  %v6027_v45 = vld [vmem:[%s5991_s11 + $0x90] sm:$0xff]  ;;  %v6046_v48 = vld [vmem:[%s5991_s11 + $0x98] sm:$0xff]  ;;  %s5668_s30 = sshll.u32 %s5761_s27, 4  ;;  %s5669_s30 = int_to_ptr.vmem [resolvable:$false] %s5668_s30 }
  0x48   : > { %5224 = vmatpush3.msk.msra.mxu1 %vm396_vm3, %v4469_v34  ;;  %5214 = vmatprep.mubr.msk.f32.mxu1 %vm347_vm4, %v6001_v38  ;;  %v6035_v46 = vld [vmem:[%s5991_s11 + $0x20] sm:$0xff]  ;;  %v6040_v47 = vld [vmem:[%s5991_s11 + $0x30] sm:$0xff]  ;;  %v6049_v49 = vld [vmem:[%s5991_s11 + $0xa8] sm:$0xff]  ;;  %p5666_p1 = pnand %p5665_p0, %p5840_p3  ;;  %s5670_s5 = scalar_lea.vmem %s5669_s30, 8192 }
  0x49   : > { %5200 = vmatmul.mubr.msk.f32.vlgmr.msra.gmra.mrb[0].mxu0 %vm347_vm4, %v331_v41  ;;  %5275 = vmatprep.subr.msk.mxu1 %vm396_vm3, %v4523_v40  ;;  %v6056_v50 = vld [vmem:[%s5991_s11 + $0x38] sm:$0xff]  ;;  %v6061_v51 = vld [vmem:[%s5991_s11 + $0x48] sm:$0xff]  ;;  %v6066_v52 = vld [vmem:[%s5991_s11 + $0xb0] sm:$0xff]  ;;  %p5671_p4 = scmp.lt.s32.totalorder %s7048_s19, %s5669_s30  ;;  %p5672_p5 = scmp.lt.s32.totalorder %s5670_s5, %s5664_s24 }
  0x4a   : > { %5250 = vmatpush3.msk.msra.mxu0 %vm396_vm3, %v4487_v35  ;;  %5202 = vmatprep.mubr.msk.f32.mxu0 %vm347_vm4, %v6015_v42  ;;  %v562_v53 = vld [vmem:[%s5991_s11 + $0x1] sm:$0xff]  ;;  %v6074_v54 = vld [vmem:[%s5991_s11 + $0x50] sm:$0xff]  ;;  %v6082_v57 = vld [vmem:[%s5991_s11 + $0x19] sm:$0xff]  ;;  %p5667_p2 = pneg %p5666_p1 }
  0x4b   : > { %5215 = vmatmul.mubr.msk.f32.gmra.mrb[2].mxu1 %vm347_vm4, %v6021_v43  ;;  %5301 = vmatprep.subr.msk.mxu0 %vm396_vm3, %v4557_v44  ;;  %v824_v55 = vld [vmem:[%s5991_s11 + $0x2] sm:$0xff]  ;;  %v825_v58 = vld [vmem:[%s5991_s11 + $0xa] sm:$0xff]  ;;  %v6095_v60 = vld [vmem:[%s5991_s11 + $0x1a] sm:$0xff]  ;;  %p5673_p6 = por %p5672_p5, %p5671_p4 }
  0x4c   : > { %5217 = vmatprep.mubr.msk.f32.mxu1 %vm347_vm4, %v6027_v45  ;;  %v563_v56 = vld [vmem:[%s5991_s11 + $0x9] sm:$0xff]  ;;  %v6101_v61 = vld [vmem:[%s5991_s11 + $0x21] sm:$0xff]  ;;  %v6109_v63 = vld [vmem:[%s5991_s11 + $0x31] sm:$0xff] }
  0x4d   : > { %5203 = vmatmul.mubr.msk.f32.gmra.mrb[2].mxu0 %vm347_vm4, %v6035_v46  ;;  %v6118_v0 = vld [vmem:[%s5991_s11 + $0x22] sm:$0xff]  ;;  %v6123_v1 = vld [vmem:[%s5991_s11 + $0x32] sm:$0xff]  ;;  %v6140_v4 = vld [vmem:[%s5991_s11 + $0x3a] sm:$0xff]  ;;  %p5674_p7 = pnand %p5673_p6, %p5667_p2 }
  0x4e   : > { %5205 = vmatprep.mubr.msk.f32.mxu0 %vm347_vm4, %v6040_v47  ;;  %v6130_v2 = vld [vmem:[%s5991_s11 + $0x39] sm:$0xff]  ;;  %v6133_v3 = vld [vmem:[%s5991_s11 + $0x49] sm:$0xff]  ;;  %v6150_v6 = vld [vmem:[%s5991_s11 + $0x51] sm:$0xff] }
  0x4f   : > { %5218 = vmatmul.mubr.msk.f32.gmra.mrb[4].mxu1 %vm347_vm4, %v6046_v48  ;;  %v6145_v5 = vld [vmem:[%s5991_s11 + $0x4a] sm:$0xff]  ;;  %v6153_v7 = vld [vmem:[%s5991_s11 + $0x61] sm:$0xff]  ;;  %v6160_v8 = vld [vmem:[%s5991_s11 + $0x52] sm:$0xff] }
  0x50   : > { %5220 = vmatprep.mubr.msk.f32.mxu1 %vm347_vm4, %v6049_v49  ;;  %v6165_v9 = vld [vmem:[%s5991_s11 + $0x62] sm:$0xff]  ;;  %v6173_v11 = vld [vmem:[%s5991_s11 + $0x79] sm:$0xff]  ;;  %v6180_v12 = vld [vmem:[%s5991_s11 + $0x6a] sm:$0xff] }
  0x51   : > { %5206 = vmatmul.mubr.msk.f32.gmra.mrb[4].mxu0 %vm347_vm4, %v6056_v50  ;;  %v6170_v10 = vld [vmem:[%s5991_s11 + $0x69] sm:$0xff]  ;;  %v6185_v13 = vld [vmem:[%s5991_s11 + $0x7a] sm:$0xff]  ;;  %v6193_v15 = vld [vmem:[%s5991_s11 + $0x91] sm:$0xff] }
  0x52   : > { %5208 = vmatprep.mubr.msk.f32.mxu0 %vm347_vm4, %v6061_v51  ;;  %v6190_v14 = vld [vmem:[%s5991_s11 + $0x81] sm:$0xff]  ;;  %v6205_v17 = vld [vmem:[%s5991_s11 + $0x92] sm:$0xff]  ;;  %v6213_v19 = vld [vmem:[%s5991_s11 + $0xa9] sm:$0xff] }
  0x53   : > { %5221 = vmatmul.mubr.msk.f32.gmra.mrb[6].mxu1 %vm347_vm4, %v6066_v52  ;;  %v6200_v16 = vld [vmem:[%s5991_s11 + $0x82] sm:$0xff]  ;;  %v6210_v18 = vld [vmem:[%s5991_s11 + $0x99] sm:$0xff]  ;;  %v6225_v21 = vld [vmem:[%s5991_s11 + $0xaa] sm:$0xff] }
  0x54   : > { %5225 = vmatprep.mubr.msk.f32.mxu1 %vm347_vm4, %v562_v53  ;;  %v6220_v20 = vld [vmem:[%s5991_s11 + $0x9a] sm:$0xff]  ;;  %v6230_v22 = vld [vmem:[%s5991_s11 + $0xb1] sm:$0xff]  ;;  %v6318_v28 = vld [vmem:[%s5991_s11 + $0xc8] sm:$0xff] }
  0x55   : > { %5209 = vmatmul.mubr.msk.f32.gmra.mrb[6].mxu0 %vm347_vm4, %v6074_v54  ;;  %v6237_v23 = vld [vmem:[%s5991_s11 + $0xb2] sm:$0xff]  ;;  %v6304_v26 = vld [vmem:[%s5991_s11 + $0xc0] sm:$0xff]  ;;  %v6325_v29 = vld [vmem:[%s5991_s11 + $0xc9] sm:$0xff] }
  0x56   : > { %5251 = vmatprep.mubr.msk.f32.mxu0 %vm347_vm4, %v824_v55  ;;  %v6313_v27 = vld [vmem:[%s5991_s11 + $0xc1] sm:$0xff]  ;;  %v6399_v33 = vld [vmem:[%s5991_s11 + $0xd8] sm:$0xff]  ;;  %v6404_v34 = vld [vmem:[%s5991_s11 + $0xca] sm:$0xff] }
  0x57   : > { %5226 = vmatmul.mubr.msk.f32.vlgmr.msra.gmra.mrb[8].mxu1 %vm347_vm4, %v563_v56  ;;  %v6390_v32 = vld [vmem:[%s5991_s11 + $0xc2] sm:$0xff]  ;;  %v6476_v41 = vld [vmem:[%s5991_s11 + $0xd9] sm:$0xff]  ;;  %v4865_v56 = vld [vmem:[%s7110_s2 + $0x10] sm:$0xf] }
  0x58   : > { %5276 = vmatpush3.msk.msra.mxu1 %vm396_vm3, %v4523_v40  ;;  %5228 = vmatprep.mubr.msk.f32.mxu1 %vm347_vm4, %v6082_v57  ;;  %v6411_v35 = vld [vmem:[%s5991_s11 + $0xe0] sm:$0xff]  ;;  %v4797_v39 = vld [vmem:[%s7110_s2 + $0x8] sm:$0xf]  ;;  %v4831_v40 = vld [vmem:[%s7110_s2 + $0xc] sm:$0xf] }
  0x59   : > { %5252 = vmatmul.mubr.msk.f32.vlgmr.msra.gmra.mrb[8].mxu0 %vm347_vm4, %v825_v58  ;;  %5327 = vmatprep.subr.msk.mxu1 %vm396_vm3, %v6091_v59  ;;  %v6490_v53 = vld [vmem:[%s5991_s11 + $0xe1] sm:$0xff] }
  0x5a   : > { %5302 = vmatpush3.msk.msra.mxu0 %vm396_vm3, %v4557_v44  ;;  %5254 = vmatprep.mubr.msk.f32.mxu0 %vm347_vm4, %v6095_v60  ;;  %v6485_v44 = vld [vmem:[%s5991_s11 + $0xda] sm:$0xff]  ;;  %v6497_v55 = vld [vmem:[%s5991_s11 + $0xe2] sm:$0xff]  ;;  %s7046_s11 = scalar_lea.hbm %s7112_s4, %s4937_s18 }
  0x5b   : > { %5229 = vmatmul.mubr.msk.f32.gmra.mrb[10].mxu1 %vm347_vm4, %v6101_v61  ;;  %5353 = vmatprep.subr.msk.mxu0 %vm396_vm3, %v6106_v62 }
  0x5c   : > { %5231 = vmatprep.mubr.msk.f32.mxu1 %vm347_vm4, %v6109_v63 }
  0x5d   : > { %5255 = vmatmul.mubr.msk.f32.gmra.mrb[10].mxu0 %vm347_vm4, %v6118_v0 }
  0x5e   : > { %5257 = vmatprep.mubr.msk.f32.mxu0 %vm347_vm4, %v6123_v1 }
  0x5f   : > { %5232 = vmatmul.mubr.msk.f32.gmra.mrb[12].mxu1 %vm347_vm4, %v6130_v2 }
  0x60   : > { %5234 = vmatprep.mubr.msk.f32.mxu1 %vm347_vm4, %v6133_v3 }
  0x61   : > { %5258 = vmatmul.mubr.msk.f32.gmra.mrb[12].mxu0 %vm347_vm4, %v6140_v4 }
  0x62   : > { %5260 = vmatprep.mubr.msk.f32.mxu0 %vm347_vm4, %v6145_v5 }
  0x63   : > { %5235 = vmatmul.mubr.msk.f32.gmra.mrb[14].mxu1 %vm347_vm4, %v6150_v6 }
  0x64   : > { %5237 = vmatprep.mubr.msk.f32.mxu1 %vm347_vm4, %v6153_v7 }
  0x65   : > { %5261 = vmatmul.mubr.msk.f32.gmra.mrb[14].mxu0 %vm347_vm4, %v6160_v8 }
  0x66   : > { %5263 = vmatprep.mubr.msk.f32.mxu0 %vm347_vm4, %v6165_v9 }
  0x67   : > { %5238 = vmatmul.mubr.msk.f32.gmra.mrb[16].mxu1 %vm347_vm4, %v6170_v10 }
  0x68   : > { %5240 = vmatprep.mubr.msk.f32.mxu1 %vm347_vm4, %v6173_v11 }
  0x69   : > { %5264 = vmatmul.mubr.msk.f32.gmra.mrb[16].mxu0 %vm347_vm4, %v6180_v12 }
  0x6a   : > { %5266 = vmatprep.mubr.msk.f32.mxu0 %vm347_vm4, %v6185_v13 }
  0x6b   : > { %5241 = vmatmul.mubr.msk.f32.gmra.mrb[18].mxu1 %vm347_vm4, %v6190_v14 }
  0x6c   : > { %5243 = vmatprep.mubr.msk.f32.mxu1 %vm347_vm4, %v6193_v15 }
  0x6d   : > { %5267 = vmatmul.mubr.msk.f32.gmra.mrb[18].mxu0 %vm347_vm4, %v6200_v16 }
  0x6e   : > { %5269 = vmatprep.mubr.msk.f32.mxu0 %vm347_vm4, %v6205_v17 }
  0x6f   : > { %5244 = vmatmul.mubr.msk.f32.gmra.mrb[20].mxu1 %vm347_vm4, %v6210_v18 }
  0x70   : > { %5246 = vmatprep.mubr.msk.f32.mxu1 %vm347_vm4, %v6213_v19 }
  0x71   : > { %5270 = vmatmul.mubr.msk.f32.gmra.mrb[20].mxu0 %vm347_vm4, %v6220_v20 }
  0x72   : > { %5272 = vmatprep.mubr.msk.f32.mxu0 %vm347_vm4, %v6225_v21 }
  0x73   : > { %5247 = vmatmul.mubr.msk.f32.gmra.mrb[22].mxu1 %vm347_vm4, %v6230_v22 }
  0x74   : > { %5277 = vmatprep.mubr.msk.f32.mxu1 %vm347_vm4, %v6015_v42 }
  0x75   : > { %5273 = vmatmul.mubr.msk.f32.gmra.mrb[22].mxu0 %vm347_vm4, %v6237_v23 }
  0x76   : > { %5303 = vmatprep.mubr.msk.f32.mxu0 %vm347_vm4, %v6082_v57 }
  0x77   : > { %5278 = vmatmul.mubr.msk.f32.vlgmr.msra.gmra.mrb[24].mxu1 %vm347_vm4, %v6035_v46 }
  0x78   : > { %5328 = vmatpush3.msk.msra.mxu1 %vm396_vm3, %v6091_v59  ;;  %5280 = vmatprep.mubr.msk.f32.mxu1 %vm347_vm4, %v6040_v47 }
  0x79   : > { %5304 = vmatmul.mubr.msk.f32.vlgmr.msra.gmra.mrb[24].mxu0 %vm347_vm4, %v6101_v61  ;;  %5379 = vmatprep.subr.msk.mxu1 %vm396_vm3, %v4661_v24 }
  0x7a   : > { %5354 = vmatpush3.msk.msra.mxu0 %vm396_vm3, %v6106_v62  ;;  %5306 = vmatprep.mubr.msk.f32.mxu0 %vm347_vm4, %v6109_v63 }
  0x7b   : > { %5281 = vmatmul.mubr.msk.f32.gmra.mrb[26].mxu1 %vm347_vm4, %v6056_v50  ;;  %5405 = vmatprep.subr.msk.mxu0 %vm396_vm3, %v4695_v25 }
  0x7c   : > { %5283 = vmatprep.mubr.msk.f32.mxu1 %vm347_vm4, %v6061_v51 }
  0x7d   : > { %5307 = vmatmul.mubr.msk.f32.gmra.mrb[26].mxu0 %vm347_vm4, %v6130_v2 }
  0x7e   : > { %5309 = vmatprep.mubr.msk.f32.mxu0 %vm347_vm4, %v6133_v3 }
  0x7f   : > { %5284 = vmatmul.mubr.msk.f32.gmra.mrb[28].mxu1 %vm347_vm4, %v6074_v54 }
  0x80   : > { %5286 = vmatprep.mubr.msk.f32.mxu1 %vm347_vm4, %v5994_v36 }
  0x81   : > { %5310 = vmatmul.mubr.msk.f32.gmra.mrb[28].mxu0 %vm347_vm4, %v6150_v6 }
  0x82   : > { %5312 = vmatprep.mubr.msk.f32.mxu0 %vm347_vm4, %v6153_v7 }
  0x83   : > { %5287 = vmatmul.mubr.msk.f32.gmra.mrb[30].mxu1 %vm347_vm4, %v5998_v37 }
  0x84   : > { %5289 = vmatprep.mubr.msk.f32.mxu1 %vm347_vm4, %v6001_v38 }
  0x85   : > { %5313 = vmatmul.mubr.msk.f32.gmra.mrb[30].mxu0 %vm347_vm4, %v6170_v10 }
  0x86   : > { %5315 = vmatprep.mubr.msk.f32.mxu0 %vm347_vm4, %v6173_v11 }
  0x87   : > { %5290 = vmatmul.mubr.msk.f32.gmra.mrb[32].mxu1 %vm347_vm4, %v6021_v43 }
  0x88   : > { %5292 = vmatprep.mubr.msk.f32.mxu1 %vm347_vm4, %v6027_v45 }
  0x89   : > { %5316 = vmatmul.mubr.msk.f32.gmra.mrb[32].mxu0 %vm347_vm4, %v6190_v14 }
  0x8a   : > { %5318 = vmatprep.mubr.msk.f32.mxu0 %vm347_vm4, %v6193_v15 }
  0x8b   : > { %5293 = vmatmul.mubr.msk.f32.gmra.mrb[34].mxu1 %vm347_vm4, %v6046_v48 }
  0x8c   : > { %5295 = vmatprep.mubr.msk.f32.mxu1 %vm347_vm4, %v6049_v49 }
  0x8d   : > { %5319 = vmatmul.mubr.msk.f32.gmra.mrb[34].mxu0 %vm347_vm4, %v6210_v18 }
  0x8e   : > { %5321 = vmatprep.mubr.msk.f32.mxu0 %vm347_vm4, %v6213_v19 }
  0x8f   : > { %5296 = vmatmul.mubr.msk.f32.gmra.mrb[36].mxu1 %vm347_vm4, %v6066_v52 }
  0x90   : > { %5298 = vmatprep.mubr.msk.f32.mxu1 %vm347_vm4, %v6304_v26 }
  0x91   : > { %5322 = vmatmul.mubr.msk.f32.gmra.mrb[36].mxu0 %vm347_vm4, %v6230_v22 }
  0x92   : > { %5324 = vmatprep.mubr.msk.f32.mxu0 %vm347_vm4, %v6313_v27 }
  0x93   : > { %5299 = vmatmul.mubr.msk.f32.gmra.mrb[38].mxu1 %vm347_vm4, %v6318_v28 }
  0x94   : > { %5329 = vmatprep.mubr.msk.f32.mxu1 %vm347_vm4, %v6095_v60 }
  0x95   : > { %5325 = vmatmul.mubr.msk.f32.gmra.mrb[38].mxu0 %vm347_vm4, %v6325_v29 }
  0x96   : > { %5355 = vmatprep.mubr.msk.f32.mxu0 %vm347_vm4, %v6040_v47 }
  0x97   : > { %5330 = vmatmul.mubr.msk.f32.vlgmr.msra.gmra.mrb[40].mxu1 %vm347_vm4, %v6118_v0 }
  0x98   : > { %5380 = vmatpush3.msk.msra.mxu1 %vm396_vm3, %v4661_v24  ;;  %5332 = vmatprep.mubr.msk.f32.mxu1 %vm347_vm4, %v6123_v1 }
  0x99   : > { %5356 = vmatmul.mubr.msk.f32.vlgmr.msra.gmra.mrb[40].mxu0 %vm347_vm4, %v6056_v50  ;;  %5431 = vmatprep.subr.msk.mxu1 %vm396_vm3, %v2750_v30 }
  0x9a   : > { %5406 = vmatpush3.msk.msra.mxu0 %vm396_vm3, %v4695_v25  ;;  %5358 = vmatprep.mubr.msk.f32.mxu0 %vm347_vm4, %v6061_v51 }
  0x9b   : > { %5333 = vmatmul.mubr.msk.f32.gmra.mrb[42].mxu1 %vm347_vm4, %v6140_v4  ;;  %5457 = vmatprep.subr.msk.mxu0 %vm396_vm3, %v4763_v31 }
  0x9c   : > { %5335 = vmatprep.mubr.msk.f32.mxu1 %vm347_vm4, %v6145_v5 }
  0x9d   : > { %5359 = vmatmul.mubr.msk.f32.gmra.mrb[42].mxu0 %vm347_vm4, %v6074_v54 }
  0x9e   : > { %5361 = vmatprep.mubr.msk.f32.mxu0 %vm347_vm4, %v5994_v36 }
  0x9f   : > { %5336 = vmatmul.mubr.msk.f32.gmra.mrb[44].mxu1 %vm347_vm4, %v6160_v8 }
  0xa0   : > { %5338 = vmatprep.mubr.msk.f32.mxu1 %vm347_vm4, %v6165_v9 }
  0xa1   : > { %5362 = vmatmul.mubr.msk.f32.gmra.mrb[44].mxu0 %vm347_vm4, %v5998_v37 }
  0xa2   : > { %5364 = vmatprep.mubr.msk.f32.mxu0 %vm347_vm4, %v6001_v38 }
  0xa3   : > { %5339 = vmatmul.mubr.msk.f32.gmra.mrb[46].mxu1 %vm347_vm4, %v6180_v12 }
  0xa4   : > { %5341 = vmatprep.mubr.msk.f32.mxu1 %vm347_vm4, %v6185_v13 }
  0xa5   : > { %5365 = vmatmul.mubr.msk.f32.gmra.mrb[46].mxu0 %vm347_vm4, %v6021_v43 }
  0xa6   : > { %5367 = vmatprep.mubr.msk.f32.mxu0 %vm347_vm4, %v6027_v45 }
  0xa7   : > { %5342 = vmatmul.mubr.msk.f32.gmra.mrb[48].mxu1 %vm347_vm4, %v6200_v16 }
  0xa8   : > { %5344 = vmatprep.mubr.msk.f32.mxu1 %vm347_vm4, %v6205_v17 }
  0xa9   : > { %5368 = vmatmul.mubr.msk.f32.gmra.mrb[48].mxu0 %vm347_vm4, %v6046_v48 }
  0xaa   : > { %5370 = vmatprep.mubr.msk.f32.mxu0 %vm347_vm4, %v6049_v49 }
  0xab   : > { %5345 = vmatmul.mubr.msk.f32.gmra.mrb[50].mxu1 %vm347_vm4, %v6220_v20 }
  0xac   : > { %5347 = vmatprep.mubr.msk.f32.mxu1 %vm347_vm4, %v6225_v21 }
  0xad   : > { %5371 = vmatmul.mubr.msk.f32.gmra.mrb[50].mxu0 %vm347_vm4, %v6066_v52 }
  0xae   : > { %5373 = vmatprep.mubr.msk.f32.mxu0 %vm347_vm4, %v6304_v26 }
  0xaf   : > { %5348 = vmatmul.mubr.msk.f32.gmra.mrb[52].mxu1 %vm347_vm4, %v6237_v23 }
  0xb0   : > { %5350 = vmatprep.mubr.msk.f32.mxu1 %vm347_vm4, %v6390_v32 }
  0xb1   : > { %5374 = vmatmul.mubr.msk.f32.gmra.mrb[52].mxu0 %vm347_vm4, %v6318_v28 }
  0xb2   : > { %5376 = vmatprep.mubr.msk.f32.mxu0 %vm347_vm4, %v6399_v33 }
  0xb3   : > { %5351 = vmatmul.mubr.msk.f32.gmra.mrb[54].mxu1 %vm347_vm4, %v6404_v34 }
  0xb4   : > { %5381 = vmatprep.mubr.msk.f32.mxu1 %vm347_vm4, %v6109_v63 }
  0xb5   : > { %5377 = vmatmul.mubr.msk.f32.gmra.mrb[54].mxu0 %vm347_vm4, %v6411_v35 }
  0xb6   : > { %5407 = vmatprep.mubr.msk.f32.mxu0 %vm347_vm4, %v6123_v1 }
  0xb7   : > { %5382 = vmatmul.mubr.msk.f32.vlgmr.msra.gmra.mrb[56].mxu1 %vm347_vm4, %v6130_v2 }
  0xb8   : > { %5432 = vmatpush3.msk.msra.mxu1 %vm396_vm3, %v2750_v30  ;;  %5384 = vmatprep.mubr.msk.f32.mxu1 %vm347_vm4, %v6133_v3 }
  0xb9   : > { %5408 = vmatmul.mubr.msk.f32.vlgmr.msra.gmra.mrb[56].mxu0 %vm347_vm4, %v6140_v4  ;;  %5483 = vmatprep.subr.msk.mxu1 %vm396_vm3, %v4797_v39 }
  0xba   : > { %5458 = vmatpush3.msk.msra.mxu0 %vm396_vm3, %v4763_v31  ;;  %5410 = vmatprep.mubr.msk.f32.mxu0 %vm347_vm4, %v6145_v5 }
  0xbb   : > { %5385 = vmatmul.mubr.msk.f32.gmra.mrb[58].mxu1 %vm347_vm4, %v6150_v6  ;;  %5509 = vmatprep.subr.msk.mxu0 %vm396_vm3, %v4831_v40 }
  0xbc   : > { %5387 = vmatprep.mubr.msk.f32.mxu1 %vm347_vm4, %v6153_v7 }
  0xbd   : > { %5411 = vmatmul.mubr.msk.f32.gmra.mrb[58].mxu0 %vm347_vm4, %v6160_v8 }
  0xbe   : > { %5413 = vmatprep.mubr.msk.f32.mxu0 %vm347_vm4, %v6165_v9 }
  0xbf   : > { %5388 = vmatmul.mubr.msk.f32.gmra.mrb[60].mxu1 %vm347_vm4, %v6170_v10 }
  0xc0   : > { %5390 = vmatprep.mubr.msk.f32.mxu1 %vm347_vm4, %v6173_v11 }
  0xc1   : > { %5414 = vmatmul.mubr.msk.f32.gmra.mrb[60].mxu0 %vm347_vm4, %v6180_v12 }
  0xc2   : > { %5416 = vmatprep.mubr.msk.f32.mxu0 %vm347_vm4, %v6185_v13 }
  0xc3   : > { %5391 = vmatmul.mubr.msk.f32.gmra.mrb[62].mxu1 %vm347_vm4, %v6190_v14 }
  0xc4   : > { %5393 = vmatprep.mubr.msk.f32.mxu1 %vm347_vm4, %v6193_v15 }
  0xc5   : > { %5417 = vmatmul.mubr.msk.f32.gmra.mrb[62].mxu0 %vm347_vm4, %v6200_v16 }
  0xc6   : > { %5419 = vmatprep.mubr.msk.f32.mxu0 %vm347_vm4, %v6205_v17 }
  0xc7   : > { %5394 = vmatmul.mubr.msk.f32.gmra.mrb[64].mxu1 %vm347_vm4, %v6210_v18 }
  0xc8   : > { %5396 = vmatprep.mubr.msk.f32.mxu1 %vm347_vm4, %v6213_v19 }
  0xc9   : > { %5420 = vmatmul.mubr.msk.f32.gmra.mrb[64].mxu0 %vm347_vm4, %v6220_v20 }
  0xca   : > { %5422 = vmatprep.mubr.msk.f32.mxu0 %vm347_vm4, %v6225_v21 }
  0xcb   : > { %5397 = vmatmul.mubr.msk.f32.gmra.mrb[66].mxu1 %vm347_vm4, %v6230_v22 }
  0xcc   : > { %5399 = vmatprep.mubr.msk.f32.mxu1 %vm347_vm4, %v6313_v27 }
  0xcd   : > { %5423 = vmatmul.mubr.msk.f32.gmra.mrb[66].mxu0 %vm347_vm4, %v6237_v23 }
  0xce   : > { %5425 = vmatprep.mubr.msk.f32.mxu0 %vm347_vm4, %v6390_v32 }
  0xcf   : > { %5400 = vmatmul.mubr.msk.f32.gmra.mrb[68].mxu1 %vm347_vm4, %v6325_v29 }
  0xd0   : > { %5402 = vmatprep.mubr.msk.f32.mxu1 %vm347_vm4, %v6476_v41 }
  0xd1   : > { %5426 = vmatmul.mubr.msk.f32.gmra.mrb[68].mxu0 %vm347_vm4, %v6404_v34 }
  0xd2   : > { %5428 = vmatprep.mubr.msk.f32.mxu0 %vm347_vm4, %v6485_v44 }
  0xd3   : > { %5403 = vmatmul.mubr.msk.f32.gmra.mrb[70].mxu1 %vm347_vm4, %v6490_v53 }
  0xd4   : > { %5433 = vmatprep.mubr.msk.f32.mxu1 %vm347_vm4, %v6015_v42  ;;  %v4899_v42 = vld [vmem:[%s7110_s2 + $0x14] sm:$0xf] }
  0xd5   : > { %5429 = vmatmul.mubr.msk.f32.gmra.mrb[70].mxu0 %vm347_vm4, %v6497_v55 }
  0xd6   : > { %5459 = vmatprep.mubr.msk.f32.mxu0 %vm347_vm4, %v6082_v57 }
  0xd7   : > { %5434 = vmatmul.mubr.msk.f32.vlgmr.msra.gmra.mrb[72].mxu1 %vm347_vm4, %v6035_v46 }
  0xd8   : > { %5484 = vmatpush3.msk.msra.mxu1 %vm396_vm3, %v4797_v39  ;;  %5436 = vmatprep.mubr.msk.f32.mxu1 %vm347_vm4, %v6040_v47 }
  0xd9   : > { %5460 = vmatmul.mubr.msk.f32.vlgmr.msra.gmra.mrb[72].mxu0 %vm347_vm4, %v6101_v61  ;;  %5535 = vmatprep.subr.msk.mxu1 %vm396_vm3, %v4865_v56 }
  0xda   : > { %5510 = vmatpush3.msk.msra.mxu0 %vm396_vm3, %v4831_v40  ;;  %5462 = vmatprep.mubr.msk.f32.mxu0 %vm347_vm4, %v6109_v63 }
  0xdb   : > { %5437 = vmatmul.mubr.msk.f32.gmra.mrb[74].mxu1 %vm347_vm4, %v6056_v50  ;;  %5561 = vmatprep.subr.msk.mxu0 %vm396_vm3, %v4899_v42 }
  0xdc   : > { %5439 = vmatprep.mubr.msk.f32.mxu1 %vm347_vm4, %v6061_v51 }
  0xdd   : > { %5463 = vmatmul.mubr.msk.f32.gmra.mrb[74].mxu0 %vm347_vm4, %v6130_v2 }
  0xde   : > { %5465 = vmatprep.mubr.msk.f32.mxu0 %vm347_vm4, %v6133_v3 }
  0xdf   : > { %5440 = vmatmul.mubr.msk.f32.gmra.mrb[76].mxu1 %vm347_vm4, %v6074_v54 }
  0xe0   : > { %5442 = vmatprep.mubr.msk.f32.mxu1 %vm347_vm4, %v5994_v36 }
  0xe1   : > { %5466 = vmatmul.mubr.msk.f32.gmra.mrb[76].mxu0 %vm347_vm4, %v6150_v6 }
  0xe2   : > { %5468 = vmatprep.mubr.msk.f32.mxu0 %vm347_vm4, %v6153_v7 }
  0xe3   : > { %5443 = vmatmul.mubr.msk.f32.gmra.mrb[78].mxu1 %vm347_vm4, %v5998_v37 }
  0xe4   : > { %5445 = vmatprep.mubr.msk.f32.mxu1 %vm347_vm4, %v6001_v38 }
  0xe5   : > { %5469 = vmatmul.mubr.msk.f32.gmra.mrb[78].mxu0 %vm347_vm4, %v6170_v10 }
  0xe6   : > { %5471 = vmatprep.mubr.msk.f32.mxu0 %vm347_vm4, %v6173_v11 }
  0xe7   : > { %5446 = vmatmul.mubr.msk.f32.gmra.mrb[80].mxu1 %vm347_vm4, %v6021_v43 }
  0xe8   : > { %5448 = vmatprep.mubr.msk.f32.mxu1 %vm347_vm4, %v6027_v45 }
  0xe9   : > { %5472 = vmatmul.mubr.msk.f32.gmra.mrb[80].mxu0 %vm347_vm4, %v6190_v14 }
  0xea   : > { %5474 = vmatprep.mubr.msk.f32.mxu0 %vm347_vm4, %v6193_v15 }
  0xeb   : > { %5449 = vmatmul.mubr.msk.f32.gmra.mrb[82].mxu1 %vm347_vm4, %v6046_v48 }
  0xec   : > { %5451 = vmatprep.mubr.msk.f32.mxu1 %vm347_vm4, %v6049_v49 }
  0xed   : > { %5475 = vmatmul.mubr.msk.f32.gmra.mrb[82].mxu0 %vm347_vm4, %v6210_v18 }
  0xee   : > { %5477 = vmatprep.mubr.msk.f32.mxu0 %vm347_vm4, %v6213_v19 }
  0xef   : > { %5452 = vmatmul.mubr.msk.f32.gmra.mrb[84].mxu1 %vm347_vm4, %v6066_v52 }
  0xf0   : > { %5454 = vmatprep.mubr.msk.f32.mxu1 %vm347_vm4, %v6304_v26 }
  0xf1   : > { %5478 = vmatmul.mubr.msk.f32.gmra.mrb[84].mxu0 %vm347_vm4, %v6230_v22 }
  0xf2   : > { %5480 = vmatprep.mubr.msk.f32.mxu0 %vm347_vm4, %v6313_v27 }
  0xf3   : > { %5455 = vmatmul.mubr.msk.f32.gmra.mrb[86].mxu1 %vm347_vm4, %v6318_v28 }
  0xf4   : > { %5485 = vmatprep.mubr.msk.f32.mxu1 %vm347_vm4, %v6095_v60 }
  0xf5   : > { %5481 = vmatmul.mubr.msk.f32.gmra.mrb[86].mxu0 %vm347_vm4, %v6325_v29 }
  0xf6   : > { %5511 = vmatprep.mubr.msk.f32.mxu0 %vm347_vm4, %v6040_v47 }
  0xf7   : > { %5486 = vmatmul.mubr.msk.f32.vlgmr.msra.gmra.mrb[88].mxu1 %vm347_vm4, %v6118_v0 }
  0xf8   : > { %5536 = vmatpush3.msk.msra.mxu1 %vm396_vm3, %v4865_v56  ;;  %5488 = vmatprep.mubr.msk.f32.mxu1 %vm347_vm4, %v6123_v1 }
  0xf9   : > { %5512 = vmatmul.mubr.msk.f32.vlgmr.msra.gmra.mrb[88].mxu0 %vm347_vm4, %v6056_v50 }
  0xfa   : > { %5562 = vmatpush3.msk.msra.mxu0 %vm396_vm3, %v4899_v42  ;;  %5514 = vmatprep.mubr.msk.f32.mxu0 %vm347_vm4, %v6061_v51 }
  0xfb   : > { %5489 = vmatmul.mubr.msk.f32.gmra.mrb[90].mxu1 %vm347_vm4, %v6140_v4 }
  0xfc   : > { %5491 = vmatprep.mubr.msk.f32.mxu1 %vm347_vm4, %v6145_v5 }
  0xfd   : > { %5515 = vmatmul.mubr.msk.f32.gmra.mrb[90].mxu0 %vm347_vm4, %v6074_v54 }
  0xfe   : > { %5517 = vmatprep.mubr.msk.f32.mxu0 %vm347_vm4, %v5994_v36 }
  0xff   : > { %5492 = vmatmul.mubr.msk.f32.gmra.mrb[92].mxu1 %vm347_vm4, %v6160_v8 }
 0x100   : > { %5494 = vmatprep.mubr.msk.f32.mxu1 %vm347_vm4, %v6165_v9 }
 0x101   : > { %5518 = vmatmul.mubr.msk.f32.gmra.mrb[92].mxu0 %vm347_vm4, %v5998_v37 }
 0x102   : > { %5520 = vmatprep.mubr.msk.f32.mxu0 %vm347_vm4, %v6001_v38 }
 0x103   : > { %5495 = vmatmul.mubr.msk.f32.gmra.mrb[94].mxu1 %vm347_vm4, %v6180_v12 }
 0x104   : > { %5497 = vmatprep.mubr.msk.f32.mxu1 %vm347_vm4, %v6185_v13 }
 0x105   : > { %5521 = vmatmul.mubr.msk.f32.gmra.mrb[94].mxu0 %vm347_vm4, %v6021_v43 }
 0x106   : > { %5523 = vmatprep.mubr.msk.f32.mxu0 %vm347_vm4, %v6027_v45 }
 0x107   : > { %5498 = vmatmul.mubr.msk.f32.gmra.mrb[96].mxu1 %vm347_vm4, %v6200_v16 }
 0x108   : > { %5500 = vmatprep.mubr.msk.f32.mxu1 %vm347_vm4, %v6205_v17 }
 0x109   : > { %5524 = vmatmul.mubr.msk.f32.gmra.mrb[96].mxu0 %vm347_vm4, %v6046_v48 }
 0x10a   : > { %5526 = vmatprep.mubr.msk.f32.mxu0 %vm347_vm4, %v6049_v49 }
 0x10b   : > { %5501 = vmatmul.mubr.msk.f32.gmra.mrb[98].mxu1 %vm347_vm4, %v6220_v20 }
 0x10c   : > { %5503 = vmatprep.mubr.msk.f32.mxu1 %vm347_vm4, %v6225_v21 }
 0x10d   : > { %5527 = vmatmul.mubr.msk.f32.gmra.mrb[98].mxu0 %vm347_vm4, %v6066_v52 }
 0x10e   : > { %5529 = vmatprep.mubr.msk.f32.mxu0 %vm347_vm4, %v6304_v26 }
 0x10f   : > { %5504 = vmatmul.mubr.msk.f32.gmra.mrb[100].mxu1 %vm347_vm4, %v6237_v23 }
 0x110   : > { %5506 = vmatprep.mubr.msk.f32.mxu1 %vm347_vm4, %v6390_v32 }
 0x111   : > { %5530 = vmatmul.mubr.msk.f32.gmra.mrb[100].mxu0 %vm347_vm4, %v6318_v28 }
 0x112   : > { %5532 = vmatprep.mubr.msk.f32.mxu0 %vm347_vm4, %v6399_v33 }
 0x113   : > { %5507 = vmatmul.mubr.msk.f32.gmra.mrb[102].mxu1 %vm347_vm4, %v6404_v34 }
 0x114   : > { %5537 = vmatprep.mubr.msk.f32.mxu1 %vm347_vm4, %v6109_v63 }
 0x115   : > { %5533 = vmatmul.mubr.msk.f32.gmra.mrb[102].mxu0 %vm347_vm4, %v6411_v35 }
 0x116   : > { %5563 = vmatprep.mubr.msk.f32.mxu0 %vm347_vm4, %v6123_v1 }
 0x117   : > { %5538 = vmatmul.mubr.msk.f32.vlgmr.msra.gmra.mrb[104].mxu1 %vm347_vm4, %v6130_v2 }
 0x118   : > { %5540 = vmatprep.mubr.msk.f32.mxu1 %vm347_vm4, %v6133_v3 }
 0x119   : > { %5564 = vmatmul.mubr.msk.f32.vlgmr.msra.gmra.mrb[104].mxu0 %vm347_vm4, %v6140_v4 }
 0x11a   : > { %v5213_v36 = vpop.f32.mrb[0].mxu1  ;;  %5566 = vmatprep.mubr.msk.f32.mxu0 %vm347_vm4, %v6145_v5 }
 0x11b   : > { %555 = vst.msk [vmem:[#allocation3 + $0x48] sm:$0xff] %vm545_vm5, %v5213_v36  ;;  %v506_v37 = vpop.f32.mrb[1].mxu1  ;;  %5541 = vmatmul.mubr.msk.f32.gmra.mrb[106].mxu1 %vm347_vm4, %v6150_v6 }
 0x11c   : > { %554 = vst.msk [vmem:[#allocation3 + $0x40] sm:$0xff] %vm545_vm5, %v506_v37  ;;  %5543 = vmatprep.mubr.msk.f32.mxu1 %vm347_vm4, %v6153_v7  ;;  %v5201_v38 = vpop.f32.mrb[0].mxu0 }
 0x11d   : > { %547 = vst.msk [vmem:[#allocation3 + $0x8] sm:$0xff] %vm545_vm5, %v5201_v38  ;;  %v466_v43 = vpop.f32.mrb[1].mxu0  ;;  %5567 = vmatmul.mubr.msk.f32.gmra.mrb[106].mxu0 %vm347_vm4, %v6160_v8 }
 0x11e   : > { %v5216_v45 = vpop.f32.mrb[2].mxu1  ;;  %546 = vst.msk [vmem:[#allocation3] sm:$0xff] %vm545_vm5, %v466_v43  ;;  %5569 = vmatprep.mubr.msk.f32.mxu0 %vm347_vm4, %v6165_v9 }
 0x11f   : > { %557 = vst.msk [vmem:[#allocation3 + $0x58] sm:$0xff] %vm545_vm5, %v5216_v45  ;;  %v516_v46 = vpop.f32.mrb[3].mxu1  ;;  %5544 = vmatmul.mubr.msk.f32.gmra.mrb[108].mxu1 %vm347_vm4, %v6170_v10 }
 0x120   : > { %556 = vst.msk [vmem:[#allocation3 + $0x50] sm:$0xff] %vm545_vm5, %v516_v46  ;;  %5546 = vmatprep.mubr.msk.f32.mxu1 %vm347_vm4, %v6173_v11  ;;  %v5204_v47 = vpop.f32.mrb[2].mxu0 }
 0x121   : > { %549 = vst.msk [vmem:[#allocation3 + $0x18] sm:$0xff] %vm545_vm5, %v5204_v47  ;;  %v476_v48 = vpop.f32.mrb[3].mxu0  ;;  %5570 = vmatmul.mubr.msk.f32.gmra.mrb[108].mxu0 %vm347_vm4, %v6180_v12 }
 0x122   : > { %v5219_v49 = vpop.f32.mrb[4].mxu1  ;;  %548 = vst.msk [vmem:[#allocation3 + $0x10] sm:$0xff] %vm545_vm5, %v476_v48  ;;  %5572 = vmatprep.mubr.msk.f32.mxu0 %vm347_vm4, %v6185_v13  ;;  %v785_v40 = vld [vmem:[#allocation3 + $0x48] sm:$0xff] }
 0x123   : > { %559 = vst.msk [vmem:[#allocation3 + $0x68] sm:$0xff] %vm545_vm5, %v5219_v49  ;;  %v526_v50 = vpop.f32.mrb[5].mxu1  ;;  %5547 = vmatmul.mubr.msk.f32.gmra.mrb[110].mxu1 %vm347_vm4, %v6190_v14 }
 0x124   : > { %558 = vst.msk [vmem:[#allocation3 + $0x60] sm:$0xff] %vm545_vm5, %v526_v50  ;;  %5549 = vmatprep.mubr.msk.f32.mxu1 %vm347_vm4, %v6193_v15  ;;  %v5207_v51 = vpop.f32.mrb[4].mxu0  ;;  %v777_v58 = vld [vmem:[#allocation3 + $0x8] sm:$0xff] }
 0x125   : > { %551 = vst.msk [vmem:[#allocation3 + $0x28] sm:$0xff] %vm545_vm5, %v5207_v51  ;;  %v486_v52 = vpop.f32.mrb[5].mxu0  ;;  %5573 = vmatmul.mubr.msk.f32.gmra.mrb[110].mxu0 %vm347_vm4, %v6200_v16  ;;  %v776_v60 = vld [vmem:[#allocation3] sm:$0xff] }
 0x126   : > { %v5222_v54 = vpop.f32.mrb[6].mxu1  ;;  %550 = vst.msk [vmem:[#allocation3 + $0x20] sm:$0xff] %vm545_vm5, %v486_v52  ;;  %5575 = vmatprep.mubr.msk.f32.mxu0 %vm347_vm4, %v6205_v17  ;;  %v787_v46 = vld [vmem:[#allocation3 + $0x58] sm:$0xff] }
 0x127   : > { %561 = vst.msk [vmem:[#allocation3 + $0x78] sm:$0xff] %vm545_vm5, %v5222_v54  ;;  %v536_v57 = vpop.f32.mrb[7].mxu1  ;;  %5550 = vmatmul.mubr.msk.f32.gmra.mrb[112].mxu1 %vm347_vm4, %v6210_v18  ;;  %v786_v49 = vld [vmem:[#allocation3 + $0x50] sm:$0xff] }
 0x128   : > { %560 = vst.msk [vmem:[#allocation3 + $0x70] sm:$0xff] %vm545_vm5, %v536_v57  ;;  %5552 = vmatprep.mubr.msk.f32.mxu1 %vm347_vm4, %v6213_v19  ;;  %v5210_v59 = vpop.f32.mrb[6].mxu0  ;;  %v779_v2 = vld [vmem:[#allocation3 + $0x18] sm:$0xff] }
 0x129   : > { %553 = vst.msk [vmem:[#allocation3 + $0x38] sm:$0xff] %vm545_vm5, %v5210_v59  ;;  %v496_v61 = vpop.f32.mrb[7].mxu0  ;;  %5576 = vmatmul.mubr.msk.f32.gmra.mrb[112].mxu0 %vm347_vm4, %v6220_v20  ;;  %v778_v4 = vld [vmem:[#allocation3 + $0x10] sm:$0xff] }
 0x12a   : > { %v5227_v62 = vpop.f32.mrb[8].mxu1  ;;  %552 = vst.msk [vmem:[#allocation3 + $0x30] sm:$0xff] %vm545_vm5, %v496_v61  ;;  %5578 = vmatprep.mubr.msk.f32.mxu0 %vm347_vm4, %v6225_v21  ;;  %v789_v61 = vld [vmem:[#allocation3 + $0x68] sm:$0xff] }
 0x12b   : > { %v793_v63 = vadd.f32 %v5227_v62, %v777_v58  ;;  %v697_v0 = vpop.f32.mrb[9].mxu1  ;;  %5553 = vmatmul.mubr.msk.f32.gmra.mrb[114].mxu1 %vm347_vm4, %v6230_v22 }
 0x12c   : > { %v792_v1 = vadd.f32 %v776_v60, %v697_v0  ;;  %5555 = vmatprep.mubr.msk.f32.mxu1 %vm347_vm4, %v6313_v27  ;;  %v5253_v3 = vpop.f32.mrb[8].mxu0  ;;  %v781_v10 = vld [vmem:[#allocation3 + $0x28] sm:$0xff]  ;;  %v788_v0 = vld [vmem:[#allocation3 + $0x60] sm:$0xff] }
 0x12d   : > { %809 = vst.msk [vmem:[#allocation3 + $0x8] sm:$0xff] %vm545_vm5, %v793_v63  ;;  %v959_v5 = vpop.f32.mrb[9].mxu0  ;;  %5579 = vmatmul.mubr.msk.f32.gmra.mrb[114].mxu0 %vm347_vm4, %v6237_v23  ;;  %v780_v12 = vld [vmem:[#allocation3 + $0x20] sm:$0xff] }
 0x12e   : > { %808 = vst.msk [vmem:[#allocation3] sm:$0xff] %vm545_vm5, %v792_v1  ;;  %v5230_v6 = vpop.f32.mrb[10].mxu1  ;;  %5581 = vmatprep.mubr.msk.f32.mxu0 %vm347_vm4, %v6390_v32 }
 0x12f   : > { %v795_v7 = vadd.f32 %v5230_v6, %v779_v2  ;;  %v707_v8 = vpop.f32.mrb[11].mxu1  ;;  %5556 = vmatmul.mubr.msk.f32.gmra.mrb[116].mxu1 %vm347_vm4, %v6325_v29 }
 0x130   : > { %v794_v9 = vadd.f32 %v778_v4, %v707_v8  ;;  %5558 = vmatprep.mubr.msk.f32.mxu1 %vm347_vm4, %v6476_v41  ;;  %v5256_v11 = vpop.f32.mrb[10].mxu0  ;;  %v783_v19 = vld [vmem:[#allocation3 + $0x38] sm:$0xff] }
 0x131   : > { %811 = vst.msk [vmem:[#allocation3 + $0x18] sm:$0xff] %vm545_vm5, %v795_v7  ;;  %v969_v13 = vpop.f32.mrb[11].mxu0  ;;  %5582 = vmatmul.mubr.msk.f32.gmra.mrb[116].mxu0 %vm347_vm4, %v6404_v34  ;;  %v782_v23 = vld [vmem:[#allocation3 + $0x30] sm:$0xff] }
 0x132   : > { %810 = vst.msk [vmem:[#allocation3 + $0x10] sm:$0xff] %vm545_vm5, %v794_v9  ;;  %v5233_v14 = vpop.f32.mrb[12].mxu1  ;;  %5584 = vmatprep.mubr.msk.f32.mxu0 %vm347_vm4, %v6485_v44  ;;  %v791_v9 = vld [vmem:[#allocation3 + $0x78] sm:$0xff] }
 0x133   : > { %v797_v15 = vadd.f32 %v5233_v14, %v781_v10  ;;  %v717_v16 = vpop.f32.mrb[13].mxu1  ;;  %5559 = vmatmul.mubr.msk.f32.gmra.mrb[118].mxu1 %vm347_vm4, %v6490_v53  ;;  %v784_v53 = vld [vmem:[#allocation3 + $0x40] sm:$0xff] }
 0x134   : > { %v796_v17 = vadd.f32 %v780_v12, %v717_v16  ;;  %v1039_v18 = vld [vmem:[#allocation3 + $0x8] sm:$0xff]  ;;  %v5259_v20 = vpop.f32.mrb[12].mxu0  ;;  %v790_v12 = vld [vmem:[#allocation3 + $0x70] sm:$0xff] }
 0x135   : > { %813 = vst.msk [vmem:[#allocation3 + $0x28] sm:$0xff] %vm545_vm5, %v797_v15  ;;  %v1055_v21 = vadd.f32 %v5253_v3, %v1039_v18  ;;  %v1038_v22 = vld [vmem:[#allocation3] sm:$0xff]  ;;  %v979_v24 = vpop.f32.mrb[13].mxu0  ;;  %5585 = vmatmul.mubr.msk.f32.gmra.mrb[118].mxu0 %vm347_vm4, %v6497_v55 }
 0x136   : > { %812 = vst.msk [vmem:[#allocation3 + $0x20] sm:$0xff] %vm545_vm5, %v796_v17  ;;  %v1054_v25 = vadd.f32 %v1038_v22, %v959_v5  ;;  %v5236_v26 = vpop.f32.mrb[14].mxu1 }
 0x137   : > { %1071 = vst.msk [vmem:[#allocation3 + $0x8] sm:$0xff] %vm545_vm5, %v1055_v21  ;;  %v799_v27 = vadd.f32 %v5236_v26, %v783_v19  ;;  %v727_v28 = vpop.f32.mrb[15].mxu1 }
 0x138   : > { %1070 = vst.msk [vmem:[#allocation3] sm:$0xff] %vm545_vm5, %v1054_v25  ;;  %v798_v29 = vadd.f32 %v782_v23, %v727_v28  ;;  %v1041_v30 = vld [vmem:[#allocation3 + $0x18] sm:$0xff]  ;;  %v5262_v31 = vpop.f32.mrb[14].mxu0 }
 0x139   : > { %815 = vst.msk [vmem:[#allocation3 + $0x38] sm:$0xff] %vm545_vm5, %v799_v27  ;;  %v1057_v32 = vadd.f32 %v5256_v11, %v1041_v30  ;;  %v1040_v33 = vld [vmem:[#allocation3 + $0x10] sm:$0xff]  ;;  %v989_v34 = vpop.f32.mrb[15].mxu0 }
 0x13a   : > { %814 = vst.msk [vmem:[#allocation3 + $0x30] sm:$0xff] %vm545_vm5, %v798_v29  ;;  %v1056_v35 = vadd.f32 %v1040_v33, %v969_v13  ;;  %v5239_v39 = vpop.f32.mrb[16].mxu1 }
 0x13b   : > { %1073 = vst.msk [vmem:[#allocation3 + $0x18] sm:$0xff] %vm545_vm5, %v1057_v32  ;;  %v801_v41 = vadd.f32 %v5239_v39, %v785_v40  ;;  %v737_v44 = vpop.f32.mrb[17].mxu1 }
 0x13c   : > { %1072 = vst.msk [vmem:[#allocation3 + $0x10] sm:$0xff] %vm545_vm5, %v1056_v35  ;;  %v800_v55 = vadd.f32 %v784_v53, %v737_v44  ;;  %v1043_v56 = vld [vmem:[#allocation3 + $0x28] sm:$0xff]  ;;  %v5265_v42 = vpop.f32.mrb[16].mxu0 }
 0x13d   : > { %817 = vst.msk [vmem:[#allocation3 + $0x48] sm:$0xff] %vm545_vm5, %v801_v41  ;;  %v1059_v36 = vadd.f32 %v5259_v20, %v1043_v56  ;;  %v1042_v37 = vld [vmem:[#allocation3 + $0x20] sm:$0xff]  ;;  %v999_v38 = vpop.f32.mrb[17].mxu0 }
 0x13e   : > { %816 = vst.msk [vmem:[#allocation3 + $0x40] sm:$0xff] %vm545_vm5, %v800_v55  ;;  %v1058_v43 = vadd.f32 %v1042_v37, %v979_v24  ;;  %v5242_v45 = vpop.f32.mrb[18].mxu1  ;;  %v1304_v21 = vld [vmem:[#allocation3 + $0x8] sm:$0xff] }
 0x13f   : > { %1075 = vst.msk [vmem:[#allocation3 + $0x28] sm:$0xff] %vm545_vm5, %v1059_v36  ;;  %v803_v47 = vadd.f32 %v5242_v45, %v787_v46  ;;  %v747_v48 = vpop.f32.mrb[19].mxu1  ;;  %v1303_v24 = vld [vmem:[#allocation3] sm:$0xff] }
 0x140   : > { %1074 = vst.msk [vmem:[#allocation3 + $0x20] sm:$0xff] %vm545_vm5, %v1058_v43  ;;  %v802_v50 = vadd.f32 %v786_v49, %v747_v48  ;;  %v1045_v51 = vld [vmem:[#allocation3 + $0x38] sm:$0xff]  ;;  %v5268_v52 = vpop.f32.mrb[18].mxu0 }
 0x141   : > { %819 = vst.msk [vmem:[#allocation3 + $0x58] sm:$0xff] %vm545_vm5, %v803_v47  ;;  %v1061_v54 = vadd.f32 %v5262_v31, %v1045_v51  ;;  %v1044_v57 = vld [vmem:[#allocation3 + $0x30] sm:$0xff]  ;;  %v1009_v58 = vpop.f32.mrb[19].mxu0 }
 0x142   : > { %818 = vst.msk [vmem:[#allocation3 + $0x50] sm:$0xff] %vm545_vm5, %v802_v50  ;;  %v1060_v59 = vadd.f32 %v1044_v57, %v989_v34  ;;  %v5245_v60 = vpop.f32.mrb[20].mxu1  ;;  %v1306_v33 = vld [vmem:[#allocation3 + $0x18] sm:$0xff] }
 0x143   : > { %1077 = vst.msk [vmem:[#allocation3 + $0x38] sm:$0xff] %vm545_vm5, %v1061_v54  ;;  %v805_v62 = vadd.f32 %v5245_v60, %v789_v61  ;;  %v757_v63 = vpop.f32.mrb[21].mxu1  ;;  %v1305_v39 = vld [vmem:[#allocation3 + $0x10] sm:$0xff] }
 0x144   : > { %1076 = vst.msk [vmem:[#allocation3 + $0x30] sm:$0xff] %vm545_vm5, %v1060_v59  ;;  %v804_v1 = vadd.f32 %v788_v0, %v757_v63  ;;  %v1047_v2 = vld [vmem:[#allocation3 + $0x48] sm:$0xff]  ;;  %v5271_v3 = vpop.f32.mrb[20].mxu0 }
 0x145   : > { %821 = vst.msk [vmem:[#allocation3 + $0x68] sm:$0xff] %vm545_vm5, %v805_v62  ;;  %v1063_v4 = vadd.f32 %v5265_v42, %v1047_v2  ;;  %v1046_v5 = vld [vmem:[#allocation3 + $0x40] sm:$0xff]  ;;  %v1019_v6 = vpop.f32.mrb[21].mxu0 }
 0x146   : > { %820 = vst.msk [vmem:[#allocation3 + $0x60] sm:$0xff] %vm545_vm5, %v804_v1  ;;  %v1062_v7 = vadd.f32 %v1046_v5, %v999_v38  ;;  %v5248_v8 = vpop.f32.mrb[22].mxu1  ;;  %v1308_v37 = vld [vmem:[#allocation3 + $0x28] sm:$0xff] }
 0x147   : > { %1079 = vst.msk [vmem:[#allocation3 + $0x48] sm:$0xff] %vm545_vm5, %v1063_v4  ;;  %v807_v10 = vadd.f32 %v5248_v8, %v791_v9  ;;  %v767_v11 = vpop.f32.mrb[23].mxu1  ;;  %v1307_v45 = vld [vmem:[#allocation3 + $0x20] sm:$0xff] }
 0x148   : > { %1078 = vst.msk [vmem:[#allocation3 + $0x40] sm:$0xff] %vm545_vm5, %v1062_v7  ;;  %v806_v13 = vadd.f32 %v790_v12, %v767_v11  ;;  %v1049_v14 = vld [vmem:[#allocation3 + $0x58] sm:$0xff]  ;;  %v5274_v15 = vpop.f32.mrb[22].mxu0 }
 0x149   : > { %823 = vst.msk [vmem:[#allocation3 + $0x78] sm:$0xff] %vm545_vm5, %v807_v10  ;;  %v1065_v16 = vadd.f32 %v5268_v52, %v1049_v14  ;;  %v1048_v17 = vld [vmem:[#allocation3 + $0x50] sm:$0xff]  ;;  %v1029_v18 = vpop.f32.mrb[23].mxu0 }
 0x14a   : > { %822 = vst.msk [vmem:[#allocation3 + $0x70] sm:$0xff] %vm545_vm5, %v806_v13  ;;  %v1064_v19 = vadd.f32 %v1048_v17, %v1009_v58  ;;  %v5279_v20 = vpop.f32.mrb[24].mxu1  ;;  %v1310_v57 = vld [vmem:[#allocation3 + $0x38] sm:$0xff] }
 0x14b   : > { %1081 = vst.msk [vmem:[#allocation3 + $0x58] sm:$0xff] %vm545_vm5, %v1065_v16  ;;  %v1320_v22 = vadd.f32 %v5279_v20, %v1304_v21  ;;  %v1224_v23 = vpop.f32.mrb[25].mxu1  ;;  %v1309_v60 = vld [vmem:[#allocation3 + $0x30] sm:$0xff] }
 0x14c   : > { %1080 = vst.msk [vmem:[#allocation3 + $0x50] sm:$0xff] %vm545_vm5, %v1064_v19  ;;  %v1051_v25 = vld [vmem:[#allocation3 + $0x68] sm:$0xff]  ;;  %v1319_v26 = vadd.f32 %v1303_v24, %v1224_v23  ;;  %v5305_v27 = vpop.f32.mrb[24].mxu0 }
 0x14d   : > { %1336 = vst.msk [vmem:[#allocation3 + $0x8] sm:$0xff] %vm545_vm5, %v1320_v22  ;;  %v1067_v28 = vadd.f32 %v5271_v3, %v1051_v25  ;;  %v1050_v29 = vld [vmem:[#allocation3 + $0x60] sm:$0xff]  ;;  %v1486_v30 = vpop.f32.mrb[25].mxu0 }
 0x14e   : > { %1335 = vst.msk [vmem:[#allocation3] sm:$0xff] %vm545_vm5, %v1319_v26  ;;  %v1066_v31 = vadd.f32 %v1050_v29, %v1019_v6  ;;  %v5282_v32 = vpop.f32.mrb[26].mxu1  ;;  %v1312_v5 = vld [vmem:[#allocation3 + $0x48] sm:$0xff] }
 0x14f   : > { %1083 = vst.msk [vmem:[#allocation3 + $0x68] sm:$0xff] %vm545_vm5, %v1067_v28  ;;  %v1322_v34 = vadd.f32 %v5282_v32, %v1306_v33  ;;  %v1234_v35 = vpop.f32.mrb[27].mxu1  ;;  %v1311_v8 = vld [vmem:[#allocation3 + $0x40] sm:$0xff] }
 0x150   : > { %1082 = vst.msk [vmem:[#allocation3 + $0x60] sm:$0xff] %vm545_vm5, %v1066_v31  ;;  %v1053_v40 = vld [vmem:[#allocation3 + $0x78] sm:$0xff]  ;;  %v1321_v41 = vadd.f32 %v1305_v39, %v1234_v35  ;;  %v5308_v44 = vpop.f32.mrb[26].mxu0 }
 0x151   : > { %1338 = vst.msk [vmem:[#allocation3 + $0x18] sm:$0xff] %vm545_vm5, %v1322_v34  ;;  %v1069_v53 = vadd.f32 %v5274_v15, %v1053_v40  ;;  %v1052_v55 = vld [vmem:[#allocation3 + $0x70] sm:$0xff]  ;;  %v1496_v56 = vpop.f32.mrb[27].mxu0 }
 0x152   : > { %1337 = vst.msk [vmem:[#allocation3 + $0x10] sm:$0xff] %vm545_vm5, %v1321_v41  ;;  %v1068_v42 = vadd.f32 %v1052_v55, %v1029_v18  ;;  %v5285_v36 = vpop.f32.mrb[28].mxu1  ;;  %v1314_v17 = vld [vmem:[#allocation3 + $0x58] sm:$0xff] }
 0x153   : > { %1085 = vst.msk [vmem:[#allocation3 + $0x78] sm:$0xff] %vm545_vm5, %v1069_v53  ;;  %v1324_v38 = vadd.f32 %v5285_v36, %v1308_v37  ;;  %v1244_v43 = vpop.f32.mrb[29].mxu1  ;;  %v1313_v20 = vld [vmem:[#allocation3 + $0x50] sm:$0xff] }
 0x154   : > { %1084 = vst.msk [vmem:[#allocation3 + $0x70] sm:$0xff] %vm545_vm5, %v1068_v42  ;;  %v1323_v46 = vadd.f32 %v1307_v45, %v1244_v43  ;;  %v1566_v47 = vld [vmem:[#allocation3 + $0x8] sm:$0xff]  ;;  %v5311_v48 = vpop.f32.mrb[28].mxu0 }
 0x155   : > { %1340 = vst.msk [vmem:[#allocation3 + $0x28] sm:$0xff] %vm545_vm5, %v1324_v38  ;;  %v1582_v49 = vadd.f32 %v5305_v27, %v1566_v47  ;;  %v1565_v50 = vld [vmem:[#allocation3] sm:$0xff]  ;;  %v1506_v51 = vpop.f32.mrb[29].mxu0 }
 0x156   : > { %1339 = vst.msk [vmem:[#allocation3 + $0x20] sm:$0xff] %vm545_vm5, %v1323_v46  ;;  %v1581_v52 = vadd.f32 %v1565_v50, %v1486_v30  ;;  %v5288_v54 = vpop.f32.mrb[30].mxu1  ;;  %v1316_v29 = vld [vmem:[#allocation3 + $0x68] sm:$0xff] }
 0x157   : > { %1598 = vst.msk [vmem:[#allocation3 + $0x8] sm:$0xff] %vm545_vm5, %v1582_v49  ;;  %v1326_v58 = vadd.f32 %v5288_v54, %v1310_v57  ;;  %v1254_v59 = vpop.f32.mrb[31].mxu1  ;;  %v1315_v32 = vld [vmem:[#allocation3 + $0x60] sm:$0xff] }
 0x158   : > { %1597 = vst.msk [vmem:[#allocation3] sm:$0xff] %vm545_vm5, %v1581_v52  ;;  %v1325_v61 = vadd.f32 %v1309_v60, %v1254_v59  ;;  %v1568_v62 = vld [vmem:[#allocation3 + $0x18] sm:$0xff]  ;;  %v5314_v63 = vpop.f32.mrb[30].mxu0 }
 0x159   : > { %1342 = vst.msk [vmem:[#allocation3 + $0x38] sm:$0xff] %vm545_vm5, %v1326_v58  ;;  %v1584_v0 = vadd.f32 %v5308_v44, %v1568_v62  ;;  %v1567_v1 = vld [vmem:[#allocation3 + $0x10] sm:$0xff]  ;;  %v1516_v2 = vpop.f32.mrb[31].mxu0 }
 0x15a   : > { %1341 = vst.msk [vmem:[#allocation3 + $0x30] sm:$0xff] %vm545_vm5, %v1325_v61  ;;  %v1583_v3 = vadd.f32 %v1567_v1, %v1496_v56  ;;  %v5291_v4 = vpop.f32.mrb[32].mxu1  ;;  %v1318_v55 = vld [vmem:[#allocation3 + $0x78] sm:$0xff] }
 0x15b   : > { %1600 = vst.msk [vmem:[#allocation3 + $0x18] sm:$0xff] %vm545_vm5, %v1584_v0  ;;  %v1328_v6 = vadd.f32 %v5291_v4, %v1312_v5  ;;  %v1264_v7 = vpop.f32.mrb[33].mxu1  ;;  %v1317_v36 = vld [vmem:[#allocation3 + $0x70] sm:$0xff] }
 0x15c   : > { %1599 = vst.msk [vmem:[#allocation3 + $0x10] sm:$0xff] %vm545_vm5, %v1583_v3  ;;  %v1327_v9 = vadd.f32 %v1311_v8, %v1264_v7  ;;  %v1570_v10 = vld [vmem:[#allocation3 + $0x28] sm:$0xff]  ;;  %v5317_v11 = vpop.f32.mrb[32].mxu0 }
 0x15d   : > { %1344 = vst.msk [vmem:[#allocation3 + $0x48] sm:$0xff] %vm545_vm5, %v1328_v6  ;;  %v1586_v12 = vadd.f32 %v5311_v48, %v1570_v10  ;;  %v1569_v13 = vld [vmem:[#allocation3 + $0x20] sm:$0xff]  ;;  %v1526_v14 = vpop.f32.mrb[33].mxu0 }
 0x15e   : > { %1343 = vst.msk [vmem:[#allocation3 + $0x40] sm:$0xff] %vm545_vm5, %v1327_v9  ;;  %v1585_v15 = vadd.f32 %v1569_v13, %v1506_v51  ;;  %v5294_v16 = vpop.f32.mrb[34].mxu1  ;;  %v1828_v50 = vld [vmem:[#allocation3 + $0x8] sm:$0xff] }
 0x15f   : > { %1602 = vst.msk [vmem:[#allocation3 + $0x28] sm:$0xff] %vm545_vm5, %v1586_v12  ;;  %v1330_v18 = vadd.f32 %v5294_v16, %v1314_v17  ;;  %v1274_v19 = vpop.f32.mrb[35].mxu1  ;;  %v1827_v54 = vld [vmem:[#allocation3] sm:$0xff] }
 0x160   : > { %1601 = vst.msk [vmem:[#allocation3 + $0x20] sm:$0xff] %vm545_vm5, %v1585_v15  ;;  %v1329_v21 = vadd.f32 %v1313_v20, %v1274_v19  ;;  %v1572_v22 = vld [vmem:[#allocation3 + $0x38] sm:$0xff]  ;;  %v5320_v23 = vpop.f32.mrb[34].mxu0 }
 0x161   : > { %1346 = vst.msk [vmem:[#allocation3 + $0x58] sm:$0xff] %vm545_vm5, %v1330_v18  ;;  %v1588_v24 = vadd.f32 %v5314_v63, %v1572_v22  ;;  %v1571_v25 = vld [vmem:[#allocation3 + $0x30] sm:$0xff]  ;;  %v1536_v26 = vpop.f32.mrb[35].mxu0 }
 0x162   : > { %1345 = vst.msk [vmem:[#allocation3 + $0x50] sm:$0xff] %vm545_vm5, %v1329_v21  ;;  %v1587_v27 = vadd.f32 %v1571_v25, %v1516_v2  ;;  %v5297_v28 = vpop.f32.mrb[36].mxu1  ;;  %v1830_v1 = vld [vmem:[#allocation3 + $0x18] sm:$0xff] }
 0x163   : > { %1604 = vst.msk [vmem:[#allocation3 + $0x38] sm:$0xff] %vm545_vm5, %v1588_v24  ;;  %v1332_v30 = vadd.f32 %v5297_v28, %v1316_v29  ;;  %v1284_v31 = vpop.f32.mrb[37].mxu1  ;;  %v1829_v4 = vld [vmem:[#allocation3 + $0x10] sm:$0xff] }
 0x164   : > { %1603 = vst.msk [vmem:[#allocation3 + $0x30] sm:$0xff] %vm545_vm5, %v1587_v27  ;;  %v1331_v33 = vadd.f32 %v1315_v32, %v1284_v31  ;;  %v1574_v34 = vld [vmem:[#allocation3 + $0x48] sm:$0xff]  ;;  %v5323_v35 = vpop.f32.mrb[36].mxu0 }
 0x165   : > { %1348 = vst.msk [vmem:[#allocation3 + $0x68] sm:$0xff] %vm545_vm5, %v1332_v30  ;;  %v1590_v39 = vadd.f32 %v5317_v11, %v1574_v34  ;;  %v1573_v40 = vld [vmem:[#allocation3 + $0x40] sm:$0xff]  ;;  %v1546_v41 = vpop.f32.mrb[37].mxu0 }
 0x166   : > { %1347 = vst.msk [vmem:[#allocation3 + $0x60] sm:$0xff] %vm545_vm5, %v1331_v33  ;;  %v1589_v44 = vadd.f32 %v1573_v40, %v1526_v14  ;;  %v5300_v53 = vpop.f32.mrb[38].mxu1  ;;  %v1832_v13 = vld [vmem:[#allocation3 + $0x28] sm:$0xff] }
 0x167   : > { %1606 = vst.msk [vmem:[#allocation3 + $0x48] sm:$0xff] %vm545_vm5, %v1590_v39  ;;  %v1334_v56 = vadd.f32 %v5300_v53, %v1318_v55  ;;  %v1294_v42 = vpop.f32.mrb[39].mxu1  ;;  %v1831_v16 = vld [vmem:[#allocation3 + $0x20] sm:$0xff] }
 0x168   : > { %1605 = vst.msk [vmem:[#allocation3 + $0x40] sm:$0xff] %vm545_vm5, %v1589_v44  ;;  %v1333_v37 = vadd.f32 %v1317_v36, %v1294_v42  ;;  %v1576_v38 = vld [vmem:[#allocation3 + $0x58] sm:$0xff]  ;;  %v5326_v43 = vpop.f32.mrb[38].mxu0 }
 0x169   : > { %1350 = vst.msk [vmem:[#allocation3 + $0x78] sm:$0xff] %vm545_vm5, %v1334_v56  ;;  %v1592_v45 = vadd.f32 %v5320_v23, %v1576_v38  ;;  %v1575_v46 = vld [vmem:[#allocation3 + $0x50] sm:$0xff]  ;;  %v1556_v47 = vpop.f32.mrb[39].mxu0 }
 0x16a   : > { %1349 = vst.msk [vmem:[#allocation3 + $0x70] sm:$0xff] %vm545_vm5, %v1333_v37  ;;  %v1591_v48 = vadd.f32 %v1575_v46, %v1536_v26  ;;  %v5331_v49 = vpop.f32.mrb[40].mxu1  ;;  %v1834_v25 = vld [vmem:[#allocation3 + $0x38] sm:$0xff] }
 0x16b   : > { %1608 = vst.msk [vmem:[#allocation3 + $0x58] sm:$0xff] %vm545_vm5, %v1592_v45  ;;  %v1844_v51 = vadd.f32 %v5331_v49, %v1828_v50  ;;  %v1748_v52 = vpop.f32.mrb[41].mxu1  ;;  %v1833_v28 = vld [vmem:[#allocation3 + $0x30] sm:$0xff] }
 0x16c   : > { %1607 = vst.msk [vmem:[#allocation3 + $0x50] sm:$0xff] %vm545_vm5, %v1591_v48  ;;  %v1578_v57 = vld [vmem:[#allocation3 + $0x68] sm:$0xff]  ;;  %v1843_v58 = vadd.f32 %v1827_v54, %v1748_v52  ;;  %v5357_v59 = vpop.f32.mrb[40].mxu0 }
 0x16d   : > { %1860 = vst.msk [vmem:[#allocation3 + $0x8] sm:$0xff] %vm545_vm5, %v1844_v51  ;;  %v1594_v60 = vadd.f32 %v5323_v35, %v1578_v57  ;;  %v1577_v61 = vld [vmem:[#allocation3 + $0x60] sm:$0xff]  ;;  %v2013_v62 = vpop.f32.mrb[41].mxu0 }
 0x16e   : > { %1859 = vst.msk [vmem:[#allocation3] sm:$0xff] %vm545_vm5, %v1843_v58  ;;  %v1593_v63 = vadd.f32 %v1577_v61, %v1546_v41  ;;  %v5334_v0 = vpop.f32.mrb[42].mxu1  ;;  %v1836_v40 = vld [vmem:[#allocation3 + $0x48] sm:$0xff] }
 0x16f   : > { %1610 = vst.msk [vmem:[#allocation3 + $0x68] sm:$0xff] %vm545_vm5, %v1594_v60  ;;  %v1846_v2 = vadd.f32 %v5334_v0, %v1830_v1  ;;  %v1758_v3 = vpop.f32.mrb[43].mxu1  ;;  %v1835_v53 = vld [vmem:[#allocation3 + $0x40] sm:$0xff] }
 0x170   : > { %1609 = vst.msk [vmem:[#allocation3 + $0x60] sm:$0xff] %vm545_vm5, %v1593_v63  ;;  %v1580_v5 = vld [vmem:[#allocation3 + $0x78] sm:$0xff]  ;;  %v1845_v6 = vadd.f32 %v1829_v4, %v1758_v3  ;;  %v5360_v7 = vpop.f32.mrb[42].mxu0 }
 0x171   : > { %1862 = vst.msk [vmem:[#allocation3 + $0x18] sm:$0xff] %vm545_vm5, %v1846_v2  ;;  %v1596_v8 = vadd.f32 %v5326_v43, %v1580_v5  ;;  %v1579_v9 = vld [vmem:[#allocation3 + $0x70] sm:$0xff]  ;;  %v2023_v10 = vpop.f32.mrb[43].mxu0 }
 0x172   : > { %1861 = vst.msk [vmem:[#allocation3 + $0x10] sm:$0xff] %vm545_vm5, %v1845_v6  ;;  %v1595_v11 = vadd.f32 %v1579_v9, %v1556_v47  ;;  %v5337_v12 = vpop.f32.mrb[44].mxu1  ;;  %v1838_v46 = vld [vmem:[#allocation3 + $0x58] sm:$0xff] }
 0x173   : > { %1612 = vst.msk [vmem:[#allocation3 + $0x78] sm:$0xff] %vm545_vm5, %v1596_v8  ;;  %v1848_v14 = vadd.f32 %v5337_v12, %v1832_v13  ;;  %v1768_v15 = vpop.f32.mrb[45].mxu1  ;;  %v1837_v49 = vld [vmem:[#allocation3 + $0x50] sm:$0xff] }
 0x174   : > { %1611 = vst.msk [vmem:[#allocation3 + $0x70] sm:$0xff] %vm545_vm5, %v1595_v11  ;;  %v1847_v17 = vadd.f32 %v1831_v16, %v1768_v15  ;;  %v2093_v18 = vld [vmem:[#allocation3 + $0x8] sm:$0xff]  ;;  %v5363_v19 = vpop.f32.mrb[44].mxu0 }
 0x175   : > { %1864 = vst.msk [vmem:[#allocation3 + $0x28] sm:$0xff] %vm545_vm5, %v1848_v14  ;;  %v2109_v20 = vadd.f32 %v5357_v59, %v2093_v18  ;;  %v2092_v21 = vld [vmem:[#allocation3] sm:$0xff]  ;;  %v2033_v22 = vpop.f32.mrb[45].mxu0 }
 0x176   : > { %1863 = vst.msk [vmem:[#allocation3 + $0x20] sm:$0xff] %vm545_vm5, %v1847_v17  ;;  %v2108_v23 = vadd.f32 %v2092_v21, %v2013_v62  ;;  %v5340_v24 = vpop.f32.mrb[46].mxu1  ;;  %v1840_v61 = vld [vmem:[#allocation3 + $0x68] sm:$0xff] }
 0x177   : > { %2125 = vst.msk [vmem:[#allocation3 + $0x8] sm:$0xff] %vm545_vm5, %v2109_v20  ;;  %v1850_v26 = vadd.f32 %v5340_v24, %v1834_v25  ;;  %v1778_v27 = vpop.f32.mrb[47].mxu1  ;;  %v1839_v0 = vld [vmem:[#allocation3 + $0x60] sm:$0xff] }
 0x178   : > { %2124 = vst.msk [vmem:[#allocation3] sm:$0xff] %vm545_vm5, %v2108_v23  ;;  %v1849_v29 = vadd.f32 %v1833_v28, %v1778_v27  ;;  %v2095_v30 = vld [vmem:[#allocation3 + $0x18] sm:$0xff]  ;;  %v5366_v31 = vpop.f32.mrb[46].mxu0 }
 0x179   : > { %1866 = vst.msk [vmem:[#allocation3 + $0x38] sm:$0xff] %vm545_vm5, %v1850_v26  ;;  %v2111_v32 = vadd.f32 %v5360_v7, %v2095_v30  ;;  %v2094_v33 = vld [vmem:[#allocation3 + $0x10] sm:$0xff]  ;;  %v2043_v34 = vpop.f32.mrb[47].mxu0 }
 0x17a   : > { %1865 = vst.msk [vmem:[#allocation3 + $0x30] sm:$0xff] %vm545_vm5, %v1849_v29  ;;  %v2110_v35 = vadd.f32 %v2094_v33, %v2023_v10  ;;  %v5343_v39 = vpop.f32.mrb[48].mxu1  ;;  %v1842_v9 = vld [vmem:[#allocation3 + $0x78] sm:$0xff] }
 0x17b   : > { %2127 = vst.msk [vmem:[#allocation3 + $0x18] sm:$0xff] %vm545_vm5, %v2111_v32  ;;  %v1852_v41 = vadd.f32 %v5343_v39, %v1836_v40  ;;  %v1788_v44 = vpop.f32.mrb[49].mxu1  ;;  %v1841_v12 = vld [vmem:[#allocation3 + $0x70] sm:$0xff] }
 0x17c   : > { %2126 = vst.msk [vmem:[#allocation3 + $0x10] sm:$0xff] %vm545_vm5, %v2110_v35  ;;  %v1851_v55 = vadd.f32 %v1835_v53, %v1788_v44  ;;  %v2097_v56 = vld [vmem:[#allocation3 + $0x28] sm:$0xff]  ;;  %v5369_v42 = vpop.f32.mrb[48].mxu0 }
 0x17d   : > { %1868 = vst.msk [vmem:[#allocation3 + $0x48] sm:$0xff] %vm545_vm5, %v1852_v41  ;;  %v2113_v36 = vadd.f32 %v5363_v19, %v2097_v56  ;;  %v2096_v37 = vld [vmem:[#allocation3 + $0x20] sm:$0xff]  ;;  %v2053_v38 = vpop.f32.mrb[49].mxu0 }
 0x17e   : > { %1867 = vst.msk [vmem:[#allocation3 + $0x40] sm:$0xff] %vm545_vm5, %v1851_v55  ;;  %v2112_v43 = vadd.f32 %v2096_v37, %v2033_v22  ;;  %v5346_v45 = vpop.f32.mrb[50].mxu1  ;;  %v2355_v21 = vld [vmem:[#allocation3 + $0x8] sm:$0xff] }
 0x17f   : > { %2129 = vst.msk [vmem:[#allocation3 + $0x28] sm:$0xff] %vm545_vm5, %v2113_v36  ;;  %v1854_v47 = vadd.f32 %v5346_v45, %v1838_v46  ;;  %v1798_v48 = vpop.f32.mrb[51].mxu1  ;;  %v2354_v24 = vld [vmem:[#allocation3] sm:$0xff] }
 0x180   : > { %2128 = vst.msk [vmem:[#allocation3 + $0x20] sm:$0xff] %vm545_vm5, %v2112_v43  ;;  %v1853_v50 = vadd.f32 %v1837_v49, %v1798_v48  ;;  %v2099_v51 = vld [vmem:[#allocation3 + $0x38] sm:$0xff]  ;;  %v5372_v52 = vpop.f32.mrb[50].mxu0 }
 0x181   : > { %1870 = vst.msk [vmem:[#allocation3 + $0x58] sm:$0xff] %vm545_vm5, %v1854_v47  ;;  %v2115_v54 = vadd.f32 %v5366_v31, %v2099_v51  ;;  %v2098_v57 = vld [vmem:[#allocation3 + $0x30] sm:$0xff]  ;;  %v2063_v58 = vpop.f32.mrb[51].mxu0 }
 0x182   : > { %1869 = vst.msk [vmem:[#allocation3 + $0x50] sm:$0xff] %vm545_vm5, %v1853_v50  ;;  %v2114_v59 = vadd.f32 %v2098_v57, %v2043_v34  ;;  %v5349_v60 = vpop.f32.mrb[52].mxu1  ;;  %v2357_v33 = vld [vmem:[#allocation3 + $0x18] sm:$0xff] }
 0x183   : > { %2131 = vst.msk [vmem:[#allocation3 + $0x38] sm:$0xff] %vm545_vm5, %v2115_v54  ;;  %v1856_v62 = vadd.f32 %v5349_v60, %v1840_v61  ;;  %v1808_v63 = vpop.f32.mrb[53].mxu1  ;;  %v2356_v39 = vld [vmem:[#allocation3 + $0x10] sm:$0xff] }
 0x184   : > { %2130 = vst.msk [vmem:[#allocation3 + $0x30] sm:$0xff] %vm545_vm5, %v2114_v59  ;;  %v1855_v1 = vadd.f32 %v1839_v0, %v1808_v63  ;;  %v2101_v2 = vld [vmem:[#allocation3 + $0x48] sm:$0xff]  ;;  %v5375_v3 = vpop.f32.mrb[52].mxu0 }
 0x185   : > { %1872 = vst.msk [vmem:[#allocation3 + $0x68] sm:$0xff] %vm545_vm5, %v1856_v62  ;;  %v2117_v4 = vadd.f32 %v5369_v42, %v2101_v2  ;;  %v2100_v5 = vld [vmem:[#allocation3 + $0x40] sm:$0xff]  ;;  %v2073_v6 = vpop.f32.mrb[53].mxu0 }
 0x186   : > { %1871 = vst.msk [vmem:[#allocation3 + $0x60] sm:$0xff] %vm545_vm5, %v1855_v1  ;;  %v2116_v7 = vadd.f32 %v2100_v5, %v2053_v38  ;;  %v5352_v8 = vpop.f32.mrb[54].mxu1  ;;  %v2359_v37 = vld [vmem:[#allocation3 + $0x28] sm:$0xff] }
 0x187   : > { %2133 = vst.msk [vmem:[#allocation3 + $0x48] sm:$0xff] %vm545_vm5, %v2117_v4  ;;  %v1858_v10 = vadd.f32 %v5352_v8, %v1842_v9  ;;  %v1818_v11 = vpop.f32.mrb[55].mxu1  ;;  %v2358_v45 = vld [vmem:[#allocation3 + $0x20] sm:$0xff] }
 0x188   : > { %2132 = vst.msk [vmem:[#allocation3 + $0x40] sm:$0xff] %vm545_vm5, %v2116_v7  ;;  %v1857_v13 = vadd.f32 %v1841_v12, %v1818_v11  ;;  %v2103_v14 = vld [vmem:[#allocation3 + $0x58] sm:$0xff]  ;;  %v5378_v15 = vpop.f32.mrb[54].mxu0  ;;  %v6834_v12 = vld [vmem:[%s7111_s3] ss:$0 sm:$0xff] }
 0x189   : > { %1874 = vst.msk [vmem:[#allocation3 + $0x78] sm:$0xff] %vm545_vm5, %v1858_v10  ;;  %v2119_v16 = vadd.f32 %v5372_v52, %v2103_v14  ;;  %v2102_v17 = vld [vmem:[#allocation3 + $0x50] sm:$0xff]  ;;  %v2083_v18 = vpop.f32.mrb[55].mxu0 }
 0x18a   : > { %1873 = vst.msk [vmem:[#allocation3 + $0x70] sm:$0xff] %vm545_vm5, %v1857_v13  ;;  %v2118_v19 = vadd.f32 %v2102_v17, %v2063_v58  ;;  %v5383_v20 = vpop.f32.mrb[56].mxu1  ;;  %v2361_v57 = vld [vmem:[#allocation3 + $0x38] sm:$0xff] }
 0x18b   : > { %2135 = vst.msk [vmem:[#allocation3 + $0x58] sm:$0xff] %vm545_vm5, %v2119_v16  ;;  %v2371_v22 = vadd.f32 %v5383_v20, %v2355_v21  ;;  %v2275_v23 = vpop.f32.mrb[57].mxu1  ;;  %v2360_v60 = vld [vmem:[#allocation3 + $0x30] sm:$0xff] }
 0x18c   : > { %2134 = vst.msk [vmem:[#allocation3 + $0x50] sm:$0xff] %vm545_vm5, %v2118_v19  ;;  %v2105_v25 = vld [vmem:[#allocation3 + $0x68] sm:$0xff]  ;;  %v2370_v26 = vadd.f32 %v2354_v24, %v2275_v23  ;;  %v5409_v27 = vpop.f32.mrb[56].mxu0 }
 0x18d   : > { %2387 = vst.msk [vmem:[#allocation3 + $0x8] sm:$0xff] %vm545_vm5, %v2371_v22  ;;  %v2121_v28 = vadd.f32 %v5375_v3, %v2105_v25  ;;  %v2104_v29 = vld [vmem:[#allocation3 + $0x60] sm:$0xff]  ;;  %v2537_v30 = vpop.f32.mrb[57].mxu0 }
 0x18e   : > { %2386 = vst.msk [vmem:[#allocation3] sm:$0xff] %vm545_vm5, %v2370_v26  ;;  %v2120_v31 = vadd.f32 %v2104_v29, %v2073_v6  ;;  %v5386_v32 = vpop.f32.mrb[58].mxu1  ;;  %v2363_v5 = vld [vmem:[#allocation3 + $0x48] sm:$0xff] }
 0x18f   : > { %2137 = vst.msk [vmem:[#allocation3 + $0x68] sm:$0xff] %vm545_vm5, %v2121_v28  ;;  %v2373_v34 = vadd.f32 %v5386_v32, %v2357_v33  ;;  %v2285_v35 = vpop.f32.mrb[59].mxu1  ;;  %v2362_v8 = vld [vmem:[#allocation3 + $0x40] sm:$0xff] }
 0x190   : > { %2136 = vst.msk [vmem:[#allocation3 + $0x60] sm:$0xff] %vm545_vm5, %v2120_v31  ;;  %v2107_v40 = vld [vmem:[#allocation3 + $0x78] sm:$0xff]  ;;  %v2372_v41 = vadd.f32 %v2356_v39, %v2285_v35  ;;  %v5412_v44 = vpop.f32.mrb[58].mxu0 }
 0x191   : > { %2389 = vst.msk [vmem:[#allocation3 + $0x18] sm:$0xff] %vm545_vm5, %v2373_v34  ;;  %v2123_v53 = vadd.f32 %v5378_v15, %v2107_v40  ;;  %v2106_v55 = vld [vmem:[#allocation3 + $0x70] sm:$0xff]  ;;  %v2547_v56 = vpop.f32.mrb[59].mxu0 }
 0x192   : > { %2388 = vst.msk [vmem:[#allocation3 + $0x10] sm:$0xff] %vm545_vm5, %v2372_v41  ;;  %v2122_v42 = vadd.f32 %v2106_v55, %v2083_v18  ;;  %v5389_v36 = vpop.f32.mrb[60].mxu1  ;;  %v2365_v18 = vld [vmem:[#allocation3 + $0x58] sm:$0xff] }
 0x193   : > { %2139 = vst.msk [vmem:[#allocation3 + $0x78] sm:$0xff] %vm545_vm5, %v2123_v53  ;;  %v2375_v38 = vadd.f32 %v5389_v36, %v2359_v37  ;;  %v2295_v43 = vpop.f32.mrb[61].mxu1  ;;  %v2364_v22 = vld [vmem:[#allocation3 + $0x50] sm:$0xff] }
 0x194   : > { %2138 = vst.msk [vmem:[#allocation3 + $0x70] sm:$0xff] %vm545_vm5, %v2122_v42  ;;  %v2374_v46 = vadd.f32 %v2358_v45, %v2295_v43  ;;  %v2617_v47 = vld [vmem:[#allocation3 + $0x8] sm:$0xff]  ;;  %v5415_v48 = vpop.f32.mrb[60].mxu0 }
 0x195   : > { %2391 = vst.msk [vmem:[#allocation3 + $0x28] sm:$0xff] %vm545_vm5, %v2375_v38  ;;  %v2633_v49 = vadd.f32 %v5409_v27, %v2617_v47  ;;  %v2616_v50 = vld [vmem:[#allocation3] sm:$0xff]  ;;  %v2557_v51 = vpop.f32.mrb[61].mxu0 }
 0x196   : > { %2390 = vst.msk [vmem:[#allocation3 + $0x20] sm:$0xff] %vm545_vm5, %v2374_v46  ;;  %v2632_v52 = vadd.f32 %v2616_v50, %v2537_v30  ;;  %v5392_v54 = vpop.f32.mrb[62].mxu1  ;;  %v2367_v35 = vld [vmem:[#allocation3 + $0x68] sm:$0xff] }
 0x197   : > { %2649 = vst.msk [vmem:[#allocation3 + $0x8] sm:$0xff] %vm545_vm5, %v2633_v49  ;;  %v2377_v58 = vadd.f32 %v5392_v54, %v2361_v57  ;;  %v2305_v59 = vpop.f32.mrb[63].mxu1  ;;  %v2366_v53 = vld [vmem:[#allocation3 + $0x60] sm:$0xff] }
 0x198   : > { %2648 = vst.msk [vmem:[#allocation3] sm:$0xff] %vm545_vm5, %v2632_v52  ;;  %v2376_v61 = vadd.f32 %v2360_v60, %v2305_v59  ;;  %v2619_v62 = vld [vmem:[#allocation3 + $0x18] sm:$0xff]  ;;  %v5418_v63 = vpop.f32.mrb[62].mxu0 }
 0x199   : > { %2393 = vst.msk [vmem:[#allocation3 + $0x38] sm:$0xff] %vm545_vm5, %v2377_v58  ;;  %v2635_v0 = vadd.f32 %v5412_v44, %v2619_v62  ;;  %v2618_v1 = vld [vmem:[#allocation3 + $0x10] sm:$0xff]  ;;  %v2567_v2 = vpop.f32.mrb[63].mxu0 }
 0x19a   : > { %2392 = vst.msk [vmem:[#allocation3 + $0x30] sm:$0xff] %vm545_vm5, %v2376_v61  ;;  %v2634_v3 = vadd.f32 %v2618_v1, %v2547_v56  ;;  %v5395_v4 = vpop.f32.mrb[64].mxu1  ;;  %v2369_v50 = vld [vmem:[#allocation3 + $0x78] sm:$0xff] }
 0x19b   : > { %2651 = vst.msk [vmem:[#allocation3 + $0x18] sm:$0xff] %vm545_vm5, %v2635_v0  ;;  %v2379_v6 = vadd.f32 %v5395_v4, %v2363_v5  ;;  %v2315_v7 = vpop.f32.mrb[65].mxu1  ;;  %v2368_v58 = vld [vmem:[#allocation3 + $0x70] sm:$0xff] }
 0x19c   : > { %2650 = vst.msk [vmem:[#allocation3 + $0x10] sm:$0xff] %vm545_vm5, %v2634_v3  ;;  %v2378_v9 = vadd.f32 %v2362_v8, %v2315_v7  ;;  %v2621_v10 = vld [vmem:[#allocation3 + $0x28] sm:$0xff]  ;;  %v5421_v11 = vpop.f32.mrb[64].mxu0 }
 0x19d   : > { %2395 = vst.msk [vmem:[#allocation3 + $0x48] sm:$0xff] %vm545_vm5, %v2379_v6  ;;  %v2637_v13 = vadd.f32 %v5415_v48, %v2621_v10  ;;  %v2620_v14 = vld [vmem:[#allocation3 + $0x20] sm:$0xff]  ;;  %v2577_v15 = vpop.f32.mrb[65].mxu0 }
 0x19e   : > { %2394 = vst.msk [vmem:[#allocation3 + $0x40] sm:$0xff] %vm545_vm5, %v2378_v9  ;;  %v2636_v16 = vadd.f32 %v2620_v14, %v2557_v51  ;;  %v5398_v17 = vpop.f32.mrb[66].mxu1  ;;  %v2665_v19 = vld [vmem:[#allocation3 + $0x8] sm:$0xff] }
 0x19f   : > { %2653 = vst.msk [vmem:[#allocation3 + $0x28] sm:$0xff] %vm545_vm5, %v2637_v13  ;;  %v2381_v20 = vadd.f32 %v5398_v17, %v2365_v18  ;;  %v2325_v21 = vpop.f32.mrb[67].mxu1  ;;  %v2687_v23 = vadd.f32 %v6834_v12, %v2665_v19  ;;  %v2664_v24 = vld [vmem:[#allocation3] sm:$0xff] }
 0x1a0   : > { %2652 = vst.msk [vmem:[#allocation3 + $0x20] sm:$0xff] %vm545_vm5, %v2636_v16  ;;  %v2380_v25 = vadd.f32 %v2364_v22, %v2325_v21  ;;  %v2623_v26 = vld [vmem:[#allocation3 + $0x38] sm:$0xff]  ;;  %v5424_v27 = vpop.f32.mrb[66].mxu0  ;;  %v2686_v28 = vadd.f32 %v6834_v12, %v2664_v24 }
 0x1a1   : > { %2397 = vst.msk [vmem:[#allocation3 + $0x58] sm:$0xff] %vm545_vm5, %v2381_v20  ;;  %v2639_v29 = vadd.f32 %v5418_v63, %v2623_v26  ;;  %v2622_v30 = vld [vmem:[#allocation3 + $0x30] sm:$0xff]  ;;  %v2587_v31 = vpop.f32.mrb[67].mxu0  ;;  %v2703_v32 = vmax.f32 %v2687_v23, 0.0 }
 0x1a2   : > { %2396 = vst.msk [vmem:[#allocation3 + $0x50] sm:$0xff] %vm545_vm5, %v2380_v25  ;;  %v2638_v33 = vadd.f32 %v2622_v30, %v2567_v2  ;;  %v5401_v34 = vpop.f32.mrb[68].mxu1  ;;  %v2702_v39 = vmax.f32 %v2686_v28, 0.0  ;;  %v2667_v40 = vld [vmem:[#allocation3 + $0x18] sm:$0xff] }
 0x1a3   : > { %2655 = vst.msk [vmem:[#allocation3 + $0x38] sm:$0xff] %vm545_vm5, %v2639_v29  ;;  %v2383_v41 = vadd.f32 %v5401_v34, %v2367_v35  ;;  %v2335_v44 = vpop.f32.mrb[69].mxu1  ;;  %2719 = vst.msk [vmem:[%s5870_s23 + $0x8] sm:$0xff] %vm545_vm5, %v2703_v32  ;;  %v2689_v55 = vadd.f32 %v6834_v12, %v2667_v40  ;;  %v2666_v56 = vld [vmem:[#allocation3 + $0x10] sm:$0xff] }
 0x1a4   : > { %2654 = vst.msk [vmem:[#allocation3 + $0x30] sm:$0xff] %vm545_vm5, %v2638_v33  ;;  %v2382_v42 = vadd.f32 %v2366_v53, %v2335_v44  ;;  %v2625_v36 = vld [vmem:[#allocation3 + $0x48] sm:$0xff]  ;;  %v5427_v37 = vpop.f32.mrb[68].mxu0  ;;  %2718 = vst.msk [vmem:[%s5870_s23] sm:$0xff] %vm545_vm5, %v2702_v39  ;;  %v2688_v38 = vadd.f32 %v6834_v12, %v2666_v56 }
 0x1a5   : > { %2399 = vst.msk [vmem:[#allocation3 + $0x68] sm:$0xff] %vm545_vm5, %v2383_v41  ;;  %v2641_v43 = vadd.f32 %v5421_v11, %v2625_v36  ;;  %v2624_v45 = vld [vmem:[#allocation3 + $0x40] sm:$0xff]  ;;  %v2597_v46 = vpop.f32.mrb[69].mxu0  ;;  %v2705_v47 = vmax.f32 %v2689_v55, 0.0 }
 0x1a6   : > { %2398 = vst.msk [vmem:[#allocation3 + $0x60] sm:$0xff] %vm545_vm5, %v2382_v42  ;;  %v2640_v48 = vadd.f32 %v2624_v45, %v2577_v15  ;;  %v5404_v49 = vpop.f32.mrb[70].mxu1  ;;  %v2704_v51 = vmax.f32 %v2688_v38, 0.0  ;;  %v2669_v52 = vld [vmem:[#allocation3 + $0x28] sm:$0xff] }
 0x1a7   : > { %2657 = vst.msk [vmem:[#allocation3 + $0x48] sm:$0xff] %vm545_vm5, %v2641_v43  ;;  %v2385_v54 = vadd.f32 %v5404_v49, %v2369_v50  ;;  %v2345_v57 = vpop.f32.mrb[71].mxu1  ;;  %2721 = vst.msk [vmem:[%s5870_s23 + $0x28] sm:$0xff] %vm545_vm5, %v2705_v47  ;;  %v2691_v59 = vadd.f32 %v6834_v12, %v2669_v52  ;;  %v2668_v60 = vld [vmem:[#allocation3 + $0x20] sm:$0xff] }
 0x1a8   : > { %2656 = vst.msk [vmem:[#allocation3 + $0x40] sm:$0xff] %vm545_vm5, %v2640_v48  ;;  %v2384_v61 = vadd.f32 %v2368_v58, %v2345_v57  ;;  %v2627_v62 = vld [vmem:[#allocation3 + $0x58] sm:$0xff]  ;;  %v5430_v63 = vpop.f32.mrb[70].mxu0  ;;  %2720 = vst.msk [vmem:[%s5870_s23 + $0x20] sm:$0xff] %vm545_vm5, %v2704_v51  ;;  %v2690_v0 = vadd.f32 %v6834_v12, %v2668_v60 }
 0x1a9   : > { %2401 = vst.msk [vmem:[#allocation3 + $0x78] sm:$0xff] %vm545_vm5, %v2385_v54  ;;  %v2643_v1 = vadd.f32 %v5424_v27, %v2627_v62  ;;  %v2626_v2 = vld [vmem:[#allocation3 + $0x50] sm:$0xff]  ;;  %v2607_v3 = vpop.f32.mrb[71].mxu0  ;;  %v2707_v4 = vmax.f32 %v2691_v59, 0.0 }
 0x1aa   : > { %2400 = vst.msk [vmem:[#allocation3 + $0x70] sm:$0xff] %vm545_vm5, %v2384_v61  ;;  %v2642_v5 = vadd.f32 %v2626_v2, %v2587_v31  ;;  %v5435_v6 = vpop.f32.mrb[72].mxu1  ;;  %v2706_v7 = vmax.f32 %v2690_v0, 0.0  ;;  %v2671_v8 = vld [vmem:[#allocation3 + $0x38] sm:$0xff] }
 0x1ab   : > { %2659 = vst.msk [vmem:[#allocation3 + $0x58] sm:$0xff] %vm545_vm5, %v2643_v1  ;;  %2948 = vst.msk [vmem:[#allocation3 + $0x8] sm:$0xff] %vm545_vm5, %v5435_v6  ;;  %v2868_v9 = vpop.f32.mrb[73].mxu1  ;;  %v2693_v10 = vadd.f32 %v6834_v12, %v2671_v8  ;;  %v2670_v11 = vld [vmem:[#allocation3 + $0x30] sm:$0xff] }
 0x1ac   : > { %2723 = vst.msk [vmem:[%s5870_s23 + $0x48] sm:$0xff] %vm545_vm5, %v2707_v4  ;;  %2658 = vst.msk [vmem:[#allocation3 + $0x50] sm:$0xff] %vm545_vm5, %v2642_v5  ;;  %v2629_v13 = vld [vmem:[#allocation3 + $0x68] sm:$0xff]  ;;  %v5461_v14 = vpop.f32.mrb[72].mxu0  ;;  %v2692_v15 = vadd.f32 %v6834_v12, %v2670_v11 }
 0x1ad   : > { %2947 = vst.msk [vmem:[#allocation3] sm:$0xff] %vm545_vm5, %v2868_v9  ;;  %2722 = vst.msk [vmem:[%s5870_s23 + $0x40] sm:$0xff] %vm545_vm5, %v2706_v7  ;;  %v2645_v16 = vadd.f32 %v5427_v37, %v2629_v13  ;;  %v2628_v17 = vld [vmem:[#allocation3 + $0x60] sm:$0xff]  ;;  %v3098_v18 = vpop.f32.mrb[73].mxu0  ;;  %v2709_v19 = vmax.f32 %v2693_v10, 0.0 }
 0x1ae   : > { %v2644_v20 = vadd.f32 %v2628_v17, %v2597_v46  ;;  %v5438_v21 = vpop.f32.mrb[74].mxu1  ;;  %v2708_v22 = vmax.f32 %v2692_v15, 0.0  ;;  %v2673_v23 = vld [vmem:[#allocation3 + $0x48] sm:$0xff] }
 0x1af   : > { %2661 = vst.msk [vmem:[#allocation3 + $0x68] sm:$0xff] %vm545_vm5, %v2645_v16  ;;  %2950 = vst.msk [vmem:[#allocation3 + $0x18] sm:$0xff] %vm545_vm5, %v5438_v21  ;;  %v2878_v24 = vpop.f32.mrb[75].mxu1  ;;  %v2695_v25 = vadd.f32 %v6834_v12, %v2673_v23  ;;  %v2672_v26 = vld [vmem:[#allocation3 + $0x40] sm:$0xff] }
 0x1b0   : > { %2725 = vst.msk [vmem:[%s5870_s23 + $0x68] sm:$0xff] %vm545_vm5, %v2709_v19  ;;  %2660 = vst.msk [vmem:[#allocation3 + $0x60] sm:$0xff] %vm545_vm5, %v2644_v20  ;;  %v2631_v27 = vld [vmem:[#allocation3 + $0x78] sm:$0xff]  ;;  %v5464_v28 = vpop.f32.mrb[74].mxu0  ;;  %v2694_v29 = vadd.f32 %v6834_v12, %v2672_v26 }
 0x1b1   : > { %2949 = vst.msk [vmem:[#allocation3 + $0x10] sm:$0xff] %vm545_vm5, %v2878_v24  ;;  %2724 = vst.msk [vmem:[%s5870_s23 + $0x60] sm:$0xff] %vm545_vm5, %v2708_v22  ;;  %v2647_v30 = vadd.f32 %v5430_v63, %v2631_v27  ;;  %v2630_v31 = vld [vmem:[#allocation3 + $0x70] sm:$0xff]  ;;  %v3108_v32 = vpop.f32.mrb[75].mxu0  ;;  %v2711_v33 = vmax.f32 %v2695_v25, 0.0 }
 0x1b2   : > { %v2646_v34 = vadd.f32 %v2630_v31, %v2607_v3  ;;  %v5441_v35 = vpop.f32.mrb[76].mxu1  ;;  %v3178_v39 = vld [vmem:[#allocation3 + $0x8] sm:$0xff]  ;;  %v2710_v40 = vmax.f32 %v2694_v29, 0.0  ;;  %v2675_v41 = vld [vmem:[#allocation3 + $0x58] sm:$0xff] }
 0x1b3   : > { %2663 = vst.msk [vmem:[#allocation3 + $0x78] sm:$0xff] %vm545_vm5, %v2647_v30  ;;  %2952 = vst.msk [vmem:[#allocation3 + $0x28] sm:$0xff] %vm545_vm5, %v5441_v35  ;;  %v3194_v44 = vadd.f32 %v5461_v14, %v3178_v39  ;;  %v2888_v53 = vpop.f32.mrb[77].mxu1  ;;  %v2697_v56 = vadd.f32 %v6834_v12, %v2675_v41  ;;  %v2674_v42 = vld [vmem:[#allocation3 + $0x50] sm:$0xff] }
 0x1b4   : > { %v3177_v55 = vld [vmem:[#allocation3] sm:$0xff]  ;;  %2727 = vst.msk [vmem:[%s5870_s23 + $0x88] sm:$0xff] %vm545_vm5, %v2711_v33  ;;  %2662 = vst.msk [vmem:[#allocation3 + $0x70] sm:$0xff] %vm545_vm5, %v2646_v34  ;;  %v5467_v37 = vpop.f32.mrb[76].mxu0  ;;  %v2696_v38 = vadd.f32 %v6834_v12, %v2674_v42 }
 0x1b5   : > { %2951 = vst.msk [vmem:[#allocation3 + $0x20] sm:$0xff] %vm545_vm5, %v2888_v53  ;;  %v3193_v36 = vadd.f32 %v3177_v55, %v3098_v18  ;;  %2726 = vst.msk [vmem:[%s5870_s23 + $0x80] sm:$0xff] %vm545_vm5, %v2710_v40  ;;  %v3118_v43 = vpop.f32.mrb[77].mxu0  ;;  %v2713_v45 = vmax.f32 %v2697_v56, 0.0 }
 0x1b6   : > { %3210 = vst.msk [vmem:[#allocation3 + $0x8] sm:$0xff] %vm545_vm5, %v3194_v44  ;;  %v5444_v46 = vpop.f32.mrb[78].mxu1  ;;  %v3180_v47 = vld [vmem:[#allocation3 + $0x18] sm:$0xff]  ;;  %v2712_v48 = vmax.f32 %v2696_v38, 0.0  ;;  %v2677_v49 = vld [vmem:[#allocation3 + $0x68] sm:$0xff] }
 0x1b7   : > { %3209 = vst.msk [vmem:[#allocation3] sm:$0xff] %vm545_vm5, %v3193_v36  ;;  %2954 = vst.msk [vmem:[#allocation3 + $0x38] sm:$0xff] %vm545_vm5, %v5444_v46  ;;  %v3196_v50 = vadd.f32 %v5464_v28, %v3180_v47  ;;  %v2898_v51 = vpop.f32.mrb[79].mxu1  ;;  %v2699_v54 = vadd.f32 %v6834_v12, %v2677_v49  ;;  %v2676_v57 = vld [vmem:[#allocation3 + $0x60] sm:$0xff] }
 0x1b8   : > { %v3179_v52 = vld [vmem:[#allocation3 + $0x10] sm:$0xff]  ;;  %2729 = vst.msk [vmem:[%s5870_s23 + $0xa8] sm:$0xff] %vm545_vm5, %v2713_v45  ;;  %2953 = vst.msk [vmem:[#allocation3 + $0x30] sm:$0xff] %vm545_vm5, %v2898_v51  ;;  %v5470_v59 = vpop.f32.mrb[78].mxu0  ;;  %v2698_v60 = vadd.f32 %v6834_v12, %v2676_v57 }
 0x1b9   : > { %v3195_v58 = vadd.f32 %v3179_v52, %v3108_v32  ;;  %2728 = vst.msk [vmem:[%s5870_s23 + $0xa0] sm:$0xff] %vm545_vm5, %v2712_v48  ;;  %3212 = vst.msk [vmem:[#allocation3 + $0x18] sm:$0xff] %vm545_vm5, %v3196_v50  ;;  %v3128_v61 = vpop.f32.mrb[79].mxu0  ;;  %v2715_v62 = vmax.f32 %v2699_v54, 0.0 }
 0x1ba   : > { %v5447_v63 = vpop.f32.mrb[80].mxu1  ;;  %v3182_v0 = vld [vmem:[#allocation3 + $0x28] sm:$0xff]  ;;  %v2714_v1 = vmax.f32 %v2698_v60, 0.0  ;;  %v2679_v2 = vld [vmem:[#allocation3 + $0x78] sm:$0xff] }
 0x1bb   : > { %3211 = vst.msk [vmem:[#allocation3 + $0x10] sm:$0xff] %vm545_vm5, %v3195_v58  ;;  %2956 = vst.msk [vmem:[#allocation3 + $0x48] sm:$0xff] %vm545_vm5, %v5447_v63  ;;  %v3198_v3 = vadd.f32 %v5467_v37, %v3182_v0  ;;  %v2908_v4 = vpop.f32.mrb[81].mxu1  ;;  %v2701_v6 = vadd.f32 %v6834_v12, %v2679_v2  ;;  %v2678_v7 = vld [vmem:[#allocation3 + $0x70] sm:$0xff] }
 0x1bc   : > { %v3181_v5 = vld [vmem:[#allocation3 + $0x20] sm:$0xff]  ;;  %2731 = vst.msk [vmem:[%s5870_s23 + $0xc8] sm:$0xff] %vm545_vm5, %v2715_v62  ;;  %2955 = vst.msk [vmem:[#allocation3 + $0x40] sm:$0xff] %vm545_vm5, %v2908_v4  ;;  %v5473_v9 = vpop.f32.mrb[80].mxu0  ;;  %v2700_v10 = vadd.f32 %v6834_v12, %v2678_v7 }
 0x1bd   : > { %v3197_v8 = vadd.f32 %v3181_v5, %v3118_v43  ;;  %2730 = vst.msk [vmem:[%s5870_s23 + $0xc0] sm:$0xff] %vm545_vm5, %v2714_v1  ;;  %3214 = vst.msk [vmem:[#allocation3 + $0x28] sm:$0xff] %vm545_vm5, %v3198_v3  ;;  %v3138_v11 = vpop.f32.mrb[81].mxu0  ;;  %v2717_v13 = vmax.f32 %v2701_v6, 0.0  ;;  %v3440_v55 = vld [vmem:[#allocation3 + $0x8] sm:$0xff] }
 0x1be   : > { %v5450_v14 = vpop.f32.mrb[82].mxu1  ;;  %v3184_v15 = vld [vmem:[#allocation3 + $0x38] sm:$0xff]  ;;  %v2716_v16 = vmax.f32 %v2700_v10, 0.0  ;;  %v3439_v38 = vld [vmem:[#allocation3] sm:$0xff] }
 0x1bf   : > { %3213 = vst.msk [vmem:[#allocation3 + $0x20] sm:$0xff] %vm545_vm5, %v3197_v8  ;;  %2958 = vst.msk [vmem:[#allocation3 + $0x58] sm:$0xff] %vm545_vm5, %v5450_v14  ;;  %v3200_v17 = vadd.f32 %v5470_v59, %v3184_v15  ;;  %v2918_v18 = vpop.f32.mrb[83].mxu1  ;;  %v3183_v19 = vld [vmem:[#allocation3 + $0x30] sm:$0xff] }
 0x1c0   : > { %2733 = vst.msk [vmem:[%s5870_s23 + $0xe8] sm:$0xff] %vm545_vm5, %v2717_v13  ;;  %2957 = vst.msk [vmem:[#allocation3 + $0x50] sm:$0xff] %vm545_vm5, %v2918_v18  ;;  %v3199_v20 = vadd.f32 %v3183_v19, %v3128_v61  ;;  %v5476_v21 = vpop.f32.mrb[82].mxu0  ;;  %v3442_v50 = vld [vmem:[#allocation3 + $0x18] sm:$0xff] }
 0x1c1   : > { %2732 = vst.msk [vmem:[%s5870_s23 + $0xe0] sm:$0xff] %vm545_vm5, %v2716_v16  ;;  %3216 = vst.msk [vmem:[#allocation3 + $0x38] sm:$0xff] %vm545_vm5, %v3200_v17  ;;  %v3148_v22 = vpop.f32.mrb[83].mxu0 }
 0x1c2   : > { %3215 = vst.msk [vmem:[#allocation3 + $0x30] sm:$0xff] %vm545_vm5, %v3199_v20  ;;  %v5453_v23 = vpop.f32.mrb[84].mxu1  ;;  %v3186_v24 = vld [vmem:[#allocation3 + $0x48] sm:$0xff]  ;;  %v3441_v58 = vld [vmem:[#allocation3 + $0x10] sm:$0xff] }
 0x1c3   : > { %2960 = vst.msk [vmem:[#allocation3 + $0x68] sm:$0xff] %vm545_vm5, %v5453_v23  ;;  %v3202_v25 = vadd.f32 %v5473_v9, %v3186_v24  ;;  %v2928_v26 = vpop.f32.mrb[85].mxu1  ;;  %v3185_v27 = vld [vmem:[#allocation3 + $0x40] sm:$0xff] }
 0x1c4   : > { %2959 = vst.msk [vmem:[#allocation3 + $0x60] sm:$0xff] %vm545_vm5, %v2928_v26  ;;  %v3201_v28 = vadd.f32 %v3185_v27, %v3138_v11  ;;  %v5479_v29 = vpop.f32.mrb[84].mxu0  ;;  %v3444_v0 = vld [vmem:[#allocation3 + $0x28] sm:$0xff] }
 0x1c5   : > { %3218 = vst.msk [vmem:[#allocation3 + $0x48] sm:$0xff] %vm545_vm5, %v3202_v25  ;;  %v3158_v30 = vpop.f32.mrb[85].mxu0 }
 0x1c6   : > { %3217 = vst.msk [vmem:[#allocation3 + $0x40] sm:$0xff] %vm545_vm5, %v3201_v28  ;;  %v5456_v31 = vpop.f32.mrb[86].mxu1  ;;  %v3188_v32 = vld [vmem:[#allocation3 + $0x58] sm:$0xff]  ;;  %v3443_v3 = vld [vmem:[#allocation3 + $0x20] sm:$0xff] }
 0x1c7   : > { %2962 = vst.msk [vmem:[#allocation3 + $0x78] sm:$0xff] %vm545_vm5, %v5456_v31  ;;  %v3204_v33 = vadd.f32 %v5476_v21, %v3188_v32  ;;  %v2938_v34 = vpop.f32.mrb[87].mxu1  ;;  %v3187_v35 = vld [vmem:[#allocation3 + $0x50] sm:$0xff] }
 0x1c8   : > { %2961 = vst.msk [vmem:[#allocation3 + $0x70] sm:$0xff] %vm545_vm5, %v2938_v34  ;;  %v3203_v39 = vadd.f32 %v3187_v35, %v3148_v22  ;;  %v5482_v40 = vpop.f32.mrb[86].mxu0  ;;  %v3446_v13 = vld [vmem:[#allocation3 + $0x38] sm:$0xff] }
 0x1c9   : > { %3220 = vst.msk [vmem:[#allocation3 + $0x58] sm:$0xff] %vm545_vm5, %v3204_v33  ;;  %v3168_v41 = vpop.f32.mrb[87].mxu0  ;;  %v3445_v16 = vld [vmem:[#allocation3 + $0x30] sm:$0xff] }
 0x1ca   : > { %3219 = vst.msk [vmem:[#allocation3 + $0x50] sm:$0xff] %vm545_vm5, %v3203_v39  ;;  %v3190_v44 = vld [vmem:[#allocation3 + $0x68] sm:$0xff]  ;;  %v5487_v53 = vpop.f32.mrb[88].mxu1 }
 0x1cb   : > { %v3206_v56 = vadd.f32 %v5479_v29, %v3190_v44  ;;  %v3456_v42 = vadd.f32 %v5487_v53, %v3440_v55  ;;  %v3189_v36 = vld [vmem:[#allocation3 + $0x60] sm:$0xff]  ;;  %v3360_v37 = vpop.f32.mrb[89].mxu1 }
 0x1cc   : > { %v3205_v43 = vadd.f32 %v3189_v36, %v3158_v30  ;;  %v3455_v45 = vadd.f32 %v3439_v38, %v3360_v37  ;;  %v5513_v46 = vpop.f32.mrb[88].mxu0  ;;  %v3448_v25 = vld [vmem:[#allocation3 + $0x48] sm:$0xff] }
 0x1cd   : > { %3222 = vst.msk [vmem:[#allocation3 + $0x68] sm:$0xff] %vm545_vm5, %v3206_v56  ;;  %3472 = vst.msk [vmem:[#allocation3 + $0x8] sm:$0xff] %vm545_vm5, %v3456_v42  ;;  %v3622_v47 = vpop.f32.mrb[89].mxu0  ;;  %v3447_v28 = vld [vmem:[#allocation3 + $0x40] sm:$0xff] }
 0x1ce   : > { %3221 = vst.msk [vmem:[#allocation3 + $0x60] sm:$0xff] %vm545_vm5, %v3205_v43  ;;  %3471 = vst.msk [vmem:[#allocation3] sm:$0xff] %vm545_vm5, %v3455_v45  ;;  %v3192_v48 = vld [vmem:[#allocation3 + $0x78] sm:$0xff]  ;;  %v5490_v49 = vpop.f32.mrb[90].mxu1 }
 0x1cf   : > { %v3208_v51 = vadd.f32 %v5482_v40, %v3192_v48  ;;  %v3458_v52 = vadd.f32 %v5490_v49, %v3442_v50  ;;  %v3191_v54 = vld [vmem:[#allocation3 + $0x70] sm:$0xff]  ;;  %v3370_v57 = vpop.f32.mrb[91].mxu1 }
 0x1d0   : > { %v3207_v59 = vadd.f32 %v3191_v54, %v3168_v41  ;;  %v3457_v60 = vadd.f32 %v3441_v58, %v3370_v57  ;;  %v5516_v61 = vpop.f32.mrb[90].mxu0  ;;  %v3450_v40 = vld [vmem:[#allocation3 + $0x58] sm:$0xff] }
 0x1d1   : > { %3224 = vst.msk [vmem:[#allocation3 + $0x78] sm:$0xff] %vm545_vm5, %v3208_v51  ;;  %3474 = vst.msk [vmem:[#allocation3 + $0x18] sm:$0xff] %vm545_vm5, %v3458_v52  ;;  %v3632_v62 = vpop.f32.mrb[91].mxu0  ;;  %v3449_v53 = vld [vmem:[#allocation3 + $0x50] sm:$0xff] }
 0x1d2   : > { %3223 = vst.msk [vmem:[#allocation3 + $0x70] sm:$0xff] %vm545_vm5, %v3207_v59  ;;  %3473 = vst.msk [vmem:[#allocation3 + $0x10] sm:$0xff] %vm545_vm5, %v3457_v60  ;;  %v5493_v63 = vpop.f32.mrb[92].mxu1 }
 0x1d3   : > { %v3460_v1 = vadd.f32 %v5493_v63, %v3444_v0  ;;  %v3380_v2 = vpop.f32.mrb[93].mxu1 }
 0x1d4   : > { %v3459_v4 = vadd.f32 %v3443_v3, %v3380_v2  ;;  %v3702_v5 = vld [vmem:[#allocation3 + $0x8] sm:$0xff]  ;;  %v5519_v6 = vpop.f32.mrb[92].mxu0 }
 0x1d5   : > { %3476 = vst.msk [vmem:[#allocation3 + $0x28] sm:$0xff] %vm545_vm5, %v3460_v1  ;;  %v3718_v7 = vadd.f32 %v5513_v46, %v3702_v5  ;;  %v3701_v8 = vld [vmem:[#allocation3] sm:$0xff]  ;;  %v3642_v9 = vpop.f32.mrb[93].mxu0  ;;  %v3452_v46 = vld [vmem:[#allocation3 + $0x68] sm:$0xff] }
 0x1d6   : > { %3475 = vst.msk [vmem:[#allocation3 + $0x20] sm:$0xff] %vm545_vm5, %v3459_v4  ;;  %v3717_v10 = vadd.f32 %v3701_v8, %v3622_v47  ;;  %v5496_v11 = vpop.f32.mrb[94].mxu1  ;;  %v3451_v49 = vld [vmem:[#allocation3 + $0x60] sm:$0xff] }
 0x1d7   : > { %3734 = vst.msk [vmem:[#allocation3 + $0x8] sm:$0xff] %vm545_vm5, %v3718_v7  ;;  %v3462_v14 = vadd.f32 %v5496_v11, %v3446_v13  ;;  %v3390_v15 = vpop.f32.mrb[95].mxu1 }
 0x1d8   : > { %3733 = vst.msk [vmem:[#allocation3] sm:$0xff] %vm545_vm5, %v3717_v10  ;;  %v3461_v17 = vadd.f32 %v3445_v16, %v3390_v15  ;;  %v3704_v18 = vld [vmem:[#allocation3 + $0x18] sm:$0xff]  ;;  %v5522_v19 = vpop.f32.mrb[94].mxu0 }
 0x1d9   : > { %3478 = vst.msk [vmem:[#allocation3 + $0x38] sm:$0xff] %vm545_vm5, %v3462_v14  ;;  %v3720_v20 = vadd.f32 %v5516_v61, %v3704_v18  ;;  %v3703_v21 = vld [vmem:[#allocation3 + $0x10] sm:$0xff]  ;;  %v3652_v22 = vpop.f32.mrb[95].mxu0  ;;  %v3454_v61 = vld [vmem:[#allocation3 + $0x78] sm:$0xff] }
 0x1da   : > { %3477 = vst.msk [vmem:[#allocation3 + $0x30] sm:$0xff] %vm545_vm5, %v3461_v17  ;;  %v3719_v23 = vadd.f32 %v3703_v21, %v3632_v62  ;;  %v5499_v24 = vpop.f32.mrb[96].mxu1  ;;  %v3453_v0 = vld [vmem:[#allocation3 + $0x70] sm:$0xff] }
 0x1db   : > { %3736 = vst.msk [vmem:[#allocation3 + $0x18] sm:$0xff] %vm545_vm5, %v3720_v20  ;;  %v3464_v26 = vadd.f32 %v5499_v24, %v3448_v25  ;;  %v3400_v27 = vpop.f32.mrb[97].mxu1 }
 0x1dc   : > { %3735 = vst.msk [vmem:[#allocation3 + $0x10] sm:$0xff] %vm545_vm5, %v3719_v23  ;;  %v3463_v29 = vadd.f32 %v3447_v28, %v3400_v27  ;;  %v3706_v30 = vld [vmem:[#allocation3 + $0x28] sm:$0xff]  ;;  %v5525_v31 = vpop.f32.mrb[96].mxu0 }
 0x1dd   : > { %3480 = vst.msk [vmem:[#allocation3 + $0x48] sm:$0xff] %vm545_vm5, %v3464_v26  ;;  %v3722_v32 = vadd.f32 %v5519_v6, %v3706_v30  ;;  %v3705_v33 = vld [vmem:[#allocation3 + $0x20] sm:$0xff]  ;;  %v3662_v34 = vpop.f32.mrb[97].mxu0 }
 0x1de   : > { %3479 = vst.msk [vmem:[#allocation3 + $0x40] sm:$0xff] %vm545_vm5, %v3463_v29  ;;  %v3721_v35 = vadd.f32 %v3705_v33, %v3642_v9  ;;  %v5502_v39 = vpop.f32.mrb[98].mxu1  ;;  %v3964_v9 = vld [vmem:[#allocation3 + $0x8] sm:$0xff] }
 0x1df   : > { %3738 = vst.msk [vmem:[#allocation3 + $0x28] sm:$0xff] %vm545_vm5, %v3722_v32  ;;  %v3466_v41 = vadd.f32 %v5502_v39, %v3450_v40  ;;  %v3410_v44 = vpop.f32.mrb[99].mxu1  ;;  %v3963_v13 = vld [vmem:[#allocation3] sm:$0xff] }
 0x1e0   : > { %3737 = vst.msk [vmem:[#allocation3 + $0x20] sm:$0xff] %vm545_vm5, %v3721_v35  ;;  %v3465_v55 = vadd.f32 %v3449_v53, %v3410_v44  ;;  %v3708_v56 = vld [vmem:[#allocation3 + $0x38] sm:$0xff]  ;;  %v5528_v42 = vpop.f32.mrb[98].mxu0 }
 0x1e1   : > { %3482 = vst.msk [vmem:[#allocation3 + $0x58] sm:$0xff] %vm545_vm5, %v3466_v41  ;;  %v3724_v36 = vadd.f32 %v5522_v19, %v3708_v56  ;;  %v3707_v37 = vld [vmem:[#allocation3 + $0x30] sm:$0xff]  ;;  %v3672_v38 = vpop.f32.mrb[99].mxu0 }
 0x1e2   : > { %3481 = vst.msk [vmem:[#allocation3 + $0x50] sm:$0xff] %vm545_vm5, %v3465_v55  ;;  %v3723_v43 = vadd.f32 %v3707_v37, %v3652_v22  ;;  %v5505_v45 = vpop.f32.mrb[100].mxu1  ;;  %v3966_v22 = vld [vmem:[#allocation3 + $0x18] sm:$0xff] }
 0x1e3   : > { %3740 = vst.msk [vmem:[#allocation3 + $0x38] sm:$0xff] %vm545_vm5, %v3724_v36  ;;  %v3468_v47 = vadd.f32 %v5505_v45, %v3452_v46  ;;  %v3420_v48 = vpop.f32.mrb[101].mxu1  ;;  %v3965_v25 = vld [vmem:[#allocation3 + $0x10] sm:$0xff] }
 0x1e4   : > { %3739 = vst.msk [vmem:[#allocation3 + $0x30] sm:$0xff] %vm545_vm5, %v3723_v43  ;;  %v3467_v50 = vadd.f32 %v3451_v49, %v3420_v48  ;;  %v3710_v51 = vld [vmem:[#allocation3 + $0x48] sm:$0xff]  ;;  %v5531_v52 = vpop.f32.mrb[100].mxu0 }
 0x1e5   : > { %3484 = vst.msk [vmem:[#allocation3 + $0x68] sm:$0xff] %vm545_vm5, %v3468_v47  ;;  %v3726_v54 = vadd.f32 %v5525_v31, %v3710_v51  ;;  %v3709_v57 = vld [vmem:[#allocation3 + $0x40] sm:$0xff]  ;;  %v3682_v58 = vpop.f32.mrb[101].mxu0 }
 0x1e6   : > { %3483 = vst.msk [vmem:[#allocation3 + $0x60] sm:$0xff] %vm545_vm5, %v3467_v50  ;;  %v3725_v59 = vadd.f32 %v3709_v57, %v3662_v34  ;;  %v5508_v60 = vpop.f32.mrb[102].mxu1  ;;  %v3968_v34 = vld [vmem:[#allocation3 + $0x28] sm:$0xff] }
 0x1e7   : > { %3742 = vst.msk [vmem:[#allocation3 + $0x48] sm:$0xff] %vm545_vm5, %v3726_v54  ;;  %v3470_v62 = vadd.f32 %v5508_v60, %v3454_v61  ;;  %v3430_v63 = vpop.f32.mrb[103].mxu1  ;;  %v3967_v40 = vld [vmem:[#allocation3 + $0x20] sm:$0xff] }
 0x1e8   : > { %3741 = vst.msk [vmem:[#allocation3 + $0x40] sm:$0xff] %vm545_vm5, %v3725_v59  ;;  %v3469_v1 = vadd.f32 %v3453_v0, %v3430_v63  ;;  %v3712_v2 = vld [vmem:[#allocation3 + $0x58] sm:$0xff]  ;;  %v5534_v3 = vpop.f32.mrb[102].mxu0 }
 0x1e9   : > { %3486 = vst.msk [vmem:[#allocation3 + $0x78] sm:$0xff] %vm545_vm5, %v3470_v62  ;;  %v3728_v4 = vadd.f32 %v5528_v42, %v3712_v2  ;;  %v3711_v5 = vld [vmem:[#allocation3 + $0x50] sm:$0xff]  ;;  %v3692_v6 = vpop.f32.mrb[103].mxu0 }
 0x1ea   : > { %3485 = vst.msk [vmem:[#allocation3 + $0x70] sm:$0xff] %vm545_vm5, %v3469_v1  ;;  %v3727_v7 = vadd.f32 %v3711_v5, %v3672_v38  ;;  %v5539_v8 = vpop.f32.mrb[104].mxu1  ;;  %v3970_v38 = vld [vmem:[#allocation3 + $0x38] sm:$0xff] }
 0x1eb   : > { %3744 = vst.msk [vmem:[#allocation3 + $0x58] sm:$0xff] %vm545_vm5, %v3728_v4  ;;  %v3980_v10 = vadd.f32 %v5539_v8, %v3964_v9  ;;  %v3884_v11 = vpop.f32.mrb[105].mxu1  ;;  %v3969_v46 = vld [vmem:[#allocation3 + $0x30] sm:$0xff] }
 0x1ec   : > { %3743 = vst.msk [vmem:[#allocation3 + $0x50] sm:$0xff] %vm545_vm5, %v3727_v7  ;;  %v3714_v14 = vld [vmem:[#allocation3 + $0x68] sm:$0xff]  ;;  %v3979_v15 = vadd.f32 %v3963_v13, %v3884_v11  ;;  %v5565_v16 = vpop.f32.mrb[104].mxu0 }
 0x1ed   : > { %3996 = vst.msk [vmem:[#allocation3 + $0x8] sm:$0xff] %vm545_vm5, %v3980_v10  ;;  %v3730_v17 = vadd.f32 %v5531_v52, %v3714_v14  ;;  %v3713_v18 = vld [vmem:[#allocation3 + $0x60] sm:$0xff]  ;;  %v4146_v19 = vpop.f32.mrb[105].mxu0 }
 0x1ee   : > { %3995 = vst.msk [vmem:[#allocation3] sm:$0xff] %vm545_vm5, %v3979_v15  ;;  %v3729_v20 = vadd.f32 %v3713_v18, %v3682_v58  ;;  %v5542_v21 = vpop.f32.mrb[106].mxu1  ;;  %v3972_v58 = vld [vmem:[#allocation3 + $0x48] sm:$0xff] }
 0x1ef   : > { %3746 = vst.msk [vmem:[#allocation3 + $0x68] sm:$0xff] %vm545_vm5, %v3730_v17  ;;  %v3982_v23 = vadd.f32 %v5542_v21, %v3966_v22  ;;  %v3894_v24 = vpop.f32.mrb[107].mxu1  ;;  %v3971_v61 = vld [vmem:[#allocation3 + $0x40] sm:$0xff] }
 0x1f0   : > { %3745 = vst.msk [vmem:[#allocation3 + $0x60] sm:$0xff] %vm545_vm5, %v3729_v20  ;;  %v3716_v26 = vld [vmem:[#allocation3 + $0x78] sm:$0xff]  ;;  %v3981_v27 = vadd.f32 %v3965_v25, %v3894_v24  ;;  %v5568_v28 = vpop.f32.mrb[106].mxu0 }
 0x1f1   : > { %3998 = vst.msk [vmem:[#allocation3 + $0x18] sm:$0xff] %vm545_vm5, %v3982_v23  ;;  %v3732_v29 = vadd.f32 %v5534_v3, %v3716_v26  ;;  %v3715_v30 = vld [vmem:[#allocation3 + $0x70] sm:$0xff]  ;;  %v4156_v31 = vpop.f32.mrb[107].mxu0 }
 0x1f2   : > { %3997 = vst.msk [vmem:[#allocation3 + $0x10] sm:$0xff] %vm545_vm5, %v3981_v27  ;;  %v3731_v32 = vadd.f32 %v3715_v30, %v3692_v6  ;;  %v5545_v33 = vpop.f32.mrb[108].mxu1  ;;  %v3974_v7 = vld [vmem:[#allocation3 + $0x58] sm:$0xff] }
 0x1f3   : > { %3748 = vst.msk [vmem:[#allocation3 + $0x78] sm:$0xff] %vm545_vm5, %v3732_v29  ;;  %v3984_v35 = vadd.f32 %v5545_v33, %v3968_v34  ;;  %v3904_v39 = vpop.f32.mrb[109].mxu1  ;;  %v3973_v13 = vld [vmem:[#allocation3 + $0x50] sm:$0xff] }
 0x1f4   : > { %3747 = vst.msk [vmem:[#allocation3 + $0x70] sm:$0xff] %vm545_vm5, %v3731_v32  ;;  %v3983_v41 = vadd.f32 %v3967_v40, %v3904_v39  ;;  %v4226_v44 = vld [vmem:[#allocation3 + $0x8] sm:$0xff]  ;;  %v5571_v53 = vpop.f32.mrb[108].mxu0 }
 0x1f5   : > { %4000 = vst.msk [vmem:[#allocation3 + $0x28] sm:$0xff] %vm545_vm5, %v3984_v35  ;;  %v4242_v55 = vadd.f32 %v5565_v16, %v4226_v44  ;;  %v4225_v56 = vld [vmem:[#allocation3] sm:$0xff]  ;;  %v4166_v42 = vpop.f32.mrb[109].mxu0 }
 0x1f6   : > { %3999 = vst.msk [vmem:[#allocation3 + $0x20] sm:$0xff] %vm545_vm5, %v3983_v41  ;;  %v4241_v36 = vadd.f32 %v4225_v56, %v4146_v19  ;;  %v5548_v37 = vpop.f32.mrb[110].mxu1  ;;  %v3976_v26 = vld [vmem:[#allocation3 + $0x68] sm:$0xff] }
 0x1f7   : > { %4258 = vst.msk [vmem:[#allocation3 + $0x8] sm:$0xff] %vm545_vm5, %v4242_v55  ;;  %v3986_v43 = vadd.f32 %v5548_v37, %v3970_v38  ;;  %v3914_v45 = vpop.f32.mrb[111].mxu1 }
 0x1f8   : > { %4257 = vst.msk [vmem:[#allocation3] sm:$0xff] %vm545_vm5, %v4241_v36  ;;  %v3985_v47 = vadd.f32 %v3969_v46, %v3914_v45  ;;  %v4228_v48 = vld [vmem:[#allocation3 + $0x18] sm:$0xff]  ;;  %v5574_v49 = vpop.f32.mrb[110].mxu0 }
 0x1f9   : > { %4002 = vst.msk [vmem:[#allocation3 + $0x38] sm:$0xff] %vm545_vm5, %v3986_v43  ;;  %v4244_v50 = vadd.f32 %v5568_v28, %v4228_v48  ;;  %v4227_v51 = vld [vmem:[#allocation3 + $0x10] sm:$0xff]  ;;  %v4176_v52 = vpop.f32.mrb[111].mxu0 }
 0x1fa   : > { %4001 = vst.msk [vmem:[#allocation3 + $0x30] sm:$0xff] %vm545_vm5, %v3985_v47  ;;  %v4243_v54 = vadd.f32 %v4227_v51, %v4156_v31  ;;  %v5551_v57 = vpop.f32.mrb[112].mxu1  ;;  %v3975_v31 = vld [vmem:[#allocation3 + $0x60] sm:$0xff]  ;;  %v3978_v36 = vld [vmem:[#allocation3 + $0x78] sm:$0xff] }
 0x1fb   : > { %4260 = vst.msk [vmem:[#allocation3 + $0x18] sm:$0xff] %vm545_vm5, %v4244_v50  ;;  %v3988_v59 = vadd.f32 %v5551_v57, %v3972_v58  ;;  %v3924_v60 = vpop.f32.mrb[113].mxu1  ;;  %v3977_v46 = vld [vmem:[#allocation3 + $0x70] sm:$0xff] }
 0x1fc   : > { %4259 = vst.msk [vmem:[#allocation3 + $0x10] sm:$0xff] %vm545_vm5, %v4243_v54  ;;  %v3987_v62 = vadd.f32 %v3971_v61, %v3924_v60  ;;  %v4230_v63 = vld [vmem:[#allocation3 + $0x28] sm:$0xff]  ;;  %v5577_v0 = vpop.f32.mrb[112].mxu0 }
 0x1fd   : > { %4004 = vst.msk [vmem:[#allocation3 + $0x48] sm:$0xff] %vm545_vm5, %v3988_v59  ;;  %v4246_v1 = vadd.f32 %v5571_v53, %v4230_v63  ;;  %v4229_v2 = vld [vmem:[#allocation3 + $0x20] sm:$0xff]  ;;  %v4186_v3 = vpop.f32.mrb[113].mxu0 }
 0x1fe   : > { %v4274_v4 = vld [vmem:[#allocation3 + $0x8] sm:$0xff]  ;;  %4003 = vst.msk [vmem:[#allocation3 + $0x40] sm:$0xff] %vm545_vm5, %v3987_v62  ;;  %v4245_v5 = vadd.f32 %v4229_v2, %v4166_v42  ;;  %v5554_v6 = vpop.f32.mrb[114].mxu1 }
 0x1ff   : > { %v4290_v8 = vadd.f32 %v6834_v12, %v4274_v4  ;;  %v4273_v9 = vld [vmem:[#allocation3] sm:$0xff]  ;;  %4262 = vst.msk [vmem:[#allocation3 + $0x28] sm:$0xff] %vm545_vm5, %v4246_v1  ;;  %v3990_v10 = vadd.f32 %v5554_v6, %v3974_v7  ;;  %v3934_v11 = vpop.f32.mrb[115].mxu1 }
 0x200   : > { %v4289_v14 = vadd.f32 %v6834_v12, %v4273_v9  ;;  %4261 = vst.msk [vmem:[#allocation3 + $0x20] sm:$0xff] %vm545_vm5, %v4245_v5  ;;  %v3989_v15 = vadd.f32 %v3973_v13, %v3934_v11  ;;  %v4232_v16 = vld [vmem:[#allocation3 + $0x38] sm:$0xff]  ;;  %v5580_v17 = vpop.f32.mrb[114].mxu0  ;;  %v5663_v9 = vld [vmem:[%s7111_s3] ss:$0 sm:$0xff] }
 0x201   : > { %v4306_v18 = vmax.f32 %v4290_v8, 0.0  ;;  %4006 = vst.msk [vmem:[#allocation3 + $0x58] sm:$0xff] %vm545_vm5, %v3990_v10  ;;  %v4248_v19 = vadd.f32 %v5574_v49, %v4232_v16  ;;  %v4231_v20 = vld [vmem:[#allocation3 + $0x30] sm:$0xff]  ;;  %v4196_v21 = vpop.f32.mrb[115].mxu0 }
 0x202   : > { %v4305_v22 = vmax.f32 %v4289_v14, 0.0  ;;  %v4276_v23 = vld [vmem:[#allocation3 + $0x18] sm:$0xff]  ;;  %4005 = vst.msk [vmem:[#allocation3 + $0x50] sm:$0xff] %vm545_vm5, %v3989_v15  ;;  %v4247_v24 = vadd.f32 %v4231_v20, %v4176_v52  ;;  %v5557_v25 = vpop.f32.mrb[116].mxu1 }
 0x203   : > { %4918 = vst.msk [vmem:[%s5870_s23 + $0x18] sm:$0xff] %vm545_vm5, %v4306_v18  ;;  %v4292_v27 = vadd.f32 %v6834_v12, %v4276_v23  ;;  %v4275_v28 = vld [vmem:[#allocation3 + $0x10] sm:$0xff]  ;;  %4264 = vst.msk [vmem:[#allocation3 + $0x38] sm:$0xff] %vm545_vm5, %v4248_v19  ;;  %v3992_v29 = vadd.f32 %v5557_v25, %v3976_v26  ;;  %v3944_v30 = vpop.f32.mrb[117].mxu1 }
 0x204   : > { %4917 = vst.msk [vmem:[%s5870_s23 + $0x10] sm:$0xff] %vm545_vm5, %v4305_v22  ;;  %v4291_v32 = vadd.f32 %v6834_v12, %v4275_v28  ;;  %4263 = vst.msk [vmem:[#allocation3 + $0x30] sm:$0xff] %vm545_vm5, %v4247_v24  ;;  %v3991_v33 = vadd.f32 %v3975_v31, %v3944_v30  ;;  %v4234_v34 = vld [vmem:[#allocation3 + $0x48] sm:$0xff]  ;;  %v5583_v35 = vpop.f32.mrb[116].mxu0 }
 0x205   : > { %v4308_v39 = vmax.f32 %v4292_v27, 0.0  ;;  %4008 = vst.msk [vmem:[#allocation3 + $0x68] sm:$0xff] %vm545_vm5, %v3992_v29  ;;  %v4250_v40 = vadd.f32 %v5577_v0, %v4234_v34  ;;  %v4233_v41 = vld [vmem:[#allocation3 + $0x40] sm:$0xff]  ;;  %v4206_v44 = vpop.f32.mrb[117].mxu0 }
 0x206   : > { %v4307_v53 = vmax.f32 %v4291_v32, 0.0  ;;  %v4278_v55 = vld [vmem:[#allocation3 + $0x28] sm:$0xff]  ;;  %4007 = vst.msk [vmem:[#allocation3 + $0x60] sm:$0xff] %vm545_vm5, %v3991_v33  ;;  %v4249_v56 = vadd.f32 %v4233_v41, %v4186_v3  ;;  %v5560_v42 = vpop.f32.mrb[118].mxu1 }
 0x207   : > { %4920 = vst.msk [vmem:[%s5870_s23 + $0x38] sm:$0xff] %vm545_vm5, %v4308_v39  ;;  %v4294_v37 = vadd.f32 %v6834_v12, %v4278_v55  ;;  %v4277_v38 = vld [vmem:[#allocation3 + $0x20] sm:$0xff]  ;;  %4266 = vst.msk [vmem:[#allocation3 + $0x48] sm:$0xff] %vm545_vm5, %v4250_v40  ;;  %v3994_v43 = vadd.f32 %v5560_v42, %v3978_v36  ;;  %v3954_v45 = vpop.f32.mrb[119].mxu1 }
 0x208   : > { %4919 = vst.msk [vmem:[%s5870_s23 + $0x30] sm:$0xff] %vm545_vm5, %v4307_v53  ;;  %v4293_v47 = vadd.f32 %v6834_v12, %v4277_v38  ;;  %4265 = vst.msk [vmem:[#allocation3 + $0x40] sm:$0xff] %vm545_vm5, %v4249_v56  ;;  %v3993_v48 = vadd.f32 %v3977_v46, %v3954_v45  ;;  %v4236_v49 = vld [vmem:[#allocation3 + $0x58] sm:$0xff]  ;;  %v5586_v50 = vpop.f32.mrb[118].mxu0 }
 0x209   : > { %v4310_v51 = vmax.f32 %v4294_v37, 0.0  ;;  %4010 = vst.msk [vmem:[#allocation3 + $0x78] sm:$0xff] %vm545_vm5, %v3994_v43  ;;  %v4252_v52 = vadd.f32 %v5580_v17, %v4236_v49  ;;  %v4235_v54 = vld [vmem:[#allocation3 + $0x50] sm:$0xff]  ;;  %v4216_v57 = vpop.f32.mrb[119].mxu0 }
 0x20a   : > { %v4309_v58 = vmax.f32 %v4293_v47, 0.0  ;;  %v4280_v59 = vld [vmem:[#allocation3 + $0x38] sm:$0xff]  ;;  %4009 = vst.msk [vmem:[#allocation3 + $0x70] sm:$0xff] %vm545_vm5, %v3993_v48  ;;  %v4251_v60 = vadd.f32 %v4235_v54, %v4196_v21 }
 0x20b   : > { %4922 = vst.msk [vmem:[%s5870_s23 + $0x58] sm:$0xff] %vm545_vm5, %v4310_v51  ;;  %v4296_v61 = vadd.f32 %v6834_v12, %v4280_v59  ;;  %v4279_v62 = vld [vmem:[#allocation3 + $0x30] sm:$0xff]  ;;  %4268 = vst.msk [vmem:[#allocation3 + $0x58] sm:$0xff] %vm545_vm5, %v4252_v52 }
 0x20c   : > { %4921 = vst.msk [vmem:[%s5870_s23 + $0x50] sm:$0xff] %vm545_vm5, %v4309_v58  ;;  %v4295_v63 = vadd.f32 %v6834_v12, %v4279_v62  ;;  %4267 = vst.msk [vmem:[#allocation3 + $0x50] sm:$0xff] %vm545_vm5, %v4251_v60  ;;  %v4238_v0 = vld [vmem:[#allocation3 + $0x68] sm:$0xff] }
 0x20d   : > { %v4312_v1 = vmax.f32 %v4296_v61, 0.0  ;;  %v4254_v2 = vadd.f32 %v5583_v35, %v4238_v0  ;;  %v4237_v3 = vld [vmem:[#allocation3 + $0x60] sm:$0xff] }
 0x20e   : > { %v4311_v4 = vmax.f32 %v4295_v63, 0.0  ;;  %v4282_v5 = vld [vmem:[#allocation3 + $0x48] sm:$0xff]  ;;  %v4253_v6 = vadd.f32 %v4237_v3, %v4206_v44 }
 0x20f   : > { %4924 = vst.msk [vmem:[%s5870_s23 + $0x78] sm:$0xff] %vm545_vm5, %v4312_v1  ;;  %v4298_v7 = vadd.f32 %v6834_v12, %v4282_v5  ;;  %v4281_v8 = vld [vmem:[#allocation3 + $0x40] sm:$0xff]  ;;  %4270 = vst.msk [vmem:[#allocation3 + $0x68] sm:$0xff] %vm545_vm5, %v4254_v2 }
 0x210   : > { %4923 = vst.msk [vmem:[%s5870_s23 + $0x70] sm:$0xff] %vm545_vm5, %v4311_v4  ;;  %v4297_v10 = vadd.f32 %v5663_v9, %v4281_v8  ;;  %4269 = vst.msk [vmem:[#allocation3 + $0x60] sm:$0xff] %vm545_vm5, %v4253_v6  ;;  %v4240_v11 = vld [vmem:[#allocation3 + $0x78] sm:$0xff] }
 0x211   : > { %v4314_v13 = vmax.f32 %v4298_v7, 0.0  ;;  %v4256_v14 = vadd.f32 %v5586_v50, %v4240_v11  ;;  %v4239_v15 = vld [vmem:[#allocation3 + $0x70] sm:$0xff] }
 0x212   : > { %v4313_v12 = vmax.f32 %v4297_v10, 0.0  ;;  %v4284_v16 = vld [vmem:[#allocation3 + $0x58] sm:$0xff]  ;;  %v4255_v17 = vadd.f32 %v4239_v15, %v4216_v57 }
 0x213   : > { %4926 = vst.msk [vmem:[%s5870_s23 + $0x98] sm:$0xff] %vm545_vm5, %v4314_v13  ;;  %v4300_v18 = vadd.f32 %v5663_v9, %v4284_v16  ;;  %v4283_v19 = vld [vmem:[#allocation3 + $0x50] sm:$0xff]  ;;  %4272 = vst.msk [vmem:[#allocation3 + $0x78] sm:$0xff] %vm545_vm5, %v4256_v14 }
 0x214   : > { %4925 = vst.msk [vmem:[%s5870_s23 + $0x90] sm:$0xff] %vm545_vm5, %v4313_v12  ;;  %v4299_v20 = vadd.f32 %v5663_v9, %v4283_v19  ;;  %4271 = vst.msk [vmem:[#allocation3 + $0x70] sm:$0xff] %vm545_vm5, %v4255_v17 }
 0x215   : > { %v4316_v21 = vmax.f32 %v4300_v18, 0.0 }
 0x216   : > { %v4315_v22 = vmax.f32 %v4299_v20, 0.0  ;;  %v4286_v23 = vld [vmem:[#allocation3 + $0x68] sm:$0xff] }
 0x217   : > { %4928 = vst.msk [vmem:[%s5870_s23 + $0xb8] sm:$0xff] %vm545_vm5, %v4316_v21  ;;  %v4302_v24 = vadd.f32 %v5663_v9, %v4286_v23  ;;  %v4285_v25 = vld [vmem:[#allocation3 + $0x60] sm:$0xff] }
 0x218   : > { %4927 = vst.msk [vmem:[%s5870_s23 + $0xb0] sm:$0xff] %vm545_vm5, %v4315_v22  ;;  %v4301_v26 = vadd.f32 %v5663_v9, %v4285_v25 }
 0x219   : > { %v4318_v27 = vmax.f32 %v4302_v24, 0.0 }
 0x21a   : > { %v4317_v28 = vmax.f32 %v4301_v26, 0.0  ;;  %v4288_v29 = vld [vmem:[#allocation3 + $0x78] sm:$0xff] }
 0x21b   : > { %4930 = vst.msk [vmem:[%s5870_s23 + $0xd8] sm:$0xff] %vm545_vm5, %v4318_v27  ;;  %v4304_v30 = vadd.f32 %v5663_v9, %v4288_v29  ;;  %v4287_v31 = vld [vmem:[#allocation3 + $0x70] sm:$0xff] }
 0x21c   : > { %4929 = vst.msk [vmem:[%s5870_s23 + $0xd0] sm:$0xff] %vm545_vm5, %v4317_v28  ;;  %v4303_v32 = vadd.f32 %v5663_v9, %v4287_v31 }
 0x21d   : > { %v4320_v33 = vmax.f32 %v4304_v30, 0.0 }
 0x21e   : > { %v4319_v34 = vmax.f32 %v4303_v32, 0.0 }
 0x21f   : > { %4932 = vst.msk [vmem:[%s5870_s23 + $0xf8] sm:$0xff] %vm545_vm5, %v4320_v33 }
 0x220   : > { %4931 = vst.msk [vmem:[%s5870_s23 + $0xf0] sm:$0xff] %vm545_vm5, %v4319_v34 }
 0x221   : > { %5677 = shalt.err (!%p5674_p7)
}
 0x222   : > { %s5678_s8 = scalar_lea.hbm %s7046_s11, 4096  ;;  %s5682_s9 = scalar_lea.hbm %s7112_s4, 16384 }
 0x223   : > { %p5679_p9 = scmp.ne.s32.totalorder %s7046_s11, %s5678_s8  ;;  %p5683_p12 = scmp.lt.u32.totalorder %s7046_s11, %s7112_s4 }
 0x224   : > { %p5684_p13 = scmp.lt.u32.totalorder %s5682_s9, %s5678_s8  ;;  %p5686_p1 = scmp.lt.u32.totalorder %s5678_s8, %s7046_s11 }
 0x225   : > { %p5680_p10 = pnand %p5679_p9, %p5840_p3 }
 0x226   : > { %p5685_p0 = por %p5684_p13, %p5683_p12 }
 0x227   : > { %p5681_p11 = pneg %p5680_p10 }
 0x228   : > { %p5687_p2 = por %p5686_p1, %p5685_p0 }
 0x22a   : > { %p5688_p4 = pnand %p5687_p2, %p5681_p11 }
 0x22c   : > { %5691 = shalt.err (!%p5688_p4)
}
 0x22d   : > { %s5762_s12 = smov 128   ;;  %s5763_s13 = smov 8  }
 0x22e   : > { %5589 = dma.vmem_to_hbm [thread:$0]  (%p5840_p3), %s7048_s19, 4096, %s7046_s11, %s7056_s14, %s5762_s12, %s5762_s12, %s5763_s13  }
 0x22f PF: > { %p5595_p5 = scmp.ge.s32.totalorder %s5758_s22, 2  ;;  %s4370_s24 = sand.u32 1, %s5730_s15  }
 0x230   : > { %s4371_s27 = scalar_lea.sflag [#allocation5], %s4370_s24 }
 0x231   : > { %p5592_p6 = pnand %p5595_p5, %p5849_p8 }
 0x233   : > { %5725 = dma.done.wait (!%p5592_p6), %s4371_s27, 4096  }
 0x234   : > { %5727 = vsyncadd (!%p5592_p6), %s4371_s27, 4294963200  ;;  %s17_s22 = sadd.s32 1, %s5758_s22   ;;  %s7115_s15 = smov %s5734_s16 }
 0x235   : > { %p14_p7 = scmp.ge.s32.totalorder %s17_s22, 6   ;;  %s7116_s16 = smov %s5738_s17 }
 0x236   : > { %s7117_s17 = smov %s5858_s7  ;;  %s7118_s18 = smov %s5750_s20 }
 0x237   : > { %s7119_s19 = smov %s5754_s21  ;;  %s7120_s20 = smov %s7123_s25 }
 0x238   : > { %s7121_s21 = smov %s7127_s26  ;;  %16 = sbr.rel (!%p14_p7) target bundleno = 5 (0x5), region = 94 }
 0x23f   :  { %4376 = vsyncpa [#allocation5], 1 }
 0x240   :  { %4378 = vsyncpa [#allocation5 + $0x1], 1 }

</bundles_post_ra>
